<compile_context>
chip_gen: v6e
topology: v6e:2x2x1
jax: 0.10.0
libtpu: 0.0.40
codegen_flags: <defaults>
</compile_context>

<pallas_src>
import functools
import numpy as np

import jax
import jax.numpy as jnp
from jax.experimental import pallas as pl
from jax.experimental.pallas import tpu as pltpu

# ---------------- small, deterministic configuration ----------------
B = 2                              # batch size
N_REF = 0                          # icosahedral mesh refinement -> 10*4^0 + 2 dofs
N_DOF = 10 * 4 ** N_REF + 2        # = 12 (CG1 unknowns)
N_PATCHES = 20                     # dual_ref = 0 -> 20 patches
PATCH_SIZE = 4                     # points per patch (n_radial -> synthetic 4)
N_DYN = 2                          # n_func_in_dynamic
N_ANC = 1                          # n_func_in_ancillary
N_TGT = 2                          # n_func_target
LAT_DYN = 8                        # architecture['latent_dynamic_dim']
LAT_ANC = 4                        # architecture['latent_ancillary_dim']
LAT = LAT_DYN + LAT_ANC            # 12
N_HIDDEN = 64                      # hidden width of encoder/decoder MLPs
INT_HIDDEN = 16                    # hidden width of interaction MLP
DT = 0.25                          # architecture['dt'] (Euler step size)
ROWS = B * N_PATCHES               # 40 rows inside the fused kernel

# patch-point -> dof index map (deterministic synthetic, covers all dofs)
# TODO(synk): the real PatchEncoder/PatchDecoder interpolate between the
# Firedrake CG1 FunctionSpace and the spherical patch covering points; a
# deterministic index gather / scatter-average stands in for it here.
POINT_IDX = (np.arange(N_PATCHES * PATCH_SIZE) % N_DOF).reshape(
    N_PATCHES, PATCH_SIZE).astype(np.int32)
FLAT_IDX = POINT_IDX.reshape(-1)
COUNTS = np.bincount(FLAT_IDX, minlength=N_DOF).astype(np.float32)


# ---------------------------- fused kernel ---------------------------
def _softplus(x):
    # torch.nn.Softplus(beta=1, threshold=20)
    return jnp.where(x > 20.0, x, jnp.log(1.0 + jnp.exp(jnp.minimum(x, 20.0))))


def _make_fused_kernel(nsteps, dt):
    """Whole forward pass (encoders -> Euler solver -> decoder) in one kernel.

    All operands live in VMEM; all matmuls are plain 2-D MXU dots; the Euler
    loop is fully unrolled (nsteps is a static Python int).
    """
    def kernel(dyn_ref, anc_ref, g1_ref, g2_ref, g3_ref,
               # dynamic encoder (last layer zero-padded onto LAT columns)
               dw1, db1, dw2, db2, dw3, db3, dw4, db4,
               # ancillary encoder (last layer zero-padded onto LAT columns)
               aw1, ab1, aw2, ab2, aw3, ab3, aw4, ab4,
               # interaction MLP: W1 pre-split into self/neighbour blocks,
               # W2/b2 zero-padded on the ancillary columns
               iws, iwa, iwb, iwc, ib1, iw2, ib2,
               # decoder
               ow1, ob1, ow2, ob2, ow3, ob3, ow4, ob4,
               out_ref):

        def dot(a, b):
            return jnp.dot(a, b, preferred_element_type=jnp.float32)

        def mlp4(x, w1, b1, w2, b2, w3, b3, w4, b4):
            # Linear -> Softplus -> Linear -> Softplus -> Linear -> Softplus -> Linear
            h = _softplus(dot(x, w1[...]) + b1[...])
            h = _softplus(dot(h, w2[...]) + b2[...])
            h = _softplus(dot(h, w3[...]) + b3[...])
            return dot(h, w4[...]) + b4[...]

        # --- PatchEncoder -------------------------------------------------
        # dynamic / ancillary encoders write to disjoint (zero-padded) latent
        # columns; their sum equals concat([y_dyn, y_anc], axis=-1).
        z = (mlp4(dyn_ref[...], dw1, db1, dw2, db2, dw3, db3, dw4, db4) +
             mlp4(anc_ref[...], aw1, ab1, aw2, ab2, aw3, ab3, aw4, ab4))

        # --- NeuralSolver: forward Euler, fully unrolled --------------------
        # gathered-neighbour flatten @ W1  ==  z @ W1_self + sum_k (G_k z) @ W1_k
        # (the identity "self" gather matmul is dropped entirely).
        g1 = g1_ref[...]
        g2 = g2_ref[...]
        g3 = g3_ref[...]
        w_s = iws[...]
        w_a = iwa[...]
        w_b = iwb[...]
        w_c = iwc[...]
        bi1 = ib1[...]
        w2p = iw2[...]
        bi2 = ib2[...]
        for _ in range(nsteps):
            acc = (dot(z, w_s)
                   + dot(dot(g1, z), w_a)
                   + dot(dot(g2, z), w_b)
                   + dot(dot(g3, z), w_c))
            h = _softplus(acc + bi1)
            # W2/b2 are zero on the ancillary columns -> only dynamic latents move
            z = z + dt * (dot(h, w2p) + bi2)

        # --- PatchDecoder MLP ------------------------------------------------
        out_ref[...] = mlp4(z, ow1, ob1, ow2, ob2, ow3, ob3, ow4, ob4)

    return kernel


# -------------------- deterministic parameters / maps ----------------
def _init_linear(key, fan_in, fan_out):
    kw, kb = jax.random.split(key)
    bound = 1.0 / np.sqrt(fan_in)
    w = jax.random.uniform(kw, (fan_in, fan_out), jnp.float32, -bound, bound)
    b = jax.random.uniform(kb, (1, fan_out), jnp.float32, -bound, bound)
    return w, b


def _init_mlp(key, dims):
    keys = jax.random.split(key, len(dims) - 1)
    return [_init_linear(k, dims[i], dims[i + 1]) for i, k in enumerate(keys)]


def init_params(seed=0):
    key = jax.random.PRNGKey(seed)
    k_dyn, k_anc, k_dec, k_int = jax.random.split(key, 4)
    return {
        "dyn_enc": _init_mlp(k_dyn, [(N_DYN + N_ANC) * PATCH_SIZE,
                                     N_HIDDEN, N_HIDDEN, N_HIDDEN, LAT_DYN]),
        "anc_enc": _init_mlp(k_anc, [N_ANC * PATCH_SIZE,
                                     N_HIDDEN, N_HIDDEN, N_HIDDEN, LAT_ANC]),
        "dec":     _init_mlp(k_dec, [LAT, N_HIDDEN, N_HIDDEN, N_HIDDEN,
                                     N_TGT * PATCH_SIZE]),
        "inter":   _init_mlp(k_int, [4 * LAT, INT_HIDDEN, LAT_DYN]),
    }


def prepare_kernel_params(params):
    """Pad / pre-split parameters once so the kernel needs no slicing or concat."""
    (dw1, db1), (dw2, db2), (dw3, db3), (dw4, db4) = params["dyn_enc"]
    (aw1, ab1), (aw2, ab2), (aw3, ab3), (aw4, ab4) = params["anc_enc"]
    (ow1, ob1), (ow2, ob2), (ow3, ob3), (ow4, ob4) = params["dec"]
    (iw1, ib1), (iw2, ib2) = params["inter"]

    # encoder last layers padded onto disjoint latent columns (dyn | anc)
    dw4p = jnp.concatenate([dw4, jnp.zeros((N_HIDDEN, LAT_ANC), jnp.float32)], axis=1)
    db4p = jnp.concatenate([db4, jnp.zeros((1, LAT_ANC), jnp.float32)], axis=1)
    aw4p = jnp.concatenate([jnp.zeros((N_HIDDEN, LAT_DYN), jnp.float32), aw4], axis=1)
    ab4p = jnp.concatenate([jnp.zeros((1, LAT_DYN), jnp.float32), ab4], axis=1)

    # interaction W1 pre-split into the 4 neighbour blocks [self, n0, n1, n2]
    iw_s = iw1[0 * LAT:1 * LAT, :]
    iw_a = iw1[1 * LAT:2 * LAT, :]
    iw_b = iw1[2 * LAT:3 * LAT, :]
    iw_c = iw1[3 * LAT:4 * LAT, :]
    # W2/b2 zero-padded on the ancillary columns -> ancillary latents frozen
    iw2p = jnp.concatenate([iw2, jnp.zeros((INT_HIDDEN, LAT_ANC), jnp.float32)], axis=1)
    ib2p = jnp.concatenate([ib2, jnp.zeros((1, LAT_ANC), jnp.float32)], axis=1)

    return (dw1, db1, dw2, db2, dw3, db3, dw4p, db4p,
            aw1, ab1, aw2, ab2, aw3, ab3, aw4p, ab4p,
            iw_s, iw_a, iw_b, iw_c, ib1, iw2p, ib2p,
            ow1, ob1, ow2, ob2, ow3, ob3, ow4, ob4)


def build_gather_blocks():
    """One-hot neighbour-gather matrices for the solver (identity dropped)."""
    # TODO(synk): real adjacency comes from the dual icosahedral mesh; synthetic here.
    neigh = np.stack([(np.arange(N_PATCHES) + s) % N_PATCHES for s in (1, 7, 13)], axis=1)
    G = np.zeros((3, N_PATCHES, N_PATCHES), np.float32)
    for k in range(3):
        G[k, np.arange(N_PATCHES), neigh[:, k]] = 1.0
    # block-diagonal over the batch so the fused kernel works on (B*P, LAT).
    # At B=2 this is 3 x 6.4 KB; for large B/P this should become an in-kernel
    # roll/index gather (XLU) to keep memory linear on v7x's 64 MiB VMEM.
    return tuple(jnp.asarray(np.kron(np.eye(B, dtype=np.float32), G[k]))
                 for k in range(3))


# ------------------------------ forward ------------------------------
@functools.partial(jax.jit, static_argnums=(3,))
def forward(kparams, gblk, x, nsteps):
    """x: (B, n_dyn + n_anc, n_dof)  ->  (B, n_func_target, n_dof)"""
    bx, nf, ndof = x.shape
    x = x.astype(jnp.float32)

    # --- PatchEncoder input prep: index gather of dofs onto patch points -----
    # TODO(synk): this dof->patch-point interpolation (Firedrake) and the
    # inverse scatter-average below stay as cheap index ops in the XLA wrapper;
    # everything compute-heavy runs in the single fused Pallas kernel.
    xp = x[:, :, POINT_IDX]                                   # (B, nf, P, ps)
    xp = jnp.transpose(xp, (0, 2, 1, 3))                      # (B, P, nf, ps)
    dyn_in = xp.reshape(bx * N_PATCHES, nf * PATCH_SIZE)      # all functions
    anc_in = xp[:, :, N_DYN:, :].reshape(bx * N_PATCHES, N_ANC * PATCH_SIZE)

    # --- fused encoder -> neural-solver -> decoder kernel --------------------
    n_inputs = 5 + len(kparams)
    dec = pl.pallas_call(
        _make_fused_kernel(nsteps, DT),
        out_shape=jax.ShapeDtypeStruct((ROWS, N_TGT * PATCH_SIZE), jnp.float32),
        in_specs=[pl.BlockSpec(memory_space=pltpu.MemorySpace.VMEM)] * n_inputs,
        out_specs=pl.BlockSpec(memory_space=pltpu.MemorySpace.VMEM),
    )(dyn_in, anc_in, *gblk, *kparams)                        # (B*P, T*ps)

    # --- PatchDecoder output: scatter-average patch points back onto dofs ----
    dec = dec.reshape(bx, N_PATCHES, N_TGT, PATCH_SIZE).transpose(0, 2, 1, 3)
    dec = dec.reshape(bx, N_TGT, N_PATCHES * PATCH_SIZE)      # (B, T, P*ps)
    w = jnp.zeros((bx, N_TGT, ndof), jnp.float32).at[:, :, FLAT_IDX].add(dec)
    return w / COUNTS                                          # (B, T, n_dof)


# -------------------------------- main --------------------------------
if __name__ == "__main__":
    params = init_params(0)
    kparams = prepare_kernel_params(params)
    gblk = build_gather_blocks()

    key = jax.random.PRNGKey(0)
    x = jax.random.normal(key, (B, N_DYN + N_ANC, N_DOF), jnp.float32)
    t_final = 1.0
    nsteps = int(round(t_final / DT))          # 4 forward-Euler steps (static)

    out = forward(kparams, gblk, x, nsteps)
    out = jax.block_until_ready(out)

    assert out.shape == (B, N_TGT, N_DOF), out.shape
    assert bool(jnp.all(jnp.isfinite(out)))
    print("KERNEL_OK")
</pallas_src>

<mosaic_0001>
module attributes {stable_mosaic.version = 11 : i64} {
  func.func @kernel(%arg0: memref<40x12xf32, #tpu.memory_space<vmem>>, %arg1: memref<40x4xf32, #tpu.memory_space<vmem>>, %arg2: memref<40x40xf32, #tpu.memory_space<vmem>>, %arg3: memref<40x40xf32, #tpu.memory_space<vmem>>, %arg4: memref<40x40xf32, #tpu.memory_space<vmem>>, %arg5: memref<12x64xf32, #tpu.memory_space<vmem>>, %arg6: memref<1x64xf32, #tpu.memory_space<vmem>>, %arg7: memref<64x64xf32, #tpu.memory_space<vmem>>, %arg8: memref<1x64xf32, #tpu.memory_space<vmem>>, %arg9: memref<64x64xf32, #tpu.memory_space<vmem>>, %arg10: memref<1x64xf32, #tpu.memory_space<vmem>>, %arg11: memref<64x12xf32, #tpu.memory_space<vmem>>, %arg12: memref<1x12xf32, #tpu.memory_space<vmem>>, %arg13: memref<4x64xf32, #tpu.memory_space<vmem>>, %arg14: memref<1x64xf32, #tpu.memory_space<vmem>>, %arg15: memref<64x64xf32, #tpu.memory_space<vmem>>, %arg16: memref<1x64xf32, #tpu.memory_space<vmem>>, %arg17: memref<64x64xf32, #tpu.memory_space<vmem>>, %arg18: memref<1x64xf32, #tpu.memory_space<vmem>>, %arg19: memref<64x12xf32, #tpu.memory_space<vmem>>, %arg20: memref<1x12xf32, #tpu.memory_space<vmem>>, %arg21: memref<12x16xf32, #tpu.memory_space<vmem>>, %arg22: memref<12x16xf32, #tpu.memory_space<vmem>>, %arg23: memref<12x16xf32, #tpu.memory_space<vmem>>, %arg24: memref<12x16xf32, #tpu.memory_space<vmem>>, %arg25: memref<1x16xf32, #tpu.memory_space<vmem>>, %arg26: memref<16x12xf32, #tpu.memory_space<vmem>>, %arg27: memref<1x12xf32, #tpu.memory_space<vmem>>, %arg28: memref<12x64xf32, #tpu.memory_space<vmem>>, %arg29: memref<1x64xf32, #tpu.memory_space<vmem>>, %arg30: memref<64x64xf32, #tpu.memory_space<vmem>>, %arg31: memref<1x64xf32, #tpu.memory_space<vmem>>, %arg32: memref<64x64xf32, #tpu.memory_space<vmem>>, %arg33: memref<1x64xf32, #tpu.memory_space<vmem>>, %arg34: memref<64x8xf32, #tpu.memory_space<vmem>>, %arg35: memref<1x8xf32, #tpu.memory_space<vmem>>, %arg36: memref<40x8xf32, #tpu.memory_space<vmem>>) attributes {dimension_semantics = [], scalar_prefetch = 0 : i64, scratch_operands = 0 : i64, tpu.core_type = #tpu.core_type<tc>} {
    %c0 = arith.constant 0 : index
    %c0_0 = arith.constant 0 : index
    %0 = vector.load %arg0[%c0, %c0_0] : memref<40x12xf32, #tpu.memory_space<vmem>>, vector<40x12xf32>
    %c0_1 = arith.constant 0 : index
    %c0_2 = arith.constant 0 : index
    %1 = vector.load %arg5[%c0_1, %c0_2] : memref<12x64xf32, #tpu.memory_space<vmem>>, vector<12x64xf32>
    %cst = arith.constant dense<0.000000e+00> : vector<40x64xf32>
    %2 = tpu.matmul %0, %1, %cst {dimension_numbers = #tpu.dot_dimension_numbers<[1], [0], [0], [1], [0, 0, 1, 1], [], []>} : vector<40x12xf32>, vector<12x64xf32>, vector<40x64xf32> -> vector<40x64xf32>
    %c0_3 = arith.constant 0 : index
    %c0_4 = arith.constant 0 : index
    %3 = vector.load %arg6[%c0_3, %c0_4] : memref<1x64xf32, #tpu.memory_space<vmem>>, vector<1x64xf32>
    %4 = vector.broadcast %3 : vector<1x64xf32> to vector<40x64xf32>
    %5 = arith.addf %2, %4 : vector<40x64xf32>
    %cst_5 = arith.constant 2.000000e+01 : f32
    %6 = vector.broadcast %cst_5 : f32 to vector<40x64xf32>
    %7 = arith.cmpf ogt, %5, %6 : vector<40x64xf32>
    %cst_6 = arith.constant 2.000000e+01 : f32
    %8 = vector.broadcast %cst_6 : f32 to vector<40x64xf32>
    %9 = arith.minimumf %5, %8 : vector<40x64xf32>
    %10 = math.exp %9 : vector<40x64xf32>
    %cst_7 = arith.constant 1.000000e+00 : f32
    %11 = vector.broadcast %cst_7 : f32 to vector<40x64xf32>
    %12 = arith.addf %11, %10 : vector<40x64xf32>
    %13 = math.log %12 : vector<40x64xf32>
    %14 = arith.select %7, %5, %13 : vector<40x64xi1>, vector<40x64xf32>
    %c0_8 = arith.constant 0 : index
    %c0_9 = arith.constant 0 : index
    %15 = vector.load %arg7[%c0_8, %c0_9] : memref<64x64xf32, #tpu.memory_space<vmem>>, vector<64x64xf32>
    %cst_10 = arith.constant dense<0.000000e+00> : vector<40x64xf32>
    %16 = tpu.matmul %14, %15, %cst_10 {dimension_numbers = #tpu.dot_dimension_numbers<[1], [0], [0], [1], [0, 0, 1, 1], [], []>} : vector<40x64xf32>, vector<64x64xf32>, vector<40x64xf32> -> vector<40x64xf32>
    %c0_11 = arith.constant 0 : index
    %c0_12 = arith.constant 0 : index
    %17 = vector.load %arg8[%c0_11, %c0_12] : memref<1x64xf32, #tpu.memory_space<vmem>>, vector<1x64xf32>
    %18 = vector.broadcast %17 : vector<1x64xf32> to vector<40x64xf32>
    %19 = arith.addf %16, %18 : vector<40x64xf32>
    %cst_13 = arith.constant 2.000000e+01 : f32
    %20 = vector.broadcast %cst_13 : f32 to vector<40x64xf32>
    %21 = arith.cmpf ogt, %19, %20 : vector<40x64xf32>
    %cst_14 = arith.constant 2.000000e+01 : f32
    %22 = vector.broadcast %cst_14 : f32 to vector<40x64xf32>
    %23 = arith.minimumf %19, %22 : vector<40x64xf32>
    %24 = math.exp %23 : vector<40x64xf32>
    %cst_15 = arith.constant 1.000000e+00 : f32
    %25 = vector.broadcast %cst_15 : f32 to vector<40x64xf32>
    %26 = arith.addf %25, %24 : vector<40x64xf32>
    %27 = math.log %26 : vector<40x64xf32>
    %28 = arith.select %21, %19, %27 : vector<40x64xi1>, vector<40x64xf32>
    %c0_16 = arith.constant 0 : index
    %c0_17 = arith.constant 0 : index
    %29 = vector.load %arg9[%c0_16, %c0_17] : memref<64x64xf32, #tpu.memory_space<vmem>>, vector<64x64xf32>
    %cst_18 = arith.constant dense<0.000000e+00> : vector<40x64xf32>
    %30 = tpu.matmul %28, %29, %cst_18 {dimension_numbers = #tpu.dot_dimension_numbers<[1], [0], [0], [1], [0, 0, 1, 1], [], []>} : vector<40x64xf32>, vector<64x64xf32>, vector<40x64xf32> -> vector<40x64xf32>
    %c0_19 = arith.constant 0 : index
    %c0_20 = arith.constant 0 : index
    %31 = vector.load %arg10[%c0_19, %c0_20] : memref<1x64xf32, #tpu.memory_space<vmem>>, vector<1x64xf32>
    %32 = vector.broadcast %31 : vector<1x64xf32> to vector<40x64xf32>
    %33 = arith.addf %30, %32 : vector<40x64xf32>
    %cst_21 = arith.constant 2.000000e+01 : f32
    %34 = vector.broadcast %cst_21 : f32 to vector<40x64xf32>
    %35 = arith.cmpf ogt, %33, %34 : vector<40x64xf32>
    %cst_22 = arith.constant 2.000000e+01 : f32
    %36 = vector.broadcast %cst_22 : f32 to vector<40x64xf32>
    %37 = arith.minimumf %33, %36 : vector<40x64xf32>
    %38 = math.exp %37 : vector<40x64xf32>
    %cst_23 = arith.constant 1.000000e+00 : f32
    %39 = vector.broadcast %cst_23 : f32 to vector<40x64xf32>
    %40 = arith.addf %39, %38 : vector<40x64xf32>
    %41 = math.log %40 : vector<40x64xf32>
    %42 = arith.select %35, %33, %41 : vector<40x64xi1>, vector<40x64xf32>
    %c0_24 = arith.constant 0 : index
    %c0_25 = arith.constant 0 : index
    %43 = vector.load %arg11[%c0_24, %c0_25] : memref<64x12xf32, #tpu.memory_space<vmem>>, vector<64x12xf32>
    %cst_26 = arith.constant dense<0.000000e+00> : vector<40x12xf32>
    %44 = tpu.matmul %42, %43, %cst_26 {dimension_numbers = #tpu.dot_dimension_numbers<[1], [0], [0], [1], [0, 0, 1, 1], [], []>} : vector<40x64xf32>, vector<64x12xf32>, vector<40x12xf32> -> vector<40x12xf32>
    %c0_27 = arith.constant 0 : index
    %c0_28 = arith.constant 0 : index
    %45 = vector.load %arg12[%c0_27, %c0_28] : memref<1x12xf32, #tpu.memory_space<vmem>>, vector<1x12xf32>
    %46 = vector.broadcast %45 : vector<1x12xf32> to vector<40x12xf32>
    %47 = arith.addf %44, %46 : vector<40x12xf32>
    %c0_29 = arith.constant 0 : index
    %c0_30 = arith.constant 0 : index
    %48 = vector.load %arg1[%c0_29, %c0_30] : memref<40x4xf32, #tpu.memory_space<vmem>>, vector<40x4xf32>
    %c0_31 = arith.constant 0 : index
    %c0_32 = arith.constant 0 : index
    %49 = vector.load %arg13[%c0_31, %c0_32] : memref<4x64xf32, #tpu.memory_space<vmem>>, vector<4x64xf32>
    %cst_33 = arith.constant dense<0.000000e+00> : vector<40x64xf32>
    %50 = tpu.matmul %48, %49, %cst_33 {dimension_numbers = #tpu.dot_dimension_numbers<[1], [0], [0], [1], [0, 0, 1, 1], [], []>} : vector<40x4xf32>, vector<4x64xf32>, vector<40x64xf32> -> vector<40x64xf32>
    %c0_34 = arith.constant 0 : index
    %c0_35 = arith.constant 0 : index
    %51 = vector.load %arg14[%c0_34, %c0_35] : memref<1x64xf32, #tpu.memory_space<vmem>>, vector<1x64xf32>
    %52 = vector.broadcast %51 : vector<1x64xf32> to vector<40x64xf32>
    %53 = arith.addf %50, %52 : vector<40x64xf32>
    %cst_36 = arith.constant 2.000000e+01 : f32
    %54 = vector.broadcast %cst_36 : f32 to vector<40x64xf32>
    %55 = arith.cmpf ogt, %53, %54 : vector<40x64xf32>
    %cst_37 = arith.constant 2.000000e+01 : f32
    %56 = vector.broadcast %cst_37 : f32 to vector<40x64xf32>
    %57 = arith.minimumf %53, %56 : vector<40x64xf32>
    %58 = math.exp %57 : vector<40x64xf32>
    %cst_38 = arith.constant 1.000000e+00 : f32
    %59 = vector.broadcast %cst_38 : f32 to vector<40x64xf32>
    %60 = arith.addf %59, %58 : vector<40x64xf32>
    %61 = math.log %60 : vector<40x64xf32>
    %62 = arith.select %55, %53, %61 : vector<40x64xi1>, vector<40x64xf32>
    %c0_39 = arith.constant 0 : index
    %c0_40 = arith.constant 0 : index
    %63 = vector.load %arg15[%c0_39, %c0_40] : memref<64x64xf32, #tpu.memory_space<vmem>>, vector<64x64xf32>
    %cst_41 = arith.constant dense<0.000000e+00> : vector<40x64xf32>
    %64 = tpu.matmul %62, %63, %cst_41 {dimension_numbers = #tpu.dot_dimension_numbers<[1], [0], [0], [1], [0, 0, 1, 1], [], []>} : vector<40x64xf32>, vector<64x64xf32>, vector<40x64xf32> -> vector<40x64xf32>
    %c0_42 = arith.constant 0 : index
    %c0_43 = arith.constant 0 : index
    %65 = vector.load %arg16[%c0_42, %c0_43] : memref<1x64xf32, #tpu.memory_space<vmem>>, vector<1x64xf32>
    %66 = vector.broadcast %65 : vector<1x64xf32> to vector<40x64xf32>
    %67 = arith.addf %64, %66 : vector<40x64xf32>
    %cst_44 = arith.constant 2.000000e+01 : f32
    %68 = vector.broadcast %cst_44 : f32 to vector<40x64xf32>
    %69 = arith.cmpf ogt, %67, %68 : vector<40x64xf32>
    %cst_45 = arith.constant 2.000000e+01 : f32
    %70 = vector.broadcast %cst_45 : f32 to vector<40x64xf32>
    %71 = arith.minimumf %67, %70 : vector<40x64xf32>
    %72 = math.exp %71 : vector<40x64xf32>
    %cst_46 = arith.constant 1.000000e+00 : f32
    %73 = vector.broadcast %cst_46 : f32 to vector<40x64xf32>
    %74 = arith.addf %73, %72 : vector<40x64xf32>
    %75 = math.log %74 : vector<40x64xf32>
    %76 = arith.select %69, %67, %75 : vector<40x64xi1>, vector<40x64xf32>
    %c0_47 = arith.constant 0 : index
    %c0_48 = arith.constant 0 : index
    %77 = vector.load %arg17[%c0_47, %c0_48] : memref<64x64xf32, #tpu.memory_space<vmem>>, vector<64x64xf32>
    %cst_49 = arith.constant dense<0.000000e+00> : vector<40x64xf32>
    %78 = tpu.matmul %76, %77, %cst_49 {dimension_numbers = #tpu.dot_dimension_numbers<[1], [0], [0], [1], [0, 0, 1, 1], [], []>} : vector<40x64xf32>, vector<64x64xf32>, vector<40x64xf32> -> vector<40x64xf32>
    %c0_50 = arith.constant 0 : index
    %c0_51 = arith.constant 0 : index
    %79 = vector.load %arg18[%c0_50, %c0_51] : memref<1x64xf32, #tpu.memory_space<vmem>>, vector<1x64xf32>
    %80 = vector.broadcast %79 : vector<1x64xf32> to vector<40x64xf32>
    %81 = arith.addf %78, %80 : vector<40x64xf32>
    %cst_52 = arith.constant 2.000000e+01 : f32
    %82 = vector.broadcast %cst_52 : f32 to vector<40x64xf32>
    %83 = arith.cmpf ogt, %81, %82 : vector<40x64xf32>
    %cst_53 = arith.constant 2.000000e+01 : f32
    %84 = vector.broadcast %cst_53 : f32 to vector<40x64xf32>
    %85 = arith.minimumf %81, %84 : vector<40x64xf32>
    %86 = math.exp %85 : vector<40x64xf32>
    %cst_54 = arith.constant 1.000000e+00 : f32
    %87 = vector.broadcast %cst_54 : f32 to vector<40x64xf32>
    %88 = arith.addf %87, %86 : vector<40x64xf32>
    %89 = math.log %88 : vector<40x64xf32>
    %90 = arith.select %83, %81, %89 : vector<40x64xi1>, vector<40x64xf32>
    %c0_55 = arith.constant 0 : index
    %c0_56 = arith.constant 0 : index
    %91 = vector.load %arg19[%c0_55, %c0_56] : memref<64x12xf32, #tpu.memory_space<vmem>>, vector<64x12xf32>
    %cst_57 = arith.constant dense<0.000000e+00> : vector<40x12xf32>
    %92 = tpu.matmul %90, %91, %cst_57 {dimension_numbers = #tpu.dot_dimension_numbers<[1], [0], [0], [1], [0, 0, 1, 1], [], []>} : vector<40x64xf32>, vector<64x12xf32>, vector<40x12xf32> -> vector<40x12xf32>
    %c0_58 = arith.constant 0 : index
    %c0_59 = arith.constant 0 : index
    %93 = vector.load %arg20[%c0_58, %c0_59] : memref<1x12xf32, #tpu.memory_space<vmem>>, vector<1x12xf32>
    %94 = vector.broadcast %93 : vector<1x12xf32> to vector<40x12xf32>
    %95 = arith.addf %92, %94 : vector<40x12xf32>
    %96 = arith.addf %47, %95 : vector<40x12xf32>
    %c0_60 = arith.constant 0 : index
    %c0_61 = arith.constant 0 : index
    %97 = vector.load %arg2[%c0_60, %c0_61] : memref<40x40xf32, #tpu.memory_space<vmem>>, vector<40x40xf32>
    %c0_62 = arith.constant 0 : index
    %c0_63 = arith.constant 0 : index
    %98 = vector.load %arg3[%c0_62, %c0_63] : memref<40x40xf32, #tpu.memory_space<vmem>>, vector<40x40xf32>
    %c0_64 = arith.constant 0 : index
    %c0_65 = arith.constant 0 : index
    %99 = vector.load %arg4[%c0_64, %c0_65] : memref<40x40xf32, #tpu.memory_space<vmem>>, vector<40x40xf32>
    %c0_66 = arith.constant 0 : index
    %c0_67 = arith.constant 0 : index
    %100 = vector.load %arg21[%c0_66, %c0_67] : memref<12x16xf32, #tpu.memory_space<vmem>>, vector<12x16xf32>
    %c0_68 = arith.constant 0 : index
    %c0_69 = arith.constant 0 : index
    %101 = vector.load %arg22[%c0_68, %c0_69] : memref<12x16xf32, #tpu.memory_space<vmem>>, vector<12x16xf32>
    %c0_70 = arith.constant 0 : index
    %c0_71 = arith.constant 0 : index
    %102 = vector.load %arg23[%c0_70, %c0_71] : memref<12x16xf32, #tpu.memory_space<vmem>>, vector<12x16xf32>
    %c0_72 = arith.constant 0 : index
    %c0_73 = arith.constant 0 : index
    %103 = vector.load %arg24[%c0_72, %c0_73] : memref<12x16xf32, #tpu.memory_space<vmem>>, vector<12x16xf32>
    %c0_74 = arith.constant 0 : index
    %c0_75 = arith.constant 0 : index
    %104 = vector.load %arg25[%c0_74, %c0_75] : memref<1x16xf32, #tpu.memory_space<vmem>>, vector<1x16xf32>
    %c0_76 = arith.constant 0 : index
    %c0_77 = arith.constant 0 : index
    %105 = vector.load %arg26[%c0_76, %c0_77] : memref<16x12xf32, #tpu.memory_space<vmem>>, vector<16x12xf32>
    %c0_78 = arith.constant 0 : index
    %c0_79 = arith.constant 0 : index
    %106 = vector.load %arg27[%c0_78, %c0_79] : memref<1x12xf32, #tpu.memory_space<vmem>>, vector<1x12xf32>
    %cst_80 = arith.constant dense<0.000000e+00> : vector<40x16xf32>
    %107 = tpu.matmul %96, %100, %cst_80 {dimension_numbers = #tpu.dot_dimension_numbers<[1], [0], [0], [1], [0, 0, 1, 1], [], []>} : vector<40x12xf32>, vector<12x16xf32>, vector<40x16xf32> -> vector<40x16xf32>
    %cst_81 = arith.constant dense<0.000000e+00> : vector<40x12xf32>
    %108 = tpu.matmul %97, %96, %cst_81 {dimension_numbers = #tpu.dot_dimension_numbers<[1], [0], [0], [1], [0, 0, 1, 1], [], []>} : vector<40x40xf32>, vector<40x12xf32>, vector<40x12xf32> -> vector<40x12xf32>
    %cst_82 = arith.constant dense<0.000000e+00> : vector<40x16xf32>
    %109 = tpu.matmul %108, %101, %cst_82 {dimension_numbers = #tpu.dot_dimension_numbers<[1], [0], [0], [1], [0, 0, 1, 1], [], []>} : vector<40x12xf32>, vector<12x16xf32>, vector<40x16xf32> -> vector<40x16xf32>
    %110 = arith.addf %107, %109 : vector<40x16xf32>
    %cst_83 = arith.constant dense<0.000000e+00> : vector<40x12xf32>
    %111 = tpu.matmul %98, %96, %cst_83 {dimension_numbers = #tpu.dot_dimension_numbers<[1], [0], [0], [1], [0, 0, 1, 1], [], []>} : vector<40x40xf32>, vector<40x12xf32>, vector<40x12xf32> -> vector<40x12xf32>
    %cst_84 = arith.constant dense<0.000000e+00> : vector<40x16xf32>
    %112 = tpu.matmul %111, %102, %cst_84 {dimension_numbers = #tpu.dot_dimension_numbers<[1], [0], [0], [1], [0, 0, 1, 1], [], []>} : vector<40x12xf32>, vector<12x16xf32>, vector<40x16xf32> -> vector<40x16xf32>
    %113 = arith.addf %110, %112 : vector<40x16xf32>
    %cst_85 = arith.constant dense<0.000000e+00> : vector<40x12xf32>
    %114 = tpu.matmul %99, %96, %cst_85 {dimension_numbers = #tpu.dot_dimension_numbers<[1], [0], [0], [1], [0, 0, 1, 1], [], []>} : vector<40x40xf32>, vector<40x12xf32>, vector<40x12xf32> -> vector<40x12xf32>
    %cst_86 = arith.constant dense<0.000000e+00> : vector<40x16xf32>
    %115 = tpu.matmul %114, %103, %cst_86 {dimension_numbers = #tpu.dot_dimension_numbers<[1], [0], [0], [1], [0, 0, 1, 1], [], []>} : vector<40x12xf32>, vector<12x16xf32>, vector<40x16xf32> -> vector<40x16xf32>
    %116 = arith.addf %113, %115 : vector<40x16xf32>
    %117 = vector.broadcast %104 : vector<1x16xf32> to vector<40x16xf32>
    %118 = arith.addf %116, %117 : vector<40x16xf32>
    %cst_87 = arith.constant 2.000000e+01 : f32
    %119 = vector.broadcast %cst_87 : f32 to vector<40x16xf32>
    %120 = arith.cmpf ogt, %118, %119 : vector<40x16xf32>
    %cst_88 = arith.constant 2.000000e+01 : f32
    %121 = vector.broadcast %cst_88 : f32 to vector<40x16xf32>
    %122 = arith.minimumf %118, %121 : vector<40x16xf32>
    %123 = math.exp %122 : vector<40x16xf32>
    %cst_89 = arith.constant 1.000000e+00 : f32
    %124 = vector.broadcast %cst_89 : f32 to vector<40x16xf32>
    %125 = arith.addf %124, %123 : vector<40x16xf32>
    %126 = math.log %125 : vector<40x16xf32>
    %127 = arith.select %120, %118, %126 : vector<40x16xi1>, vector<40x16xf32>
    %cst_90 = arith.constant dense<0.000000e+00> : vector<40x12xf32>
    %128 = tpu.matmul %127, %105, %cst_90 {dimension_numbers = #tpu.dot_dimension_numbers<[1], [0], [0], [1], [0, 0, 1, 1], [], []>} : vector<40x16xf32>, vector<16x12xf32>, vector<40x12xf32> -> vector<40x12xf32>
    %129 = vector.broadcast %106 : vector<1x12xf32> to vector<40x12xf32>
    %130 = arith.addf %128, %129 : vector<40x12xf32>
    %cst_91 = arith.constant 2.500000e-01 : f32
    %131 = vector.broadcast %cst_91 : f32 to vector<40x12xf32>
    %132 = arith.mulf %131, %130 : vector<40x12xf32>
    %133 = arith.addf %96, %132 : vector<40x12xf32>
    %cst_92 = arith.constant dense<0.000000e+00> : vector<40x16xf32>
    %134 = tpu.matmul %133, %100, %cst_92 {dimension_numbers = #tpu.dot_dimension_numbers<[1], [0], [0], [1], [0, 0, 1, 1], [], []>} : vector<40x12xf32>, vector<12x16xf32>, vector<40x16xf32> -> vector<40x16xf32>
    %cst_93 = arith.constant dense<0.000000e+00> : vector<40x12xf32>
    %135 = tpu.matmul %97, %133, %cst_93 {dimension_numbers = #tpu.dot_dimension_numbers<[1], [0], [0], [1], [0, 0, 1, 1], [], []>} : vector<40x40xf32>, vector<40x12xf32>, vector<40x12xf32> -> vector<40x12xf32>
    %cst_94 = arith.constant dense<0.000000e+00> : vector<40x16xf32>
    %136 = tpu.matmul %135, %101, %cst_94 {dimension_numbers = #tpu.dot_dimension_numbers<[1], [0], [0], [1], [0, 0, 1, 1], [], []>} : vector<40x12xf32>, vector<12x16xf32>, vector<40x16xf32> -> vector<40x16xf32>
    %137 = arith.addf %134, %136 : vector<40x16xf32>
    %cst_95 = arith.constant dense<0.000000e+00> : vector<40x12xf32>
    %138 = tpu.matmul %98, %133, %cst_95 {dimension_numbers = #tpu.dot_dimension_numbers<[1], [0], [0], [1], [0, 0, 1, 1], [], []>} : vector<40x40xf32>, vector<40x12xf32>, vector<40x12xf32> -> vector<40x12xf32>
    %cst_96 = arith.constant dense<0.000000e+00> : vector<40x16xf32>
    %139 = tpu.matmul %138, %102, %cst_96 {dimension_numbers = #tpu.dot_dimension_numbers<[1], [0], [0], [1], [0, 0, 1, 1], [], []>} : vector<40x12xf32>, vector<12x16xf32>, vector<40x16xf32> -> vector<40x16xf32>
    %140 = arith.addf %137, %139 : vector<40x16xf32>
    %cst_97 = arith.constant dense<0.000000e+00> : vector<40x12xf32>
    %141 = tpu.matmul %99, %133, %cst_97 {dimension_numbers = #tpu.dot_dimension_numbers<[1], [0], [0], [1], [0, 0, 1, 1], [], []>} : vector<40x40xf32>, vector<40x12xf32>, vector<40x12xf32> -> vector<40x12xf32>
    %cst_98 = arith.constant dense<0.000000e+00> : vector<40x16xf32>
    %142 = tpu.matmul %141, %103, %cst_98 {dimension_numbers = #tpu.dot_dimension_numbers<[1], [0], [0], [1], [0, 0, 1, 1], [], []>} : vector<40x12xf32>, vector<12x16xf32>, vector<40x16xf32> -> vector<40x16xf32>
    %143 = arith.addf %140, %142 : vector<40x16xf32>
    %144 = vector.broadcast %104 : vector<1x16xf32> to vector<40x16xf32>
    %145 = arith.addf %143, %144 : vector<40x16xf32>
    %cst_99 = arith.constant 2.000000e+01 : f32
    %146 = vector.broadcast %cst_99 : f32 to vector<40x16xf32>
    %147 = arith.cmpf ogt, %145, %146 : vector<40x16xf32>
    %cst_100 = arith.constant 2.000000e+01 : f32
    %148 = vector.broadcast %cst_100 : f32 to vector<40x16xf32>
    %149 = arith.minimumf %145, %148 : vector<40x16xf32>
    %150 = math.exp %149 : vector<40x16xf32>
    %cst_101 = arith.constant 1.000000e+00 : f32
    %151 = vector.broadcast %cst_101 : f32 to vector<40x16xf32>
    %152 = arith.addf %151, %150 : vector<40x16xf32>
    %153 = math.log %152 : vector<40x16xf32>
    %154 = arith.select %147, %145, %153 : vector<40x16xi1>, vector<40x16xf32>
    %cst_102 = arith.constant dense<0.000000e+00> : vector<40x12xf32>
    %155 = tpu.matmul %154, %105, %cst_102 {dimension_numbers = #tpu.dot_dimension_numbers<[1], [0], [0], [1], [0, 0, 1, 1], [], []>} : vector<40x16xf32>, vector<16x12xf32>, vector<40x12xf32> -> vector<40x12xf32>
    %156 = vector.broadcast %106 : vector<1x12xf32> to vector<40x12xf32>
    %157 = arith.addf %155, %156 : vector<40x12xf32>
    %cst_103 = arith.constant 2.500000e-01 : f32
    %158 = vector.broadcast %cst_103 : f32 to vector<40x12xf32>
    %159 = arith.mulf %158, %157 : vector<40x12xf32>
    %160 = arith.addf %133, %159 : vector<40x12xf32>
    %cst_104 = arith.constant dense<0.000000e+00> : vector<40x16xf32>
    %161 = tpu.matmul %160, %100, %cst_104 {dimension_numbers = #tpu.dot_dimension_numbers<[1], [0], [0], [1], [0, 0, 1, 1], [], []>} : vector<40x12xf32>, vector<12x16xf32>, vector<40x16xf32> -> vector<40x16xf32>
    %cst_105 = arith.constant dense<0.000000e+00> : vector<40x12xf32>
    %162 = tpu.matmul %97, %160, %cst_105 {dimension_numbers = #tpu.dot_dimension_numbers<[1], [0], [0], [1], [0, 0, 1, 1], [], []>} : vector<40x40xf32>, vector<40x12xf32>, vector<40x12xf32> -> vector<40x12xf32>
    %cst_106 = arith.constant dense<0.000000e+00> : vector<40x16xf32>
    %163 = tpu.matmul %162, %101, %cst_106 {dimension_numbers = #tpu.dot_dimension_numbers<[1], [0], [0], [1], [0, 0, 1, 1], [], []>} : vector<40x12xf32>, vector<12x16xf32>, vector<40x16xf32> -> vector<40x16xf32>
    %164 = arith.addf %161, %163 : vector<40x16xf32>
    %cst_107 = arith.constant dense<0.000000e+00> : vector<40x12xf32>
    %165 = tpu.matmul %98, %160, %cst_107 {dimension_numbers = #tpu.dot_dimension_numbers<[1], [0], [0], [1], [0, 0, 1, 1], [], []>} : vector<40x40xf32>, vector<40x12xf32>, vector<40x12xf32> -> vector<40x12xf32>
    %cst_108 = arith.constant dense<0.000000e+00> : vector<40x16xf32>
    %166 = tpu.matmul %165, %102, %cst_108 {dimension_numbers = #tpu.dot_dimension_numbers<[1], [0], [0], [1], [0, 0, 1, 1], [], []>} : vector<40x12xf32>, vector<12x16xf32>, vector<40x16xf32> -> vector<40x16xf32>
    %167 = arith.addf %164, %166 : vector<40x16xf32>
    %cst_109 = arith.constant dense<0.000000e+00> : vector<40x12xf32>
    %168 = tpu.matmul %99, %160, %cst_109 {dimension_numbers = #tpu.dot_dimension_numbers<[1], [0], [0], [1], [0, 0, 1, 1], [], []>} : vector<40x40xf32>, vector<40x12xf32>, vector<40x12xf32> -> vector<40x12xf32>
    %cst_110 = arith.constant dense<0.000000e+00> : vector<40x16xf32>
    %169 = tpu.matmul %168, %103, %cst_110 {dimension_numbers = #tpu.dot_dimension_numbers<[1], [0], [0], [1], [0, 0, 1, 1], [], []>} : vector<40x12xf32>, vector<12x16xf32>, vector<40x16xf32> -> vector<40x16xf32>
    %170 = arith.addf %167, %169 : vector<40x16xf32>
    %171 = vector.broadcast %104 : vector<1x16xf32> to vector<40x16xf32>
    %172 = arith.addf %170, %171 : vector<40x16xf32>
    %cst_111 = arith.constant 2.000000e+01 : f32
    %173 = vector.broadcast %cst_111 : f32 to vector<40x16xf32>
    %174 = arith.cmpf ogt, %172, %173 : vector<40x16xf32>
    %cst_112 = arith.constant 2.000000e+01 : f32
    %175 = vector.broadcast %cst_112 : f32 to vector<40x16xf32>
    %176 = arith.minimumf %172, %175 : vector<40x16xf32>
    %177 = math.exp %176 : vector<40x16xf32>
    %cst_113 = arith.constant 1.000000e+00 : f32
    %178 = vector.broadcast %cst_113 : f32 to vector<40x16xf32>
    %179 = arith.addf %178, %177 : vector<40x16xf32>
    %180 = math.log %179 : vector<40x16xf32>
    %181 = arith.select %174, %172, %180 : vector<40x16xi1>, vector<40x16xf32>
    %cst_114 = arith.constant dense<0.000000e+00> : vector<40x12xf32>
    %182 = tpu.matmul %181, %105, %cst_114 {dimension_numbers = #tpu.dot_dimension_numbers<[1], [0], [0], [1], [0, 0, 1, 1], [], []>} : vector<40x16xf32>, vector<16x12xf32>, vector<40x12xf32> -> vector<40x12xf32>
    %183 = vector.broadcast %106 : vector<1x12xf32> to vector<40x12xf32>
    %184 = arith.addf %182, %183 : vector<40x12xf32>
    %cst_115 = arith.constant 2.500000e-01 : f32
    %185 = vector.broadcast %cst_115 : f32 to vector<40x12xf32>
    %186 = arith.mulf %185, %184 : vector<40x12xf32>
    %187 = arith.addf %160, %186 : vector<40x12xf32>
    %cst_116 = arith.constant dense<0.000000e+00> : vector<40x16xf32>
    %188 = tpu.matmul %187, %100, %cst_116 {dimension_numbers = #tpu.dot_dimension_numbers<[1], [0], [0], [1], [0, 0, 1, 1], [], []>} : vector<40x12xf32>, vector<12x16xf32>, vector<40x16xf32> -> vector<40x16xf32>
    %cst_117 = arith.constant dense<0.000000e+00> : vector<40x12xf32>
    %189 = tpu.matmul %97, %187, %cst_117 {dimension_numbers = #tpu.dot_dimension_numbers<[1], [0], [0], [1], [0, 0, 1, 1], [], []>} : vector<40x40xf32>, vector<40x12xf32>, vector<40x12xf32> -> vector<40x12xf32>
    %cst_118 = arith.constant dense<0.000000e+00> : vector<40x16xf32>
    %190 = tpu.matmul %189, %101, %cst_118 {dimension_numbers = #tpu.dot_dimension_numbers<[1], [0], [0], [1], [0, 0, 1, 1], [], []>} : vector<40x12xf32>, vector<12x16xf32>, vector<40x16xf32> -> vector<40x16xf32>
    %191 = arith.addf %188, %190 : vector<40x16xf32>
    %cst_119 = arith.constant dense<0.000000e+00> : vector<40x12xf32>
    %192 = tpu.matmul %98, %187, %cst_119 {dimension_numbers = #tpu.dot_dimension_numbers<[1], [0], [0], [1], [0, 0, 1, 1], [], []>} : vector<40x40xf32>, vector<40x12xf32>, vector<40x12xf32> -> vector<40x12xf32>
    %cst_120 = arith.constant dense<0.000000e+00> : vector<40x16xf32>
    %193 = tpu.matmul %192, %102, %cst_120 {dimension_numbers = #tpu.dot_dimension_numbers<[1], [0], [0], [1], [0, 0, 1, 1], [], []>} : vector<40x12xf32>, vector<12x16xf32>, vector<40x16xf32> -> vector<40x16xf32>
    %194 = arith.addf %191, %193 : vector<40x16xf32>
    %cst_121 = arith.constant dense<0.000000e+00> : vector<40x12xf32>
    %195 = tpu.matmul %99, %187, %cst_121 {dimension_numbers = #tpu.dot_dimension_numbers<[1], [0], [0], [1], [0, 0, 1, 1], [], []>} : vector<40x40xf32>, vector<40x12xf32>, vector<40x12xf32> -> vector<40x12xf32>
    %cst_122 = arith.constant dense<0.000000e+00> : vector<40x16xf32>
    %196 = tpu.matmul %195, %103, %cst_122 {dimension_numbers = #tpu.dot_dimension_numbers<[1], [0], [0], [1], [0, 0, 1, 1], [], []>} : vector<40x12xf32>, vector<12x16xf32>, vector<40x16xf32> -> vector<40x16xf32>
    %197 = arith.addf %194, %196 : vector<40x16xf32>
    %198 = vector.broadcast %104 : vector<1x16xf32> to vector<40x16xf32>
    %199 = arith.addf %197, %198 : vector<40x16xf32>
    %cst_123 = arith.constant 2.000000e+01 : f32
    %200 = vector.broadcast %cst_123 : f32 to vector<40x16xf32>
    %201 = arith.cmpf ogt, %199, %200 : vector<40x16xf32>
    %cst_124 = arith.constant 2.000000e+01 : f32
    %202 = vector.broadcast %cst_124 : f32 to vector<40x16xf32>
    %203 = arith.minimumf %199, %202 : vector<40x16xf32>
    %204 = math.exp %203 : vector<40x16xf32>
    %cst_125 = arith.constant 1.000000e+00 : f32
    %205 = vector.broadcast %cst_125 : f32 to vector<40x16xf32>
    %206 = arith.addf %205, %204 : vector<40x16xf32>
    %207 = math.log %206 : vector<40x16xf32>
    %208 = arith.select %201, %199, %207 : vector<40x16xi1>, vector<40x16xf32>
    %cst_126 = arith.constant dense<0.000000e+00> : vector<40x12xf32>
    %209 = tpu.matmul %208, %105, %cst_126 {dimension_numbers = #tpu.dot_dimension_numbers<[1], [0], [0], [1], [0, 0, 1, 1], [], []>} : vector<40x16xf32>, vector<16x12xf32>, vector<40x12xf32> -> vector<40x12xf32>
    %210 = vector.broadcast %106 : vector<1x12xf32> to vector<40x12xf32>
    %211 = arith.addf %209, %210 : vector<40x12xf32>
    %cst_127 = arith.constant 2.500000e-01 : f32
    %212 = vector.broadcast %cst_127 : f32 to vector<40x12xf32>
    %213 = arith.mulf %212, %211 : vector<40x12xf32>
    %214 = arith.addf %187, %213 : vector<40x12xf32>
    %c0_128 = arith.constant 0 : index
    %c0_129 = arith.constant 0 : index
    %215 = vector.load %arg28[%c0_128, %c0_129] : memref<12x64xf32, #tpu.memory_space<vmem>>, vector<12x64xf32>
    %cst_130 = arith.constant dense<0.000000e+00> : vector<40x64xf32>
    %216 = tpu.matmul %214, %215, %cst_130 {dimension_numbers = #tpu.dot_dimension_numbers<[1], [0], [0], [1], [0, 0, 1, 1], [], []>} : vector<40x12xf32>, vector<12x64xf32>, vector<40x64xf32> -> vector<40x64xf32>
    %c0_131 = arith.constant 0 : index
    %c0_132 = arith.constant 0 : index
    %217 = vector.load %arg29[%c0_131, %c0_132] : memref<1x64xf32, #tpu.memory_space<vmem>>, vector<1x64xf32>
    %218 = vector.broadcast %217 : vector<1x64xf32> to vector<40x64xf32>
    %219 = arith.addf %216, %218 : vector<40x64xf32>
    %cst_133 = arith.constant 2.000000e+01 : f32
    %220 = vector.broadcast %cst_133 : f32 to vector<40x64xf32>
    %221 = arith.cmpf ogt, %219, %220 : vector<40x64xf32>
    %cst_134 = arith.constant 2.000000e+01 : f32
    %222 = vector.broadcast %cst_134 : f32 to vector<40x64xf32>
    %223 = arith.minimumf %219, %222 : vector<40x64xf32>
    %224 = math.exp %223 : vector<40x64xf32>
    %cst_135 = arith.constant 1.000000e+00 : f32
    %225 = vector.broadcast %cst_135 : f32 to vector<40x64xf32>
    %226 = arith.addf %225, %224 : vector<40x64xf32>
    %227 = math.log %226 : vector<40x64xf32>
    %228 = arith.select %221, %219, %227 : vector<40x64xi1>, vector<40x64xf32>
    %c0_136 = arith.constant 0 : index
    %c0_137 = arith.constant 0 : index
    %229 = vector.load %arg30[%c0_136, %c0_137] : memref<64x64xf32, #tpu.memory_space<vmem>>, vector<64x64xf32>
    %cst_138 = arith.constant dense<0.000000e+00> : vector<40x64xf32>
    %230 = tpu.matmul %228, %229, %cst_138 {dimension_numbers = #tpu.dot_dimension_numbers<[1], [0], [0], [1], [0, 0, 1, 1], [], []>} : vector<40x64xf32>, vector<64x64xf32>, vector<40x64xf32> -> vector<40x64xf32>
    %c0_139 = arith.constant 0 : index
    %c0_140 = arith.constant 0 : index
    %231 = vector.load %arg31[%c0_139, %c0_140] : memref<1x64xf32, #tpu.memory_space<vmem>>, vector<1x64xf32>
    %232 = vector.broadcast %231 : vector<1x64xf32> to vector<40x64xf32>
    %233 = arith.addf %230, %232 : vector<40x64xf32>
    %cst_141 = arith.constant 2.000000e+01 : f32
    %234 = vector.broadcast %cst_141 : f32 to vector<40x64xf32>
    %235 = arith.cmpf ogt, %233, %234 : vector<40x64xf32>
    %cst_142 = arith.constant 2.000000e+01 : f32
    %236 = vector.broadcast %cst_142 : f32 to vector<40x64xf32>
    %237 = arith.minimumf %233, %236 : vector<40x64xf32>
    %238 = math.exp %237 : vector<40x64xf32>
    %cst_143 = arith.constant 1.000000e+00 : f32
    %239 = vector.broadcast %cst_143 : f32 to vector<40x64xf32>
    %240 = arith.addf %239, %238 : vector<40x64xf32>
    %241 = math.log %240 : vector<40x64xf32>
    %242 = arith.select %235, %233, %241 : vector<40x64xi1>, vector<40x64xf32>
    %c0_144 = arith.constant 0 : index
    %c0_145 = arith.constant 0 : index
    %243 = vector.load %arg32[%c0_144, %c0_145] : memref<64x64xf32, #tpu.memory_space<vmem>>, vector<64x64xf32>
    %cst_146 = arith.constant dense<0.000000e+00> : vector<40x64xf32>
    %244 = tpu.matmul %242, %243, %cst_146 {dimension_numbers = #tpu.dot_dimension_numbers<[1], [0], [0], [1], [0, 0, 1, 1], [], []>} : vector<40x64xf32>, vector<64x64xf32>, vector<40x64xf32> -> vector<40x64xf32>
    %c0_147 = arith.constant 0 : index
    %c0_148 = arith.constant 0 : index
    %245 = vector.load %arg33[%c0_147, %c0_148] : memref<1x64xf32, #tpu.memory_space<vmem>>, vector<1x64xf32>
    %246 = vector.broadcast %245 : vector<1x64xf32> to vector<40x64xf32>
    %247 = arith.addf %244, %246 : vector<40x64xf32>
    %cst_149 = arith.constant 2.000000e+01 : f32
    %248 = vector.broadcast %cst_149 : f32 to vector<40x64xf32>
    %249 = arith.cmpf ogt, %247, %248 : vector<40x64xf32>
    %cst_150 = arith.constant 2.000000e+01 : f32
    %250 = vector.broadcast %cst_150 : f32 to vector<40x64xf32>
    %251 = arith.minimumf %247, %250 : vector<40x64xf32>
    %252 = math.exp %251 : vector<40x64xf32>
    %cst_151 = arith.constant 1.000000e+00 : f32
    %253 = vector.broadcast %cst_151 : f32 to vector<40x64xf32>
    %254 = arith.addf %253, %252 : vector<40x64xf32>
    %255 = math.log %254 : vector<40x64xf32>
    %256 = arith.select %249, %247, %255 : vector<40x64xi1>, vector<40x64xf32>
    %c0_152 = arith.constant 0 : index
    %c0_153 = arith.constant 0 : index
    %257 = vector.load %arg34[%c0_152, %c0_153] : memref<64x8xf32, #tpu.memory_space<vmem>>, vector<64x8xf32>
    %cst_154 = arith.constant dense<0.000000e+00> : vector<40x8xf32>
    %258 = tpu.matmul %256, %257, %cst_154 {dimension_numbers = #tpu.dot_dimension_numbers<[1], [0], [0], [1], [0, 0, 1, 1], [], []>} : vector<40x64xf32>, vector<64x8xf32>, vector<40x8xf32> -> vector<40x8xf32>
    %c0_155 = arith.constant 0 : index
    %c0_156 = arith.constant 0 : index
    %259 = vector.load %arg35[%c0_155, %c0_156] : memref<1x8xf32, #tpu.memory_space<vmem>>, vector<1x8xf32>
    %260 = vector.broadcast %259 : vector<1x8xf32> to vector<40x8xf32>
    %261 = arith.addf %258, %260 : vector<40x8xf32>
    %c0_157 = arith.constant 0 : index
    %c0_158 = arith.constant 0 : index
    %262 = vector.load %arg36[%c0_157, %c0_158] : memref<40x8xf32, #tpu.memory_space<vmem>>, vector<40x8xf32>
    tpu.vector_store %arg36[%c0_157, %c0_158], %261 {strides = array<i32>} : memref<40x8xf32, #tpu.memory_space<vmem>>, vector<40x8xf32>,
    return
  }
}

</mosaic_0001>

<bundles_post_ra>
// kernel: forward.1
= control target key start
LH: loop header
LB: loop body
LE: loop exit
PB: predicated region body
PF: predicated region fallthrough
CT: control target
= control target key end

     0   :  { %v7548_v0 = vmov 0.0   ;;  %s7549_s3 = smov 5   ;;  %vm7550_vm0 = vmmov 0   ;;  %vm180_vm1 = vcmask 1043456   ;;  %vm164_vm2 = vcmask 97280   ;;  %s7551_s10 = smov 7   ;;  %s9199_s0 = inlined_call_operand.smem [shape: u32[37], index: -1, kind: input, shape index: {}] }
   0x1   :  { %6193 = vmatprep.subr.mxu0 %v7548_v0  ;;  %s5511_s6 = sld [smem:[%s9199_s0 + %s7549_s3]]   ;;  %6197 = vmatprep.mubr.msk.f32.mxu0 %vm7550_vm0, %v7548_v0  ;;  %s7552_s14 = smov 6   ;;  %vm329_vm3 = vcmask 523264  }
   0x2   :  { %s1_s9 = sld [smem:[%s9199_s0]]   ;;  %6212 = vmatprep.subr.mxu1 %v7548_v0  ;;  %6228 = vmatprep.mubr.msk.f32.mxu1 %vm7550_vm0, %v7548_v0  ;;  %s7553_s18 = smov 9  }
   0x3   :  { %s5513_s13 = sld [smem:[%s9199_s0 + %s7551_s10]]   ;;  %s7554_s22 = smov 8  }
   0x4   :  { %s5512_s17 = sld [smem:[%s9199_s0 + %s7552_s14]]   ;;  %s7555_s26 = smov 11  }
   0x5   :  { %s5515_s21 = sld [smem:[%s9199_s0 + %s7553_s18]]   ;;  %s7556_s30 = smov 10  }
   0x6   :  { %s5514_s25 = sld [smem:[%s9199_s0 + %s7554_s22]]   ;;  %s7557_s4 = smov 13  }
   0x7   :  { %v156_v1 = vld [vmem:[%s5511_s6 + $0x8] sm:$0xf]  ;;  %v155_v2 = vld [vmem:[%s5511_s6] sm:$0xff]  ;;  %s7682_s29 = sld [smem:[%s9199_s0 + %s7555_s26]]   ;;  %s7558_s8 = smov 1  }
   0x8   :  { %6194 = vmatpush3.msk.msra.mxu0 %vm180_vm1, %v156_v1  ;;  %v150_v3 = vld [vmem:[%s1_s9] sm:$0xff]  ;;  %v151_v4 = vld [vmem:[%s1_s9 + $0x8] sm:$0xff]  ;;  %v152_v5 = vld [vmem:[%s1_s9 + $0x10] sm:$0xff]  ;;  %s5516_s3 = sld [smem:[%s9199_s0 + %s7556_s30]]   ;;  %s7559_s12 = smov 15  }
   0x9   :  { %6195 = vmatprep.subr.mxu0 %v7548_v0  ;;  %v153_v6 = vld [vmem:[%s1_s9 + $0x18] sm:$0xff]  ;;  %v154_v7 = vld [vmem:[%s1_s9 + $0x20] sm:$0xff]  ;;  %v320_v9 = vld [vmem:[%s5513_s13 + $0x30] sm:$0xff]  ;;  %s5519_s7 = sld [smem:[%s9199_s0 + %s7557_s4]]   ;;  %s7560_s16 = smov 14  }
   0xa   :  { %6196 = vmatpush3.msra.mxu0 %v155_v2  ;;  %v321_v8 = vld [vmem:[%s5513_s13 + $0x38] sm:$0xff]  ;;  %v319_v10 = vld [vmem:[%s5513_s13 + $0x28] sm:$0xff]  ;;  %v318_v11 = vld [vmem:[%s5513_s13 + $0x20] sm:$0xff]  ;;  %s7723_s11 = sld [smem:[%s9199_s0 + %s7558_s8]]   ;;  %s7561_s20 = smov 17  }
   0xb   :  { %6198 = vmatmul.mubr.msk.f32.vlgmr.msra.gmra.mxu0 %vm164_vm2, %v150_v3  ;;  %6243 = vmatprep.subr.mxu0 %v7548_v0  ;;  %v317_v12 = vld [vmem:[%s5513_s13 + $0x18] sm:$0xff]  ;;  %v316_v13 = vld [vmem:[%s5513_s13 + $0x10] sm:$0xff]  ;;  %v315_v14 = vld [vmem:[%s5513_s13 + $0x8] sm:$0xff]  ;;  %s5521_s15 = sld [smem:[%s9199_s0 + %s7559_s12]]   ;;  %s7562_s24 = smov 16  }
   0xc   :  { %6200 = vmatprep.mubr.msk.f32.mxu0 %vm7550_vm0, %v7548_v0  ;;  %6213 = vmatpush3.msra.mxu1 %v321_v8  ;;  %v314_v15 = vld [vmem:[%s5513_s13] sm:$0xff]  ;;  %v478_v8 = vld [vmem:[%s5515_s21 + $0x18] sm:$0xff]  ;;  %s5520_s19 = sld [smem:[%s9199_s0 + %s7560_s16]]   ;;  %s7563_s28 = smov 19  }
   0xd   :  { %6214 = vmatprep.subr.mxu1 %v7548_v0  ;;  %v5543_v16 = vld [vmem:[%s5512_s17] ss:$0 sm:$0xff]  ;;  %s5523_s23 = sld [smem:[%s9199_s0 + %s7561_s20]]   ;;  %s7564_s2 = smov 18  }
   0xe   :  { %6215 = vmatpush3.msra.mxu1 %v320_v9  ;;  %v477_v9 = vld [vmem:[%s5515_s21 + $0x10] sm:$0xff]  ;;  %s5522_s27 = sld [smem:[%s9199_s0 + %s7562_s24]]   ;;  %s7565_s6 = smov 22  }
   0xf   :  { %6201 = vmatmul.mubr.msk.f32.gmra.mxu0 %vm164_vm2, %v151_v4  ;;  %6216 = vmatprep.subr.mxu1 %v7548_v0  ;;  %v482_v4 = vld [vmem:[%s5515_s21 + $0x38] sm:$0xff]  ;;  %s5525_s1 = sld [smem:[%s9199_s0 + %s7563_s28]]   ;;  %s7566_s10 = smov 12  }
  0x10   :  { %6203 = vmatprep.mubr.msk.f32.mxu0 %vm7550_vm0, %v7548_v0  ;;  %6217 = vmatpush3.msra.mxu1 %v319_v10  ;;  %v476_v10 = vld [vmem:[%s5515_s21 + $0x8] sm:$0xff]  ;;  %s5524_s5 = sld [smem:[%s9199_s0 + %s7564_s2]]   ;;  %s7567_s14 = smov 20  }
  0x11   :  { %6218 = vmatprep.subr.mxu1 %v7548_v0  ;;  %6244 = vmatpush3.msra.mxu0 %v482_v4  ;;  %v638_v4 = vld [vmem:[%s7682_s29 + $0x18] sm:$0xff]  ;;  %s7866_s9 = sld [smem:[%s9199_s0 + %s7565_s6]]   ;;  %s7568_s18 = smov 2  }
  0x12   :  { %6219 = vmatpush3.msra.mxu1 %v318_v11  ;;  %6245 = vmatprep.subr.mxu0 %v7548_v0  ;;  %v475_v11 = vld [vmem:[%s5515_s21] sm:$0xff]  ;;  %s5518_s13 = sld [smem:[%s9199_s0 + %s7566_s10]]   ;;  %s7569_s22 = smov 21  }
  0x13   :  { %6204 = vmatmul.mubr.msk.f32.gmra.mxu0 %vm164_vm2, %v152_v5  ;;  %6220 = vmatprep.subr.mxu1 %v7548_v0  ;;  %v481_v5 = vld [vmem:[%s5515_s21 + $0x30] sm:$0xff]  ;;  %s5526_s17 = sld [smem:[%s9199_s0 + %s7567_s14]]   ;;  %s7570_s26 = smov 3  }
  0x14   :  { %6206 = vmatprep.mubr.msk.f32.mxu0 %vm7550_vm0, %v7548_v0  ;;  %6221 = vmatpush3.msra.mxu1 %v317_v12  ;;  %v5550_v12 = vld [vmem:[%s5514_s25] ss:$0 sm:$0xff]  ;;  %s7897_s25 = sld [smem:[%s9199_s0 + %s7569_s22]]   ;;  %s7571_s30 = smov 4  }
  0x15   :  { %6222 = vmatprep.subr.mxu1 %v7548_v0  ;;  %6246 = vmatpush3.msra.mxu0 %v481_v5  ;;  %v637_v5 = vld [vmem:[%s7682_s29 + $0x10] sm:$0xff]  ;;  %s7572_s4 = smov 23   ;;  %s7573_s8 = smov 24  }
  0x16   :  { %6223 = vmatpush3.msra.mxu1 %v316_v13  ;;  %6247 = vmatprep.subr.mxu0 %v7548_v0  ;;  %s8136_s12 = sld [smem:[%s9199_s0 + %s7573_s8]]   ;;  %s7576_s22 = smov 27  }
  0x17   :  { %6207 = vmatmul.mubr.msk.f32.gmra.mxu0 %vm164_vm2, %v153_v6  ;;  %6224 = vmatprep.subr.mxu1 %v7548_v0  ;;  %v480_v6 = vld [vmem:[%s5515_s21 + $0x28] sm:$0xff]  ;;  %s7578_s28 = smov 30   ;;  %s7579_s2 = smov 29  }
  0x18   :  { %6209 = vmatprep.mubr.msk.f32.mxu0 %vm7550_vm0, %v7548_v0  ;;  %6225 = vmatpush3.msra.mxu1 %v315_v14  ;;  %s7580_s6 = smov 32   ;;  %s7584_s24 = smov 35  }
  0x19   :  { %6226 = vmatprep.subr.mxu1 %v7548_v0  ;;  %6248 = vmatpush3.msra.mxu0 %v480_v6  ;;  %v636_v6 = vld [vmem:[%s7682_s29 + $0x8] sm:$0xff]  ;;  %s5538_s10 = sld [smem:[%s9199_s0 + %s7580_s6]]  }
  0x1a   :  { %6227 = vmatpush3.msra.mxu1 %v314_v15  ;;  %6249 = vmatprep.subr.mxu0 %v7548_v0 }
  0x1b   :  { %6210 = vmatmul.mubr.msk.f32.gmra.mxu0 %vm164_vm2, %v154_v7  ;;  %7207 = vmatprep.subr.mxu1 %v7548_v0  ;;  %v479_v7 = vld [vmem:[%s5515_s21 + $0x20] sm:$0xff]  ;;  %s7892_s21 = sld [smem:[%s9199_s0 + %s7568_s18]]  }
  0x1c   :  { %6259 = vmatprep.mubr.msk.f32.mxu0 %vm7550_vm0, %v7548_v0  ;;  %6250 = vmatpush3.msra.mxu0 %v479_v7  ;;  %v635_v7 = vld [vmem:[%s7682_s29] sm:$0xff] }
  0x1d   :  { %6251 = vmatprep.subr.mxu0 %v7548_v0 }
  0x1e   :  { %6252 = vmatpush3.msra.mxu0 %v478_v8  ;;  %v5556_v8 = vld [vmem:[%s5516_s3] ss:$0 sm:$0xff]  ;;  %s8058_s3 = sld [smem:[%s9199_s0 + %s7571_s30]]  }
  0x1f   :  { %6253 = vmatprep.subr.mxu0 %v7548_v0 }
  0x20   :  { %6254 = vmatpush3.msra.mxu0 %v477_v9 }
  0x21   :  { %6255 = vmatprep.subr.mxu0 %v7548_v0 }
  0x22   :  { %6256 = vmatpush3.msra.mxu0 %v476_v10 }
  0x23   :  { %6257 = vmatprep.subr.mxu0 %v7548_v0 }
  0x24   :  { %6258 = vmatpush3.msra.mxu0 %v475_v11 }
  0x25   :  { %6274 = vmatprep.subr.mxu0 %v7548_v0 }
  0xcb   :  { %v250_v17 = vpop.f32.mrf.mxu0 }
  0xcc   :  { %v251_v18 = vadd.f32 %v5543_v16, %v250_v17 }
  0xcd   :  { %v6199_v19 = vpop.f32.mrf.mxu0 }
  0xce   :  { %v279_v20 = vmin.f32 %v251_v18, 20.0  ;;  %vm274_vm4 = vcmp.gt.f32.partialorder %v251_v18, 20.0 }
  0xcf   :  { %v255_v21 = vpop.f32.mrf.mxu0 }
  0xd0   :  { %v284_v22 = vmul.f32 1.442695, %v279_v20  ;;  %v256_v23 = vadd.f32 %v5543_v16, %v255_v21 }
  0xd1   :  { %v6202_v24 = vpop.f32.mrf.mxu0 }
  0xd2   :  { %7261 = vpow2.f32 %v284_v22  ;;  %v280_v25 = vmin.f32 %v256_v23, 20.0  ;;  %vm275_vm5 = vcmp.gt.f32.partialorder %v256_v23, 20.0 }
  0xd3   :  { %v260_v26 = vpop.f32.mrf.mxu0 }
  0xd4   :  { %v286_v27 = vmul.f32 1.442695, %v280_v25  ;;  %v261_v28 = vadd.f32 %v5543_v16, %v260_v26 }
  0xd5   :  { %v6205_v29 = vpop.f32.mrf.mxu0 }
  0xd6   :  { %7263 = vpow2.f32 %v286_v27  ;;  %v281_v30 = vmin.f32 %v261_v28, 20.0  ;;  %vm276_vm6 = vcmp.gt.f32.partialorder %v261_v28, 20.0 }
  0xd7   :  { %v265_v31 = vpop.f32.mrf.mxu0 }
  0xd8   :  { %v288_v32 = vmul.f32 1.442695, %v281_v30  ;;  %v266_v33 = vadd.f32 %v5543_v16, %v265_v31 }
  0xd9   :  { %v6208_v34 = vpop.f32.mrf.mxu0 }
  0xda   :  { %7265 = vpow2.f32 %v288_v32  ;;  %v282_v35 = vmin.f32 %v266_v33, 20.0  ;;  %vm277_vm7 = vcmp.gt.f32.partialorder %v266_v33, 20.0 }
  0xdb   :  { %v270_v36 = vpop.f32.mrf.mxu0 }
  0xdc   :  { %v290_v37 = vmul.f32 1.442695, %v282_v35  ;;  %v271_v38 = vadd.f32 %v5543_v16, %v270_v36 }
  0xdd   :  { %v6211_v39 = vpop.f32.mrf.mxu0 }
  0xde   :  { %7267 = vpow2.f32 %v290_v37  ;;  %v283_v40 = vmin.f32 %v271_v38, 20.0  ;;  %vm278_vm8 = vcmp.gt.f32.partialorder %v271_v38, 20.0 }
  0xdf   :  { %v7262_v41 = vpop.eup %7261 }
  0xe0   :  { %v294_v42 = vadd.f32 1.0, %v7262_v41  ;;  %v292_v43 = vmul.f32 1.442695, %v283_v40 }
  0xe2   :  { %7269 = vlog2.f32 %v294_v42 }
  0xe3   :  { %v7264_v44 = vpop.eup %7263  ;;  %7271 = vpow2.f32 %v292_v43 }
  0xe4   :  { %v295_v45 = vadd.f32 1.0, %v7264_v44 }
  0xe6   :  { %7273 = vlog2.f32 %v295_v45 }
  0xe7   :  { %v7266_v46 = vpop.eup %7265 }
  0xe8   :  { %v296_v47 = vadd.f32 1.0, %v7266_v46 }
  0xea   :  { %7275 = vlog2.f32 %v296_v47 }
  0xeb   :  { %v7268_v48 = vpop.eup %7267 }
  0xec   :  { %v297_v49 = vadd.f32 1.0, %v7268_v48 }
  0xee   :  { %7277 = vlog2.f32 %v297_v49 }
  0xef   :  { %v7270_v50 = vpop.eup %7269 }
  0xf0   :  { %v7272_v51 = vpop.eup %7271  ;;  %v300_v52 = vmul.f32 0.6931472, %v7270_v50 }
  0xf1   :  { %v298_v53 = vadd.f32 1.0, %v7272_v51 }
  0xf2   :  { %v309_v54 = vsel %vm274_vm4, %v251_v18, %v300_v52  ;;  %vm768_vm4 = vcmask 31744  }
  0xf3   :  { %v7274_v55 = vpop.eup %7273  ;;  %6229 = vmatmul.mubr.msk.f32.vlgmr.msra.gmra.mxu1 %vm329_vm3, %v309_v54  ;;  %7279 = vlog2.f32 %v298_v53 }
  0xf4   :  { %6231 = vmatprep.mubr.msk.f32.mxu1 %vm7550_vm0, %v7548_v0  ;;  %v302_v56 = vmul.f32 0.6931472, %v7274_v55 }
  0xf6   :  { %v310_v57 = vsel %vm275_vm5, %v256_v23, %v302_v56 }
  0xf7   :  { %v7276_v58 = vpop.eup %7275  ;;  %6232 = vmatmul.mubr.msk.f32.gmra.mxu1 %vm329_vm3, %v310_v57 }
  0xf8   :  { %6234 = vmatprep.mubr.msk.f32.mxu1 %vm7550_vm0, %v7548_v0  ;;  %v304_v59 = vmul.f32 0.6931472, %v7276_v58 }
  0xfa   :  { %v311_v60 = vsel %vm276_vm6, %v261_v28, %v304_v59 }
  0xfb   :  { %v7278_v61 = vpop.eup %7277  ;;  %6235 = vmatmul.mubr.msk.f32.gmra.mxu1 %vm329_vm3, %v311_v60 }
  0xfc   :  { %6237 = vmatprep.mubr.msk.f32.mxu1 %vm7550_vm0, %v7548_v0  ;;  %v306_v62 = vmul.f32 0.6931472, %v7278_v61 }
  0xfe   :  { %v312_v63 = vsel %vm277_vm7, %v266_v33, %v306_v62 }
  0xff   :  { %6238 = vmatmul.mubr.msk.f32.gmra.mxu1 %vm329_vm3, %v312_v63  ;;  %v642_v63 = vld [vmem:[%s7682_s29 + $0x38] sm:$0xff] }
 0x100   :  { %v7280_v1 = vpop.eup %7279  ;;  %6240 = vmatprep.mubr.msk.f32.mxu1 %vm7550_vm0, %v7548_v0  ;;  %7215 = vmatpush3.msra.mxu1 %v642_v63 }
 0x101   :  { %v308_v2 = vmul.f32 0.6931472, %v7280_v1  ;;  %v641_v1 = vld [vmem:[%s7682_s29 + $0x30] sm:$0xff]  ;;  %7208 = vmatprep.subr.mxu1 %v7548_v0 }
 0x102   :  { %7216 = vmatpush3.msra.mxu1 %v641_v1 }
 0x103   :  { %v313_v3 = vsel %vm278_vm8, %v271_v38, %v308_v2  ;;  %v640_v2 = vld [vmem:[%s7682_s29 + $0x28] sm:$0xff]  ;;  %7209 = vmatprep.subr.mxu1 %v7548_v0 }
 0x104   :  { %6241 = vmatmul.mubr.msk.f32.gmra.mxu1 %vm329_vm3, %v313_v3  ;;  %v639_v3 = vld [vmem:[%s7682_s29 + $0x20] sm:$0xff]  ;;  %s8007_s29 = sld [smem:[%s9199_s0 + %s7570_s26]]  }
 0x105   :  { %6293 = vmatprep.mubr.msk.f32.mxu1 %vm7550_vm0, %v7548_v0  ;;  %7217 = vmatpush3.msra.mxu1 %v640_v2  ;;  %s8244_s26 = sld [smem:[%s9199_s0 + %s7576_s22]]  }
 0x106   :  { %7210 = vmatprep.subr.mxu1 %v7548_v0 }
 0x107   :  { %7218 = vmatpush3.msra.mxu1 %v639_v3 }
 0x108   :  { %7211 = vmatprep.subr.mxu1 %v7548_v0 }
 0x109   :  { %7219 = vmatpush3.msra.mxu1 %v638_v4 }
 0x10a   :  { %7212 = vmatprep.subr.mxu1 %v7548_v0 }
 0x10b   :  { %7220 = vmatpush3.msra.mxu1 %v637_v5 }
 0x10c   :  { %7213 = vmatprep.subr.mxu1 %v7548_v0 }
 0x10d   :  { %7221 = vmatpush3.msra.mxu1 %v636_v6 }
 0x10e   :  { %7214 = vmatprep.subr.mxu1 %v7548_v0 }
 0x10f   :  { %7222 = vmatpush3.msra.mxu1 %v635_v7 }
 0x110   :  { %6322 = vmatprep.subr.mxu1 %v7548_v0 }
 0x1b3   :  { %v411_v13 = vpop.f32.mrf.mxu1 }
 0x1b4   :  { %v412_v14 = vadd.f32 %v5550_v12, %v411_v13 }
 0x1b5   :  { %v6230_v15 = vpop.f32.mrf.mxu1 }
 0x1b6   :  { %v440_v16 = vmin.f32 %v412_v14, 20.0  ;;  %vm435_vm9 = vcmp.gt.f32.partialorder %v412_v14, 20.0 }
 0x1b7   :  { %v416_v17 = vpop.f32.mrf.mxu1 }
 0x1b8   :  { %v445_v18 = vmul.f32 1.442695, %v440_v16  ;;  %v417_v19 = vadd.f32 %v5550_v12, %v416_v17 }
 0x1b9   :  { %v6233_v20 = vpop.f32.mrf.mxu1 }
 0x1ba   :  { %7281 = vpow2.f32 %v445_v18  ;;  %v441_v21 = vmin.f32 %v417_v19, 20.0  ;;  %vm436_vm10 = vcmp.gt.f32.partialorder %v417_v19, 20.0 }
 0x1bb   :  { %v421_v22 = vpop.f32.mrf.mxu1 }
 0x1bc   :  { %v447_v23 = vmul.f32 1.442695, %v441_v21  ;;  %v422_v24 = vadd.f32 %v5550_v12, %v421_v22 }
 0x1bd   :  { %v6236_v25 = vpop.f32.mrf.mxu1 }
 0x1be   :  { %7283 = vpow2.f32 %v447_v23  ;;  %v442_v26 = vmin.f32 %v422_v24, 20.0  ;;  %vm437_vm11 = vcmp.gt.f32.partialorder %v422_v24, 20.0 }
 0x1bf   :  { %v426_v27 = vpop.f32.mrf.mxu1 }
 0x1c0   :  { %v449_v28 = vmul.f32 1.442695, %v442_v26  ;;  %v427_v29 = vadd.f32 %v5550_v12, %v426_v27 }
 0x1c1   :  { %v6239_v30 = vpop.f32.mrf.mxu1 }
 0x1c2   :  { %7285 = vpow2.f32 %v449_v28  ;;  %v443_v31 = vmin.f32 %v427_v29, 20.0  ;;  %vm438_vm12 = vcmp.gt.f32.partialorder %v427_v29, 20.0 }
 0x1c4   :  { %v451_v32 = vmul.f32 1.442695, %v443_v31  ;;  %v431_v33 = vpop.f32.mrf.mxu1 }
 0x1c5   :  { %v432_v34 = vadd.f32 %v5550_v12, %v431_v33 }
 0x1c6   :  { %7287 = vpow2.f32 %v451_v32  ;;  %v6242_v35 = vpop.f32.mrf.mxu1 }
 0x1c7   :  { %v7282_v36 = vpop.eup %7281  ;;  %v444_v37 = vmin.f32 %v432_v34, 20.0  ;;  %vm439_vm13 = vcmp.gt.f32.partialorder %v432_v34, 20.0 }
 0x1c8   :  { %v455_v38 = vadd.f32 1.0, %v7282_v36 }
 0x1c9   :  { %v453_v39 = vmul.f32 1.442695, %v444_v37 }
 0x1ca   :  { %7289 = vlog2.f32 %v455_v38 }
 0x1cb   :  { %v7284_v40 = vpop.eup %7283  ;;  %7291 = vpow2.f32 %v453_v39 }
 0x1cc   :  { %v456_v41 = vadd.f32 1.0, %v7284_v40 }
 0x1ce   :  { %7293 = vlog2.f32 %v456_v41 }
 0x1cf   :  { %v7286_v42 = vpop.eup %7285 }
 0x1d0   :  { %v457_v43 = vadd.f32 1.0, %v7286_v42 }
 0x1d2   :  { %7295 = vlog2.f32 %v457_v43 }
 0x1d3   :  { %v7288_v44 = vpop.eup %7287 }
 0x1d4   :  { %v458_v45 = vadd.f32 1.0, %v7288_v44 }
 0x1d6   :  { %7297 = vlog2.f32 %v458_v45  ;;  %v760_v45 = vld [vmem:[%s5519_s7] sm:$0xf]  ;;  %s8114_s7 = sld [smem:[%s9199_s0 + %s7572_s4]]  }
 0x1d7   :  { %v7290_v46 = vpop.eup %7289 }
 0x1d8   :  { %v7292_v47 = vpop.eup %7291  ;;  %v461_v48 = vmul.f32 0.6931472, %v7290_v46 }
 0x1d9   :  { %v459_v49 = vadd.f32 1.0, %v7292_v47 }
 0x1da   :  { %v470_v50 = vsel %vm435_vm9, %v412_v14, %v461_v48 }
 0x1db   :  { %v7294_v51 = vpop.eup %7293  ;;  %6260 = vmatmul.mubr.msk.f32.vlgmr.msra.gmra.mxu0 %vm329_vm3, %v470_v50  ;;  %7299 = vlog2.f32 %v459_v49  ;;  %v755_v49 = vld [vmem:[%s7723_s11] sm:$0xff] }
 0x1dc   :  { %6262 = vmatprep.mubr.msk.f32.mxu0 %vm7550_vm0, %v7548_v0  ;;  %v463_v52 = vmul.f32 0.6931472, %v7294_v51  ;;  %6275 = vmatpush3.msra.mxu0 %v642_v63 }
 0x1dd   :  { %6276 = vmatprep.subr.mxu0 %v7548_v0 }
 0x1de   :  { %v471_v53 = vsel %vm436_vm10, %v417_v19, %v463_v52  ;;  %6277 = vmatpush3.msra.mxu0 %v641_v1  ;;  %v759_v1 = vld [vmem:[%s7723_s11 + $0x20] sm:$0xff] }
 0x1df   :  { %v7296_v54 = vpop.eup %7295  ;;  %6263 = vmatmul.mubr.msk.f32.gmra.mxu0 %vm329_vm3, %v471_v53  ;;  %6278 = vmatprep.subr.mxu0 %v7548_v0  ;;  %v756_v53 = vld [vmem:[%s7723_s11 + $0x8] sm:$0xff] }
 0x1e0   :  { %6265 = vmatprep.mubr.msk.f32.mxu0 %vm7550_vm0, %v7548_v0  ;;  %v465_v55 = vmul.f32 0.6931472, %v7296_v54  ;;  %6279 = vmatpush3.msra.mxu0 %v640_v2  ;;  %v924_v2 = vld [vmem:[%s5521_s15 + $0x38] sm:$0xff] }
 0x1e1   :  { %6280 = vmatprep.subr.mxu0 %v7548_v0 }
 0x1e2   :  { %v472_v56 = vsel %vm437_vm11, %v422_v24, %v465_v55  ;;  %6281 = vmatpush3.msra.mxu0 %v639_v3  ;;  %v923_v3 = vld [vmem:[%s5521_s15 + $0x30] sm:$0xff] }
 0x1e3   :  { %v7298_v57 = vpop.eup %7297  ;;  %6266 = vmatmul.mubr.msk.f32.gmra.mxu0 %vm329_vm3, %v472_v56  ;;  %6282 = vmatprep.subr.mxu0 %v7548_v0 }
 0x1e4   :  { %6268 = vmatprep.mubr.msk.f32.mxu0 %vm7550_vm0, %v7548_v0  ;;  %v467_v58 = vmul.f32 0.6931472, %v7298_v57  ;;  %6283 = vmatpush3.msra.mxu0 %v638_v4  ;;  %v757_v57 = vld [vmem:[%s7723_s11 + $0x10] sm:$0xff]  ;;  %v922_v4 = vld [vmem:[%s5521_s15 + $0x28] sm:$0xff] }
 0x1e5   :  { %6284 = vmatprep.subr.mxu0 %v7548_v0 }
 0x1e6   :  { %v473_v59 = vsel %vm438_vm12, %v427_v29, %v467_v58  ;;  %6285 = vmatpush3.msra.mxu0 %v637_v5  ;;  %v921_v5 = vld [vmem:[%s5521_s15 + $0x20] sm:$0xff] }
 0x1e7   :  { %6269 = vmatmul.mubr.msk.f32.gmra.mxu0 %vm329_vm3, %v473_v59  ;;  %6286 = vmatprep.subr.mxu0 %v7548_v0 }
 0x1e8   :  { %v7300_v60 = vpop.eup %7299  ;;  %6271 = vmatprep.mubr.msk.f32.mxu0 %vm7550_vm0, %v7548_v0  ;;  %6287 = vmatpush3.msra.mxu0 %v636_v6  ;;  %v920_v6 = vld [vmem:[%s5521_s15 + $0x18] sm:$0xff] }
 0x1e9   :  { %v469_v61 = vmul.f32 0.6931472, %v7300_v60  ;;  %6288 = vmatprep.subr.mxu0 %v7548_v0 }
 0x1ea   :  { %6289 = vmatpush3.msra.mxu0 %v635_v7  ;;  %v919_v7 = vld [vmem:[%s5521_s15 + $0x10] sm:$0xff] }
 0x1eb   :  { %v474_v62 = vsel %vm439_vm13, %v432_v34, %v469_v61  ;;  %6305 = vmatprep.subr.mxu0 %v7548_v0  ;;  %v758_v61 = vld [vmem:[%s7723_s11 + $0x18] sm:$0xff]  ;;  %s7581_s11 = smov 31  }
 0x1ec   :  { %6272 = vmatmul.mubr.msk.f32.gmra.mxu0 %vm329_vm3, %v474_v62  ;;  %s5537_s14 = sld [smem:[%s9199_s0 + %s7581_s11]]  }
 0x1ed   :  { %6290 = vmatprep.mubr.msk.f32.mxu0 %vm7550_vm0, %v7548_v0 }
 0x29b   :  { %v571_v9 = vpop.f32.mrf.mxu0 }
 0x29c   :  { %v572_v10 = vadd.f32 %v5556_v8, %v571_v9  ;;  %v917_v9 = vld [vmem:[%s5521_s15] sm:$0xff] }
 0x29d   :  { %v6261_v11 = vpop.f32.mrf.mxu0 }
 0x29e   :  { %v600_v12 = vmin.f32 %v572_v10, 20.0  ;;  %vm595_vm14 = vcmp.gt.f32.partialorder %v572_v10, 20.0 }
 0x29f   :  { %v576_v13 = vpop.f32.mrf.mxu0 }
 0x2a0   :  { %v605_v14 = vmul.f32 1.442695, %v600_v12  ;;  %v577_v15 = vadd.f32 %v5556_v8, %v576_v13  ;;  %v5568_v12 = vld [vmem:[%s5520_s19] ss:$0 sm:$0xff]  ;;  %s7583_s19 = smov 33  }
 0x2a1   :  { %v6264_v16 = vpop.f32.mrf.mxu0 }
 0x2a2   :  { %7301 = vpow2.f32 %v605_v14  ;;  %v601_v17 = vmin.f32 %v577_v15, 20.0  ;;  %vm596_vm15 = vcmp.gt.f32.partialorder %v577_v15, 20.0 }
 0x2a3   :  { %v581_v18 = vpop.f32.mrf.mxu0 }
 0x2a4   :  { %v607_v19 = vmul.f32 1.442695, %v601_v17  ;;  %v582_v20 = vadd.f32 %v5556_v8, %v581_v18 }
 0x2a5   :  { %v6267_v21 = vpop.f32.mrf.mxu0 }
 0x2a6   :  { %7303 = vpow2.f32 %v607_v19  ;;  %v602_v22 = vmin.f32 %v582_v20, 20.0  ;;  %vm597_vm5 = vcmp.gt.f32.partialorder %v582_v20, 20.0 }
 0x2a7   :  { %v586_v23 = vpop.f32.mrf.mxu0 }
 0x2a8   :  { %v609_v24 = vmul.f32 1.442695, %v602_v22  ;;  %v7711_v25 = vadd.f32 %v5556_v8, %v586_v23 }
 0x2a9   :  { %v6270_v26 = vpop.f32.mrf.mxu0 }
 0x2aa   :  { %7305 = vpow2.f32 %v609_v24  ;;  %v603_v27 = vmin.f32 %v7711_v25, 20.0  ;;  %vm598_vm6 = vcmp.gt.f32.partialorder %v7711_v25, 20.0 }
 0x2ac   :  { %v611_v28 = vmul.f32 1.442695, %v603_v27  ;;  %v591_v29 = vpop.f32.mrf.mxu0 }
 0x2ad   :  { %v7714_v30 = vadd.f32 %v5556_v8, %v591_v29  ;;  %v918_v8 = vld [vmem:[%s5521_s15 + $0x8] sm:$0xff]  ;;  %s7582_s15 = smov 34  }
 0x2ae   :  { %7307 = vpow2.f32 %v611_v28  ;;  %v6273_v31 = vpop.f32.mrf.mxu0  ;;  %s5540_s18 = sld [smem:[%s9199_s0 + %s7582_s15]]  }
 0x2af   :  { %v7302_v32 = vpop.eup %7301  ;;  %v604_v33 = vmin.f32 %v7714_v30, 20.0  ;;  %vm599_vm7 = vcmp.gt.f32.partialorder %v7714_v30, 20.0 }
 0x2b0   :  { %v615_v34 = vadd.f32 1.0, %v7302_v32 }
 0x2b1   :  { %v613_v35 = vmul.f32 1.442695, %v604_v33 }
 0x2b2   :  { %7309 = vlog2.f32 %v615_v34 }
 0x2b3   :  { %v7304_v36 = vpop.eup %7303  ;;  %7311 = vpow2.f32 %v613_v35 }
 0x2b4   :  { %v616_v37 = vadd.f32 1.0, %v7304_v36 }
 0x2b6   :  { %7313 = vlog2.f32 %v616_v37 }
 0x2b7   :  { %v7306_v38 = vpop.eup %7305 }
 0x2b8   :  { %v617_v39 = vadd.f32 1.0, %v7306_v38 }
 0x2ba   :  { %7315 = vlog2.f32 %v617_v39 }
 0x2bb   :  { %v7308_v40 = vpop.eup %7307 }
 0x2bc   :  { %v618_v41 = vadd.f32 1.0, %v7308_v40 }
 0x2be   :  { %7317 = vlog2.f32 %v618_v41 }
 0x2bf   :  { %v7310_v42 = vpop.eup %7309 }
 0x2c0   :  { %v7312_v43 = vpop.eup %7311  ;;  %v621_v44 = vmul.f32 0.6931472, %v7310_v42 }
 0x2c1   :  { %v619_v46 = vadd.f32 1.0, %v7312_v43 }
 0x2c2   :  { %v630_v47 = vsel %vm595_vm14, %v572_v10, %v621_v44 }
 0x2c3   :  { %v7314_v48 = vpop.eup %7313  ;;  %6291 = vmatmul.mubr.msk.f32.vlgmr.msra.gmra.mxu0 %vm329_vm3, %v630_v47  ;;  %7319 = vlog2.f32 %v619_v46 }
 0x2c4   :  { %6306 = vmatpush3.msk.msra.mxu0 %vm180_vm1, %v760_v45  ;;  %6307 = vmatprep.mubr.msk.f32.mxu0 %vm7550_vm0, %v7548_v0  ;;  %v623_v50 = vmul.f32 0.6931472, %v7314_v48 }
 0x2c5   :  { %6353 = vmatprep.subr.mxu0 %v7548_v0 }
 0x2c6   :  { %v631_v51 = vsel %vm596_vm15, %v577_v15, %v623_v50 }
 0x2c7   :  { %v7316_v52 = vpop.eup %7315  ;;  %6308 = vmatmul.mubr.msk.f32.vlgmr.msra.gmra.mxu0 %vm768_vm4, %v755_v49  ;;  %6294 = vmatmul.mubr.msk.f32.vlgmr.msra.gmra.mxu1 %vm329_vm3, %v631_v51 }
 0x2c8   :  { %6310 = vmatprep.mubr.msk.f32.mxu0 %vm7550_vm0, %v7548_v0  ;;  %6296 = vmatprep.mubr.msk.f32.mxu1 %vm7550_vm0, %v7548_v0  ;;  %v625_v54 = vmul.f32 0.6931472, %v7316_v52 }
 0x2c9   :  { %6323 = vmatpush3.msra.mxu1 %v924_v2 }
 0x2ca   :  { %v632_v55 = vsel %vm597_vm5, %v582_v20, %v625_v54  ;;  %6324 = vmatprep.subr.mxu1 %v7548_v0 }
 0x2cb   :  { %v7318_v56 = vpop.eup %7317  ;;  %6311 = vmatmul.mubr.msk.f32.gmra.mxu0 %vm768_vm4, %v756_v53  ;;  %6297 = vmatmul.mubr.msk.f32.gmra.mxu1 %vm329_vm3, %v632_v55 }
 0x2cc   :  { %6313 = vmatprep.mubr.msk.f32.mxu0 %vm7550_vm0, %v7548_v0  ;;  %6299 = vmatprep.mubr.msk.f32.mxu1 %vm7550_vm0, %v7548_v0  ;;  %v627_v58 = vmul.f32 0.6931472, %v7318_v56 }
 0x2cd   :  { %6325 = vmatpush3.msra.mxu1 %v923_v3 }
 0x2ce   :  { %v633_v59 = vsel %vm598_vm6, %v7711_v25, %v627_v58  ;;  %6326 = vmatprep.subr.mxu1 %v7548_v0 }
 0x2cf   :  { %6314 = vmatmul.mubr.msk.f32.gmra.mxu0 %vm768_vm4, %v757_v57  ;;  %6300 = vmatmul.mubr.msk.f32.gmra.mxu1 %vm329_vm3, %v633_v59 }
 0x2d0   :  { %v7320_v60 = vpop.eup %7319  ;;  %6316 = vmatprep.mubr.msk.f32.mxu0 %vm7550_vm0, %v7548_v0  ;;  %6302 = vmatprep.mubr.msk.f32.mxu1 %vm7550_vm0, %v7548_v0 }
 0x2d1   :  { %v629_v62 = vmul.f32 0.6931472, %v7320_v60  ;;  %6327 = vmatpush3.msra.mxu1 %v922_v4 }
 0x2d2   :  { %6328 = vmatprep.subr.mxu1 %v7548_v0 }
 0x2d3   :  { %6317 = vmatmul.mubr.msk.f32.gmra.mxu0 %vm768_vm4, %v758_v61  ;;  %v634_v63 = vsel %vm599_vm7, %v7714_v30, %v629_v62  ;;  %6329 = vmatpush3.msra.mxu1 %v921_v5 }
 0x2d4   :  { %6319 = vmatprep.mubr.msk.f32.mxu0 %vm7550_vm0, %v7548_v0  ;;  %6303 = vmatmul.mubr.msk.f32.gmra.mxu1 %vm329_vm3, %v634_v63 }
 0x2d5   :  { %6338 = vmatprep.mubr.msk.f32.mxu1 %vm7550_vm0, %v7548_v0  ;;  %6330 = vmatprep.subr.mxu1 %v7548_v0 }
 0x2d6   :  { %6331 = vmatpush3.msra.mxu1 %v920_v6 }
 0x2d7   :  { %6320 = vmatmul.mubr.msk.f32.gmra.mxu0 %vm768_vm4, %v759_v1  ;;  %6332 = vmatprep.subr.mxu1 %v7548_v0 }
 0x2d8   :  { %6369 = vmatprep.mubr.msk.f32.mxu0 %vm7550_vm0, %v7548_v0  ;;  %6333 = vmatpush3.msra.mxu1 %v919_v7 }
 0x2d9   :  { %6334 = vmatprep.subr.mxu1 %v7548_v0 }
 0x2da   :  { %6335 = vmatpush3.msra.mxu1 %v918_v8  ;;  %v1084_v8 = vld [vmem:[%s5523_s23 + $0x38] sm:$0xff] }
 0x2db   :  { %6336 = vmatprep.subr.mxu1 %v7548_v0  ;;  %6354 = vmatpush3.msra.mxu0 %v1084_v8 }
 0x2dc   :  { %6337 = vmatpush3.msra.mxu1 %v917_v9  ;;  %6355 = vmatprep.subr.mxu0 %v7548_v0  ;;  %v1083_v9 = vld [vmem:[%s5523_s23 + $0x30] sm:$0xff] }
 0x2dd   :  { %6384 = vmatprep.subr.mxu1 %v7548_v0  ;;  %6356 = vmatpush3.msra.mxu0 %v1083_v9  ;;  %v1244_v9 = vld [vmem:[%s5525_s1 + $0x38] sm:$0xff] }
 0x2de   :  { %6357 = vmatprep.subr.mxu0 %v7548_v0 }
 0x383   :  { %v7780_v10 = vpop.f32.mrf.mxu0 }
 0x385   :  { %v6292_v11 = vpop.f32.mrf.mxu0 }
 0x386   :  { %v1082_v11 = vld [vmem:[%s5523_s23 + $0x28] sm:$0xff] }
 0x387   :  { %v853_v13 = vpop.f32.mrf.mxu0  ;;  %v7782_v14 = vpop.f32.mrf.mxu1  ;;  %6358 = vmatpush3.msra.mxu0 %v1082_v11  ;;  %v1243_v11 = vld [vmem:[%s5525_s1 + $0x30] sm:$0xff] }
 0x388   :  { %v854_v15 = vadd.f32 %v5568_v12, %v853_v13  ;;  %6359 = vmatprep.subr.mxu0 %v7548_v0  ;;  %v1080_v13 = vld [vmem:[%s5523_s23 + $0x18] sm:$0xff] }
 0x389   :  { %v6309_v16 = vpop.f32.mrf.mxu0  ;;  %v6295_v17 = vpop.f32.mrf.mxu1 }
 0x38a   :  { %v882_v18 = vmin.f32 %v854_v15, 20.0  ;;  %vm877_vm8 = vcmp.gt.f32.partialorder %v854_v15, 20.0  ;;  %v1078_v16 = vld [vmem:[%s5523_s23 + $0x8] sm:$0xff]  ;;  %v1077_v17 = vld [vmem:[%s5523_s23] sm:$0xff] }
 0x38b   :  { %v858_v19 = vpop.f32.mrf.mxu0  ;;  %v7784_v20 = vpop.f32.mrf.mxu1 }
 0x38c   :  { %v887_v21 = vmul.f32 1.442695, %v882_v18  ;;  %v859_v22 = vadd.f32 %v5568_v12, %v858_v19  ;;  %v5575_v18 = vld [vmem:[%s5522_s27] ss:$0 sm:$0xff] }
 0x38d   :  { %v6312_v23 = vpop.f32.mrf.mxu0  ;;  %v6298_v24 = vpop.f32.mrf.mxu1 }
 0x38e   :  { %7321 = vpow2.f32 %v887_v21  ;;  %v883_v25 = vmin.f32 %v859_v22, 20.0  ;;  %vm878_vm9 = vcmp.gt.f32.partialorder %v859_v22, 20.0 }
 0x38f   :  { %v863_v26 = vpop.f32.mrf.mxu0  ;;  %v7786_v27 = vpop.f32.mrf.mxu1 }
 0x390   :  { %v889_v28 = vmul.f32 1.442695, %v883_v25  ;;  %v864_v29 = vadd.f32 %v5568_v12, %v863_v26 }
 0x391   :  { %v6315_v30 = vpop.f32.mrf.mxu0  ;;  %v6301_v31 = vpop.f32.mrf.mxu1 }
 0x392   :  { %7323 = vpow2.f32 %v889_v28  ;;  %v884_v32 = vmin.f32 %v864_v29, 20.0  ;;  %vm879_vm10 = vcmp.gt.f32.partialorder %v864_v29, 20.0 }
 0x393   :  { %v868_v33 = vpop.f32.mrf.mxu0 }
 0x394   :  { %v891_v34 = vmul.f32 1.442695, %v884_v32  ;;  %v869_v35 = vadd.f32 %v5568_v12, %v868_v33  ;;  %v7788_v36 = vpop.f32.mrf.mxu1 }
 0x395   :  { %v6318_v37 = vpop.f32.mrf.mxu0 }
 0x396   :  { %7325 = vpow2.f32 %v891_v34  ;;  %v885_v38 = vmin.f32 %v869_v35, 20.0  ;;  %v6304_v39 = vpop.f32.mrf.mxu1  ;;  %vm880_vm11 = vcmp.gt.f32.partialorder %v869_v35, 20.0 }
 0x397   :  { %v873_v40 = vpop.f32.mrf.mxu0 }
 0x398   :  { %v893_v41 = vmul.f32 1.442695, %v885_v38  ;;  %v874_v42 = vadd.f32 %v5568_v12, %v873_v40  ;;  %v1081_v12 = vld [vmem:[%s5523_s23 + $0x20] sm:$0xff] }
 0x399   :  { %v6321_v43 = vpop.f32.mrf.mxu0  ;;  %6360 = vmatpush3.msra.mxu0 %v1081_v12  ;;  %v1242_v12 = vld [vmem:[%s5525_s1 + $0x28] sm:$0xff] }
 0x39a   :  { %7327 = vpow2.f32 %v893_v41  ;;  %v886_v44 = vmin.f32 %v874_v42, 20.0  ;;  %vm881_vm12 = vcmp.gt.f32.partialorder %v874_v42, 20.0  ;;  %6361 = vmatprep.subr.mxu0 %v7548_v0 }
 0x39b   :  { %v7322_v45 = vpop.eup %7321  ;;  %6362 = vmatpush3.msra.mxu0 %v1080_v13  ;;  %v1241_v13 = vld [vmem:[%s5525_s1 + $0x20] sm:$0xff] }
 0x39c   :  { %v897_v46 = vadd.f32 1.0, %v7322_v45  ;;  %v895_v47 = vmul.f32 1.442695, %v886_v44  ;;  %6363 = vmatprep.subr.mxu0 %v7548_v0 }
 0x39e   :  { %7329 = vlog2.f32 %v897_v46 }
 0x39f   :  { %v7324_v48 = vpop.eup %7323  ;;  %7331 = vpow2.f32 %v895_v47 }
 0x3a0   :  { %v898_v49 = vadd.f32 1.0, %v7324_v48 }
 0x3a2   :  { %7333 = vlog2.f32 %v898_v49 }
 0x3a3   :  { %v7326_v50 = vpop.eup %7325 }
 0x3a4   :  { %v899_v51 = vadd.f32 1.0, %v7326_v50 }
 0x3a6   :  { %7335 = vlog2.f32 %v899_v51 }
 0x3a7   :  { %v7328_v52 = vpop.eup %7327 }
 0x3a8   :  { %v900_v53 = vadd.f32 1.0, %v7328_v52 }
 0x3aa   :  { %7337 = vlog2.f32 %v900_v53 }
 0x3ab   :  { %v7330_v54 = vpop.eup %7329 }
 0x3ac   :  { %v7332_v55 = vpop.eup %7331  ;;  %v903_v56 = vmul.f32 0.6931472, %v7330_v54 }
 0x3ad   :  { %v901_v57 = vadd.f32 1.0, %v7332_v55 }
 0x3ae   :  { %v912_v58 = vsel %vm877_vm8, %v854_v15, %v903_v56  ;;  %v1079_v15 = vld [vmem:[%s5523_s23 + $0x10] sm:$0xff]  ;;  %s5539_s23 = sld [smem:[%s9199_s0 + %s7583_s19]]  }
 0x3af   :  { %v7334_v59 = vpop.eup %7333  ;;  %7339 = vlog2.f32 %v901_v57  ;;  %6339 = vmatmul.mubr.msk.f32.vlgmr.msra.gmra.mxu1 %vm329_vm3, %v912_v58  ;;  %6364 = vmatpush3.msra.mxu0 %v1079_v15  ;;  %v1240_v15 = vld [vmem:[%s5525_s1 + $0x18] sm:$0xff] }
 0x3b0   :  { %6341 = vmatprep.mubr.msk.f32.mxu1 %vm7550_vm0, %v7548_v0  ;;  %v905_v60 = vmul.f32 0.6931472, %v7334_v59  ;;  %6365 = vmatprep.subr.mxu0 %v7548_v0 }
 0x3b1   :  { %6366 = vmatpush3.msra.mxu0 %v1078_v16  ;;  %6385 = vmatpush3.msra.mxu1 %v1244_v9  ;;  %v1239_v16 = vld [vmem:[%s5525_s1 + $0x10] sm:$0xff] }
 0x3b2   :  { %v913_v61 = vsel %vm878_vm9, %v859_v22, %v905_v60  ;;  %6367 = vmatprep.subr.mxu0 %v7548_v0  ;;  %6386 = vmatprep.subr.mxu1 %v7548_v0 }
 0x3b3   :  { %v7336_v62 = vpop.eup %7335  ;;  %6342 = vmatmul.mubr.msk.f32.gmra.mxu1 %vm329_vm3, %v913_v61  ;;  %6368 = vmatpush3.msra.mxu0 %v1077_v17  ;;  %v1238_v17 = vld [vmem:[%s5525_s1 + $0x8] sm:$0xff] }
 0x3b4   :  { %6344 = vmatprep.mubr.msk.f32.mxu1 %vm7550_vm0, %v7548_v0  ;;  %v907_v63 = vmul.f32 0.6931472, %v7336_v62  ;;  %6415 = vmatprep.subr.mxu0 %v7548_v0 }
 0x3b5   :  { %6387 = vmatpush3.msra.mxu1 %v1243_v11  ;;  %v7869_v11 = vld [vmem:[%s7866_s9 + $0x8] sm:$0xf] }
 0x3b6   :  { %v914_v1 = vsel %vm879_vm10, %v864_v29, %v907_v63  ;;  %6388 = vmatprep.subr.mxu1 %v7548_v0 }
 0x3b7   :  { %v7338_v2 = vpop.eup %7337  ;;  %6345 = vmatmul.mubr.msk.f32.gmra.mxu1 %vm329_vm3, %v914_v1 }
 0x3b8   :  { %6347 = vmatprep.mubr.msk.f32.mxu1 %vm7550_vm0, %v7548_v0  ;;  %v909_v3 = vmul.f32 0.6931472, %v7338_v2  ;;  %6389 = vmatpush3.msra.mxu1 %v1242_v12  ;;  %v7872_v12 = vld [vmem:[%s7866_s9] sm:$0xff] }
 0x3b9   :  { %6390 = vmatprep.subr.mxu1 %v7548_v0 }
 0x3ba   :  { %v915_v4 = vsel %vm880_vm11, %v869_v35, %v909_v3  ;;  %6391 = vmatpush3.msra.mxu1 %v1241_v13  ;;  %vm1389_vm11 = vcmask 326656  }
 0x3bb   :  { %6348 = vmatmul.mubr.msk.f32.gmra.mxu1 %vm329_vm3, %v915_v4  ;;  %6392 = vmatprep.subr.mxu1 %v7548_v0 }
 0x3bc   :  { %v7340_v5 = vpop.eup %7339  ;;  %6350 = vmatprep.mubr.msk.f32.mxu1 %vm7550_vm0, %v7548_v0  ;;  %6393 = vmatpush3.msra.mxu1 %v1240_v15 }
 0x3bd   :  { %v911_v6 = vmul.f32 0.6931472, %v7340_v5  ;;  %6394 = vmatprep.subr.mxu1 %v7548_v0 }
 0x3be   :  { %6395 = vmatpush3.msra.mxu1 %v1239_v16 }
 0x3bf   :  { %v916_v7 = vsel %vm881_vm12, %v874_v42, %v911_v6  ;;  %6396 = vmatprep.subr.mxu1 %v7548_v0  ;;  %vm2204_vm12 = vcmask 130048  }
 0x3c0   :  { %6351 = vmatmul.mubr.msk.f32.gmra.mxu1 %vm329_vm3, %v916_v7 }
 0x3c1   :  { %6400 = vmatprep.mubr.msk.f32.mxu1 %vm7550_vm0, %v7548_v0  ;;  %6397 = vmatpush3.msra.mxu1 %v1238_v17 }
 0x3c2   :  { %6398 = vmatprep.subr.mxu1 %v7548_v0 }
 0x46f   :  { %v1013_v19 = vpop.f32.mrf.mxu1 }
 0x470   :  { %v1014_v21 = vadd.f32 %v5575_v18, %v1013_v19  ;;  %v5581_v19 = vld [vmem:[%s5524_s5] ss:$0 sm:$0xff]  ;;  %s5535_s5 = sld [smem:[%s9199_s0 + %s7579_s2]]  }
 0x471   :  { %v6340_v22 = vpop.f32.mrf.mxu1 }
 0x472   :  { %v1042_v23 = vmin.f32 %v1014_v21, 20.0  ;;  %vm1037_vm13 = vcmp.gt.f32.partialorder %v1014_v21, 20.0 }
 0x473   :  { %v1018_v24 = vpop.f32.mrf.mxu1 }
 0x474   :  { %v1047_v25 = vmul.f32 1.442695, %v1042_v23  ;;  %v1019_v26 = vadd.f32 %v5575_v18, %v1018_v24 }
 0x475   :  { %v6343_v28 = vpop.f32.mrf.mxu1 }
 0x476   :  { %7341 = vpow2.f32 %v1047_v25  ;;  %v1043_v29 = vmin.f32 %v1019_v26, 20.0  ;;  %vm1038_vm14 = vcmp.gt.f32.partialorder %v1019_v26, 20.0 }
 0x477   :  { %v1023_v30 = vpop.f32.mrf.mxu1 }
 0x478   :  { %v1049_v31 = vmul.f32 1.442695, %v1043_v29  ;;  %v1024_v32 = vadd.f32 %v5575_v18, %v1023_v30 }
 0x479   :  { %v6346_v33 = vpop.f32.mrf.mxu1 }
 0x47a   :  { %7343 = vpow2.f32 %v1049_v31  ;;  %v1044_v34 = vmin.f32 %v1024_v32, 20.0  ;;  %vm1039_vm15 = vcmp.gt.f32.partialorder %v1024_v32, 20.0 }
 0x47b   :  { %v1028_v35 = vpop.f32.mrf.mxu1 }
 0x47c   :  { %v1051_v37 = vmul.f32 1.442695, %v1044_v34  ;;  %v1029_v38 = vadd.f32 %v5575_v18, %v1028_v35 }
 0x47d   :  { %v6349_v39 = vpop.f32.mrf.mxu1 }
 0x47e   :  { %7345 = vpow2.f32 %v1051_v37  ;;  %v1045_v40 = vmin.f32 %v1029_v38, 20.0  ;;  %vm1040_vm4 = vcmp.gt.f32.partialorder %v1029_v38, 20.0 }
 0x480   :  { %v1053_v41 = vmul.f32 1.442695, %v1045_v40  ;;  %v1033_v42 = vpop.f32.mrf.mxu1 }
 0x481   :  { %v1034_v43 = vadd.f32 %v5575_v18, %v1033_v42  ;;  %v1237_v18 = vld [vmem:[%s5525_s1] sm:$0xff]  ;;  %s5536_s1 = sld [smem:[%s9199_s0 + %s7578_s28]]  }
 0x482   :  { %7347 = vpow2.f32 %v1053_v41  ;;  %v6352_v44 = vpop.f32.mrf.mxu1  ;;  %6399 = vmatpush3.msra.mxu1 %v1237_v18 }
 0x483   :  { %v7342_v45 = vpop.eup %7341  ;;  %v1046_v46 = vmin.f32 %v1034_v43, 20.0  ;;  %vm1041_vm5 = vcmp.gt.f32.partialorder %v1034_v43, 20.0  ;;  %6440 = vmatprep.subr.mxu1 %v7548_v0 }
 0x484   :  { %v1057_v47 = vadd.f32 1.0, %v7342_v45 }
 0x485   :  { %v1055_v48 = vmul.f32 1.442695, %v1046_v46 }
 0x486   :  { %7349 = vlog2.f32 %v1057_v47 }
 0x487   :  { %v7344_v49 = vpop.eup %7343  ;;  %7351 = vpow2.f32 %v1055_v48 }
 0x488   :  { %v1058_v50 = vadd.f32 1.0, %v7344_v49 }
 0x48a   :  { %7353 = vlog2.f32 %v1058_v50 }
 0x48b   :  { %v7346_v51 = vpop.eup %7345 }
 0x48c   :  { %v1059_v52 = vadd.f32 1.0, %v7346_v51 }
 0x48e   :  { %7355 = vlog2.f32 %v1059_v52 }
 0x48f   :  { %v7348_v53 = vpop.eup %7347 }
 0x490   :  { %v1060_v54 = vadd.f32 1.0, %v7348_v53 }
 0x492   :  { %7357 = vlog2.f32 %v1060_v54 }
 0x493   :  { %v7350_v55 = vpop.eup %7349 }
 0x494   :  { %v7352_v56 = vpop.eup %7351  ;;  %v1063_v57 = vmul.f32 0.6931472, %v7350_v55 }
 0x495   :  { %v1061_v58 = vadd.f32 1.0, %v7352_v56 }
 0x496   :  { %v1072_v59 = vsel %vm1037_vm13, %v1014_v21, %v1063_v57 }
 0x497   :  { %v7354_v60 = vpop.eup %7353  ;;  %7359 = vlog2.f32 %v1061_v58  ;;  %6370 = vmatmul.mubr.msk.f32.vlgmr.msra.gmra.mxu0 %vm329_vm3, %v1072_v59 }
 0x498   :  { %6372 = vmatprep.mubr.msk.f32.mxu0 %vm7550_vm0, %v7548_v0  ;;  %v1065_v61 = vmul.f32 0.6931472, %v7354_v60 }
 0x49a   :  { %v1073_v62 = vsel %vm1038_vm14, %v1019_v26, %v1065_v61 }
 0x49b   :  { %v7356_v63 = vpop.eup %7355  ;;  %6373 = vmatmul.mubr.msk.f32.gmra.mxu0 %vm329_vm3, %v1073_v62 }
 0x49c   :  { %6375 = vmatprep.mubr.msk.f32.mxu0 %vm7550_vm0, %v7548_v0  ;;  %v1067_v1 = vmul.f32 0.6931472, %v7356_v63 }
 0x49e   :  { %v1074_v2 = vsel %vm1039_vm15, %v1024_v32, %v1067_v1 }
 0x49f   :  { %v7358_v3 = vpop.eup %7357  ;;  %6376 = vmatmul.mubr.msk.f32.gmra.mxu0 %vm329_vm3, %v1074_v2 }
 0x4a0   :  { %6378 = vmatprep.mubr.msk.f32.mxu0 %vm7550_vm0, %v7548_v0  ;;  %v1069_v4 = vmul.f32 0.6931472, %v7358_v3 }
 0x4a2   :  { %v1075_v5 = vsel %vm1040_vm4, %v1029_v38, %v1069_v4 }
 0x4a3   :  { %6379 = vmatmul.mubr.msk.f32.gmra.mxu0 %vm329_vm3, %v1075_v5 }
 0x4a4   :  { %v7360_v6 = vpop.eup %7359  ;;  %6381 = vmatprep.mubr.msk.f32.mxu0 %vm7550_vm0, %v7548_v0 }
 0x4a5   :  { %v1071_v7 = vmul.f32 0.6931472, %v7360_v6 }
 0x4a7   :  { %v1076_v8 = vsel %vm1041_vm5, %v1034_v43, %v1071_v7 }
 0x4a8   :  { %6382 = vmatmul.mubr.msk.f32.gmra.mxu0 %vm329_vm3, %v1076_v8 }
 0x4a9   :  { %6425 = vmatprep.mubr.msk.f32.mxu0 %vm7550_vm0, %v7548_v0 }
 0x557   :  { %v1173_v21 = vpop.f32.mrf.mxu0 }
 0x558   :  { %v1174_v22 = vadd.f32 %v5581_v19, %v1173_v21 }
 0x559   :  { %v6371_v23 = vpop.f32.mrf.mxu0 }
 0x55a   :  { %v1202_v24 = vmin.f32 %v1174_v22, 20.0  ;;  %vm1197_vm6 = vcmp.gt.f32.partialorder %v1174_v22, 20.0  ;;  %v5562_v23 = vld [vmem:[%s5518_s13] ss:$0 sm:$0xff]  ;;  %s7574_s13 = smov 26  }
 0x55b   :  { %v1178_v25 = vpop.f32.mrf.mxu0  ;;  %s8186_s16 = sld [smem:[%s9199_s0 + %s7574_s13]]  }
 0x55c   :  { %v1207_v26 = vmul.f32 1.442695, %v1202_v24  ;;  %v1179_v28 = vadd.f32 %v5581_v19, %v1178_v25  ;;  %v5587_v24 = vld [vmem:[%s5526_s17] ss:$0 sm:$0xff]  ;;  %s7575_s17 = smov 25  }
 0x55d   :  { %v6374_v29 = vpop.f32.mrf.mxu0  ;;  %s8201_s20 = sld [smem:[%s9199_s0 + %s7575_s17]]  }
 0x55e   :  { %7361 = vpow2.f32 %v1207_v26  ;;  %v1203_v30 = vmin.f32 %v1179_v28, 20.0  ;;  %vm1198_vm7 = vcmp.gt.f32.partialorder %v1179_v28, 20.0  ;;  %v752_v26 = vadd.f32 %v5562_v23, %v7788_v36 }
 0x55f   :  { %v1183_v31 = vpop.f32.mrf.mxu0  ;;  %v742_v36 = vadd.f32 %v5562_v23, %v7784_v20  ;;  %v732_v20 = vadd.f32 %v5562_v23, %v7780_v10  ;;  %v7929_v10 = vld [vmem:[%s7897_s25] sm:$0xff] }
 0x560   :  { %v1209_v32 = vmul.f32 1.442695, %v1203_v30  ;;  %v1184_v33 = vadd.f32 %v5581_v19, %v1183_v31  ;;  %v747_v31 = vadd.f32 %v5562_v23, %v7786_v27 }
 0x561   :  { %v6377_v34 = vpop.f32.mrf.mxu0 }
 0x562   :  { %7363 = vpow2.f32 %v1209_v32  ;;  %v1204_v35 = vmin.f32 %v1184_v33, 20.0  ;;  %vm1199_vm8 = vcmp.gt.f32.partialorder %v1184_v33, 20.0 }
 0x563   :  { %v1188_v37 = vpop.f32.mrf.mxu0 }
 0x564   :  { %v1211_v38 = vmul.f32 1.442695, %v1204_v35  ;;  %v1189_v39 = vadd.f32 %v5581_v19, %v1188_v37  ;;  %v737_v35 = vadd.f32 %v5562_v23, %v7782_v14  ;;  %v7918_v14 = vld [vmem:[%s7892_s21] sm:$0xff] }
 0x565   :  { %v6380_v40 = vpop.f32.mrf.mxu0 }
 0x566   :  { %7365 = vpow2.f32 %v1211_v38  ;;  %v1205_v41 = vmin.f32 %v1189_v39, 20.0  ;;  %vm1200_vm9 = vcmp.gt.f32.partialorder %v1189_v39, 20.0 }
 0x568   :  { %v1213_v42 = vmul.f32 1.442695, %v1205_v41  ;;  %v1193_v43 = vpop.f32.mrf.mxu0  ;;  %v7922_v41 = vld [vmem:[%s7897_s25 + $0x8] sm:$0xf] }
 0x569   :  { %v1194_v44 = vadd.f32 %v5581_v19, %v1193_v43  ;;  %v7946_v43 = vld [vmem:[%s7892_s21 + $0x10] sm:$0xff] }
 0x56a   :  { %7367 = vpow2.f32 %v1213_v42  ;;  %v6383_v45 = vpop.f32.mrf.mxu0  ;;  %v7934_v42 = vld [vmem:[%s7892_s21 + $0x8] sm:$0xff] }
 0x56b   :  { %v7362_v46 = vpop.eup %7361  ;;  %v1206_v47 = vmin.f32 %v1194_v44, 20.0  ;;  %vm1201_vm10 = vcmp.gt.f32.partialorder %v1194_v44, 20.0  ;;  %v7960_v45 = vld [vmem:[%s7892_s21 + $0x20] sm:$0xff] }
 0x56c   :  { %v1217_v48 = vadd.f32 1.0, %v7362_v46 }
 0x56d   :  { %v1215_v49 = vmul.f32 1.442695, %v1206_v47 }
 0x56e   :  { %7369 = vlog2.f32 %v1217_v48 }
 0x56f   :  { %v7364_v50 = vpop.eup %7363  ;;  %7371 = vpow2.f32 %v1215_v49 }
 0x570   :  { %v1218_v51 = vadd.f32 1.0, %v7364_v50 }
 0x572   :  { %7373 = vlog2.f32 %v1218_v51 }
 0x573   :  { %v7366_v52 = vpop.eup %7365 }
 0x574   :  { %v1219_v53 = vadd.f32 1.0, %v7366_v52 }
 0x576   :  { %7375 = vlog2.f32 %v1219_v53 }
 0x577   :  { %v7368_v54 = vpop.eup %7367 }
 0x578   :  { %v1220_v55 = vadd.f32 1.0, %v7368_v54 }
 0x57a   :  { %7377 = vlog2.f32 %v1220_v55 }
 0x57b   :  { %v7370_v56 = vpop.eup %7369 }
 0x57c   :  { %v7372_v57 = vpop.eup %7371  ;;  %v1223_v58 = vmul.f32 0.6931472, %v7370_v56  ;;  %v8017_v56 = vld [vmem:[%s8007_s29] sm:$0xff] }
 0x57d   :  { %v1221_v59 = vadd.f32 1.0, %v7372_v57 }
 0x57e   :  { %v1232_v60 = vsel %vm1197_vm6, %v1174_v22, %v1223_v58 }
 0x57f   :  { %v7374_v61 = vpop.eup %7373  ;;  %7379 = vlog2.f32 %v1221_v59  ;;  %6401 = vmatmul.mubr.msk.f32.vlgmr.msra.gmra.mxu1 %vm329_vm3, %v1232_v60  ;;  %v8027_v59 = vld [vmem:[%s8007_s29 + $0x8] sm:$0xff] }
 0x580   :  { %6403 = vmatprep.mubr.msk.f32.mxu1 %vm7550_vm0, %v7548_v0  ;;  %v1225_v62 = vmul.f32 0.6931472, %v7374_v61  ;;  %6441 = vmatpush3.msk.msra.mxu1 %vm180_vm1, %v7869_v11 }
 0x581   :  { %6442 = vmatprep.subr.mxu1 %v7548_v0 }
 0x582   :  { %v1233_v63 = vsel %vm1198_vm7, %v1179_v28, %v1225_v62  ;;  %6443 = vmatpush3.msra.mxu1 %v7872_v12  ;;  %v8040_v62 = vld [vmem:[%s8007_s29 + $0x10] sm:$0xff] }
 0x583   :  { %v7376_v1 = vpop.eup %7375  ;;  %6404 = vmatmul.mubr.msk.f32.gmra.mxu1 %vm329_vm3, %v1233_v63  ;;  %6478 = vmatprep.subr.mxu1 %v7548_v0 }
 0x584   :  { %6406 = vmatprep.mubr.msk.f32.mxu1 %vm7550_vm0, %v7548_v0  ;;  %v1227_v2 = vmul.f32 0.6931472, %v7376_v1 }
 0x586   :  { %v1234_v3 = vsel %vm1199_vm8, %v1184_v33, %v1227_v2  ;;  %v8053_v2 = vld [vmem:[%s8007_s29 + $0x18] sm:$0xff] }
 0x587   :  { %v7378_v4 = vpop.eup %7377  ;;  %6407 = vmatmul.mubr.msk.f32.gmra.mxu1 %vm329_vm3, %v1234_v3 }
 0x588   :  { %6409 = vmatprep.mubr.msk.f32.mxu1 %vm7550_vm0, %v7548_v0  ;;  %v1229_v5 = vmul.f32 0.6931472, %v7378_v4 }
 0x58a   :  { %v1235_v6 = vsel %vm1200_vm9, %v1189_v39, %v1229_v5  ;;  %v8068_v5 = vld [vmem:[%s8007_s29 + $0x20] sm:$0xff] }
 0x58b   :  { %6410 = vmatmul.mubr.msk.f32.gmra.mxu1 %vm329_vm3, %v1235_v6 }
 0x58c   :  { %v7380_v7 = vpop.eup %7379  ;;  %6412 = vmatprep.mubr.msk.f32.mxu1 %vm7550_vm0, %v7548_v0 }
 0x58d   :  { %v1231_v8 = vmul.f32 0.6931472, %v7380_v7 }
 0x58f   :  { %v1236_v9 = vsel %vm1201_vm10, %v1194_v44, %v1231_v8  ;;  %v7953_v44 = vld [vmem:[%s7892_s21 + $0x18] sm:$0xff]  ;;  %v8077_v8 = vld [vmem:[%s8058_s3] sm:$0xff] }
 0x590   :  { %6413 = vmatmul.mubr.msk.f32.gmra.mxu1 %vm329_vm3, %v1236_v9  ;;  %v8084_v9 = vld [vmem:[%s8058_s3 + $0x8] sm:$0xff] }
 0x591   :  { %6444 = vmatprep.mubr.msk.f32.mxu1 %vm7550_vm0, %v7548_v0 }
 0x63f   :  { %v1333_v13 = vpop.f32.mrf.mxu1 }
 0x640   :  { %v1334_v37 = vadd.f32 %v5587_v24, %v1333_v13  ;;  %v8091_v13 = vld [vmem:[%s8058_s3 + $0x10] sm:$0xff] }
 0x641   :  { %v6402_v15 = vpop.f32.mrf.mxu1 }
 0x642   :  { %v7914_v40 = vadd.f32 %v1334_v37, %v732_v20  ;;  %v8098_v15 = vld [vmem:[%s8058_s3 + $0x18] sm:$0xff] }
 0x643   :  { %v1338_v16 = vpop.f32.mrf.mxu1 }
 0x644   :  { %v1339_v34 = vadd.f32 %v5587_v24, %v1338_v16  ;;  %v8105_v16 = vld [vmem:[%s8058_s3 + $0x20] sm:$0xff] }
 0x645   :  { %v6405_v17 = vpop.f32.mrf.mxu1 }
 0x646   :  { %v7910_v39 = vadd.f32 %v1339_v34, %v737_v35  ;;  %v8117_v17 = vld [vmem:[%s8114_s7 + $0x8] sm:$0xf] }
 0x647   :  { %v1343_v18 = vpop.f32.mrf.mxu1 }
 0x648   :  { %v1344_v32 = vadd.f32 %v5587_v24, %v1343_v18  ;;  %v8123_v18 = vld [vmem:[%s8114_s7] sm:$0xff] }
 0x649   :  { %v6408_v19 = vpop.f32.mrf.mxu1 }
 0x64a   :  { %v7905_v38 = vadd.f32 %v1344_v32, %v742_v36  ;;  %v8147_v36 = vld [vmem:[%s8136_s12] sm:$0xff] }
 0x64b   :  { %v1348_v21 = vpop.f32.mrf.mxu1 }
 0x64c   :  { %v1349_v28 = vadd.f32 %v5587_v24, %v1348_v21 }
 0x64d   :  { %v6411_v22 = vpop.f32.mrf.mxu1 }
 0x64e   :  { %v7900_v27 = vadd.f32 %v1349_v28, %v747_v31  ;;  %v8143_v31 = vld [vmem:[%s8136_s12 + $0x8] sm:$0xf] }
 0x650   :  { %v1353_v25 = vpop.f32.mrf.mxu1 }
 0x651   :  { %v1354_v29 = vadd.f32 %v5587_v24, %v1353_v25 }
 0x652   :  { %v6414_v30 = vpop.f32.mrf.mxu1 }
 0x653   :  { %v7887_v33 = vadd.f32 %v1354_v29, %v752_v26 }
 0x655   :  { %6416 = vmatpush3.msra.mxu0 %v7887_v33 }
 0x656   :  { %6417 = vmatprep.subr.mxu0 %v7548_v0 }
 0x657   :  { %6418 = vmatpush3.msra.mxu0 %v7900_v27 }
 0x658   :  { %6419 = vmatprep.subr.mxu0 %v7548_v0 }
 0x659   :  { %6420 = vmatpush3.msra.mxu0 %v7905_v38 }
 0x65a   :  { %6421 = vmatprep.subr.mxu0 %v7548_v0 }
 0x65b   :  { %6422 = vmatpush3.msra.mxu0 %v7910_v39 }
 0x65c   :  { %6423 = vmatprep.subr.mxu0 %v7548_v0 }
 0x65d   :  { %6424 = vmatpush3.msra.mxu0 %v7914_v40 }
 0x65e   :  { %6426 = vmatmul.mubr.msk.f32.vlgmr.msra.gmra.mxu0 %vm1389_vm11, %v7918_v14  ;;  %6459 = vmatprep.subr.mxu0 %v7548_v0 }
 0x65f   :  { %6428 = vmatprep.mubr.msk.f32.mxu0 %vm7550_vm0, %v7548_v0  ;;  %6460 = vmatpush3.msk.msra.mxu0 %vm180_vm1, %v7922_v41 }
 0x660   :  { %6461 = vmatprep.subr.mxu0 %v7548_v0 }
 0x661   :  { %6462 = vmatpush3.msra.mxu0 %v7929_v10 }
 0x662   :  { %6429 = vmatmul.mubr.msk.f32.gmra.mxu0 %vm1389_vm11, %v7934_v42  ;;  %6503 = vmatprep.subr.mxu0 %v7548_v0 }
 0x663   :  { %6431 = vmatprep.mubr.msk.f32.mxu0 %vm7550_vm0, %v7548_v0 }
 0x666   :  { %6432 = vmatmul.mubr.msk.f32.gmra.mxu0 %vm1389_vm11, %v7946_v43 }
 0x667   :  { %6434 = vmatprep.mubr.msk.f32.mxu0 %vm7550_vm0, %v7548_v0 }
 0x66a   :  { %6435 = vmatmul.mubr.msk.f32.gmra.mxu0 %vm1389_vm11, %v7953_v44 }
 0x66b   :  { %6437 = vmatprep.mubr.msk.f32.mxu0 %vm7550_vm0, %v7548_v0 }
 0x66e   :  { %6438 = vmatmul.mubr.msk.f32.gmra.mxu0 %vm1389_vm11, %v7960_v45 }
 0x66f   :  { %6463 = vmatprep.mubr.msk.f32.mxu0 %vm7550_vm0, %v7548_v0 }
 0x672   :  { %6464 = vmatmul.mubr.msk.f32.vlgmr.msra.gmra.mxu0 %vm164_vm2, %v7914_v40 }
 0x673   :  { %6466 = vmatprep.mubr.msk.f32.mxu0 %vm7550_vm0, %v7548_v0  ;;  %6504 = vmatpush3.msk.msra.mxu0 %vm180_vm1, %v8117_v17 }
 0x674   :  { %6505 = vmatprep.subr.mxu0 %v7548_v0 }
 0x675   :  { %6506 = vmatpush3.msra.mxu0 %v8123_v18 }
 0x676   :  { %6467 = vmatmul.mubr.msk.f32.gmra.mxu0 %vm164_vm2, %v7910_v39  ;;  %6547 = vmatprep.subr.mxu0 %v7548_v0 }
 0x677   :  { %6469 = vmatprep.mubr.msk.f32.mxu0 %vm7550_vm0, %v7548_v0 }
 0x67a   :  { %6470 = vmatmul.mubr.msk.f32.gmra.mxu0 %vm164_vm2, %v7905_v38 }
 0x67b   :  { %6472 = vmatprep.mubr.msk.f32.mxu0 %vm7550_vm0, %v7548_v0 }
 0x67e   :  { %6473 = vmatmul.mubr.msk.f32.gmra.mxu0 %vm164_vm2, %v7900_v27 }
 0x67f   :  { %6475 = vmatprep.mubr.msk.f32.mxu0 %vm7550_vm0, %v7548_v0 }
 0x682   :  { %6476 = vmatmul.mubr.msk.f32.gmra.mxu0 %vm164_vm2, %v7887_v33 }
 0x683   :  { %6507 = vmatprep.mubr.msk.f32.mxu0 %vm7550_vm0, %v7548_v0 }
 0x71e   :  { %v1471_v46 = vpop.f32.mrf.mxu0 }
 0x71f   :  { %6445 = vmatmul.mubr.msk.f32.vlgmr.msra.gmra.mxu1 %vm164_vm2, %v1471_v46 }
 0x720   :  { %6479 = vmatpush3.msra.mxu1 %v7887_v33  ;;  %v6427_v47 = vpop.f32.mrf.mxu0  ;;  %6447 = vmatprep.mubr.msk.f32.mxu1 %vm7550_vm0, %v7548_v0 }
 0x721   :  { %6480 = vmatprep.subr.mxu1 %v7548_v0 }
 0x722   :  { %6481 = vmatpush3.msra.mxu1 %v7900_v27  ;;  %v1476_v48 = vpop.f32.mrf.mxu0 }
 0x723   :  { %6482 = vmatprep.subr.mxu1 %v7548_v0  ;;  %6448 = vmatmul.mubr.msk.f32.gmra.mxu1 %vm164_vm2, %v1476_v48 }
 0x724   :  { %6483 = vmatpush3.msra.mxu1 %v7905_v38  ;;  %v6430_v49 = vpop.f32.mrf.mxu0  ;;  %6450 = vmatprep.mubr.msk.f32.mxu1 %vm7550_vm0, %v7548_v0 }
 0x725   :  { %6484 = vmatprep.subr.mxu1 %v7548_v0 }
 0x726   :  { %6485 = vmatpush3.msra.mxu1 %v7910_v39  ;;  %v1481_v50 = vpop.f32.mrf.mxu0 }
 0x727   :  { %6486 = vmatprep.subr.mxu1 %v7548_v0  ;;  %6451 = vmatmul.mubr.msk.f32.gmra.mxu1 %vm164_vm2, %v1481_v50 }
 0x728   :  { %6487 = vmatpush3.msra.mxu1 %v7914_v40  ;;  %v6433_v51 = vpop.f32.mrf.mxu0  ;;  %6453 = vmatprep.mubr.msk.f32.mxu1 %vm7550_vm0, %v7548_v0 }
 0x729   :  { %6522 = vmatprep.subr.mxu1 %v7548_v0 }
 0x72a   :  { %v1486_v52 = vpop.f32.mrf.mxu0 }
 0x72b   :  { %6454 = vmatmul.mubr.msk.f32.gmra.mxu1 %vm164_vm2, %v1486_v52 }
 0x72c   :  { %v6436_v53 = vpop.f32.mrf.mxu0  ;;  %6456 = vmatprep.mubr.msk.f32.mxu1 %vm7550_vm0, %v7548_v0 }
 0x72e   :  { %v1491_v54 = vpop.f32.mrf.mxu0 }
 0x72f   :  { %6457 = vmatmul.mubr.msk.f32.gmra.mxu1 %vm164_vm2, %v1491_v54 }
 0x730   :  { %v6439_v55 = vpop.f32.mrf.mxu0  ;;  %6488 = vmatprep.mubr.msk.f32.mxu1 %vm7550_vm0, %v7548_v0 }
 0x732   :  { %v8019_v57 = vpop.f32.mrf.mxu0 }
 0x733   :  { %6489 = vmatmul.mubr.msk.f32.vlgmr.msra.gmra.mxu1 %vm1389_vm11, %v8017_v56 }
 0x734   :  { %6523 = vmatpush3.msra.mxu1 %v7887_v33  ;;  %v6465_v58 = vpop.f32.mrf.mxu0  ;;  %6491 = vmatprep.mubr.msk.f32.mxu1 %vm7550_vm0, %v7548_v0 }
 0x735   :  { %6524 = vmatprep.subr.mxu1 %v7548_v0 }
 0x736   :  { %6525 = vmatpush3.msra.mxu1 %v7900_v27  ;;  %v8031_v60 = vpop.f32.mrf.mxu0 }
 0x737   :  { %6526 = vmatprep.subr.mxu1 %v7548_v0  ;;  %6492 = vmatmul.mubr.msk.f32.gmra.mxu1 %vm1389_vm11, %v8027_v59 }
 0x738   :  { %6527 = vmatpush3.msra.mxu1 %v7905_v38  ;;  %v6468_v61 = vpop.f32.mrf.mxu0  ;;  %6494 = vmatprep.mubr.msk.f32.mxu1 %vm7550_vm0, %v7548_v0 }
 0x739   :  { %6528 = vmatprep.subr.mxu1 %v7548_v0 }
 0x73a   :  { %6529 = vmatpush3.msra.mxu1 %v7910_v39  ;;  %v8044_v63 = vpop.f32.mrf.mxu0 }
 0x73b   :  { %6530 = vmatprep.subr.mxu1 %v7548_v0  ;;  %6495 = vmatmul.mubr.msk.f32.gmra.mxu1 %vm1389_vm11, %v8040_v62 }
 0x73c   :  { %6531 = vmatpush3.msra.mxu1 %v7914_v40  ;;  %v6471_v1 = vpop.f32.mrf.mxu0  ;;  %6497 = vmatprep.mubr.msk.f32.mxu1 %vm7550_vm0, %v7548_v0 }
 0x73d   :  { %6566 = vmatprep.subr.mxu1 %v7548_v0 }
 0x73e   :  { %v8061_v3 = vpop.f32.mrf.mxu0 }
 0x73f   :  { %6498 = vmatmul.mubr.msk.f32.gmra.mxu1 %vm1389_vm11, %v8053_v2 }
 0x740   :  { %v6474_v4 = vpop.f32.mrf.mxu0  ;;  %6500 = vmatprep.mubr.msk.f32.mxu1 %vm7550_vm0, %v7548_v0 }
 0x742   :  { %v8070_v6 = vpop.f32.mrf.mxu0 }
 0x743   :  { %6501 = vmatmul.mubr.msk.f32.gmra.mxu1 %vm1389_vm11, %v8068_v5 }
 0x744   :  { %v6477_v7 = vpop.f32.mrf.mxu0  ;;  %6532 = vmatprep.mubr.msk.f32.mxu1 %vm7550_vm0, %v7548_v0 }
 0x747   :  { %6533 = vmatmul.mubr.msk.f32.vlgmr.msra.gmra.mxu1 %vm1389_vm11, %v8077_v8 }
 0x748   :  { %6535 = vmatprep.mubr.msk.f32.mxu1 %vm7550_vm0, %v7548_v0 }
 0x74b   :  { %6536 = vmatmul.mubr.msk.f32.gmra.mxu1 %vm1389_vm11, %v8084_v9 }
 0x74c   :  { %6538 = vmatprep.mubr.msk.f32.mxu1 %vm7550_vm0, %v7548_v0 }
 0x74f   :  { %6539 = vmatmul.mubr.msk.f32.gmra.mxu1 %vm1389_vm11, %v8091_v13 }
 0x750   :  { %6541 = vmatprep.mubr.msk.f32.mxu1 %vm7550_vm0, %v7548_v0 }
 0x753   :  { %6542 = vmatmul.mubr.msk.f32.gmra.mxu1 %vm1389_vm11, %v8098_v15 }
 0x754   :  { %6544 = vmatprep.mubr.msk.f32.mxu1 %vm7550_vm0, %v7548_v0 }
 0x757   :  { %6545 = vmatmul.mubr.msk.f32.gmra.mxu1 %vm1389_vm11, %v8105_v16 }
 0x758   :  { %6570 = vmatprep.mubr.msk.f32.mxu1 %vm7550_vm0, %v7548_v0 }
 0x7df   :  { %v8127_v19 = vpop.f32.mrf.mxu1 }
 0x7e1   :  { %v6446_v21 = vpop.f32.mrf.mxu1 }
 0x7e2   :  { %v8189_v21 = vld [vmem:[%s8186_s16 + $0x8] sm:$0xff] }
 0x7e3   :  { %v8129_v22 = vpop.f32.mrf.mxu1  ;;  %6567 = vmatpush3.msra.mxu1 %v8189_v21 }
 0x7e4   :  { %6568 = vmatprep.subr.mxu1 %v7548_v0 }
 0x7e5   :  { %v6449_v23 = vpop.f32.mrf.mxu1 }
 0x7e6   :  { %v8194_v23 = vld [vmem:[%s8186_s16] sm:$0xff] }
 0x7e7   :  { %v8131_v24 = vpop.f32.mrf.mxu1  ;;  %6569 = vmatpush3.msra.mxu1 %v8194_v23 }
 0x7e8   :  { %6610 = vmatprep.subr.mxu1 %v7548_v0 }
 0x7e9   :  { %v6452_v25 = vpop.f32.mrf.mxu1 }
 0x7eb   :  { %v8138_v26 = vpop.f32.mrf.mxu1 }
 0x7ed   :  { %v6455_v28 = vpop.f32.mrf.mxu1 }
 0x7ef   :  { %v8140_v29 = vpop.f32.mrf.mxu1 }
 0x7f1   :  { %v6458_v30 = vpop.f32.mrf.mxu1 }
 0x7f3   :  { %v1792_v32 = vpop.f32.mrf.mxu1 }
 0x7f4   :  { %6508 = vmatmul.mubr.msk.f32.vlgmr.msra.gmra.mxu0 %vm164_vm2, %v1792_v32 }
 0x7f5   :  { %v6490_v34 = vpop.f32.mrf.mxu1  ;;  %6510 = vmatprep.mubr.msk.f32.mxu0 %vm7550_vm0, %v7548_v0  ;;  %6548 = vmatpush3.msk.msra.mxu0 %vm180_vm1, %v8143_v31 }
 0x7f6   :  { %6549 = vmatprep.subr.mxu0 %v7548_v0 }
 0x7f7   :  { %v1797_v35 = vpop.f32.mrf.mxu1  ;;  %6550 = vmatpush3.msra.mxu0 %v8147_v36 }
 0x7f8   :  { %6511 = vmatmul.mubr.msk.f32.gmra.mxu0 %vm164_vm2, %v1797_v35  ;;  %6585 = vmatprep.subr.mxu0 %v7548_v0 }
 0x7f9   :  { %v6493_v37 = vpop.f32.mrf.mxu1  ;;  %6513 = vmatprep.mubr.msk.f32.mxu0 %vm7550_vm0, %v7548_v0 }
 0x7fb   :  { %v1802_v20 = vpop.f32.mrf.mxu1 }
 0x7fc   :  { %6514 = vmatmul.mubr.msk.f32.gmra.mxu0 %vm164_vm2, %v1802_v20 }
 0x7fd   :  { %v6496_v46 = vpop.f32.mrf.mxu1  ;;  %6516 = vmatprep.mubr.msk.f32.mxu0 %vm7550_vm0, %v7548_v0 }
 0x7ff   :  { %v1807_v47 = vpop.f32.mrf.mxu1 }
 0x800   :  { %6517 = vmatmul.mubr.msk.f32.gmra.mxu0 %vm164_vm2, %v1807_v47  ;;  %v1688_v47 = vadd.f32 %v8019_v57, %v8127_v19 }
 0x801   :  { %v6499_v48 = vpop.f32.mrf.mxu1  ;;  %6519 = vmatprep.mubr.msk.f32.mxu0 %vm7550_vm0, %v7548_v0 }
 0x803   :  { %v1812_v49 = vpop.f32.mrf.mxu1 }
 0x804   :  { %6520 = vmatmul.mubr.msk.f32.gmra.mxu0 %vm164_vm2, %v1812_v49 }
 0x805   :  { %v6502_v50 = vpop.f32.mrf.mxu1  ;;  %6551 = vmatprep.mubr.msk.f32.mxu0 %vm7550_vm0, %v7548_v0 }
 0x806   :  { %v8206_v50 = vld [vmem:[%s8201_s20] ss:$0 sm:$0xff] }
 0x807   :  { %v2010_v51 = vpop.f32.mrf.mxu1 }
 0x808   :  { %6552 = vmatmul.mubr.msk.f32.vlgmr.msra.gmra.mxu0 %vm164_vm2, %v2010_v51 }
 0x809   :  { %v6534_v52 = vpop.f32.mrf.mxu1  ;;  %6554 = vmatprep.mubr.msk.f32.mxu0 %vm7550_vm0, %v7548_v0 }
 0x80a   :  { %v1693_v52 = vadd.f32 %v8031_v60, %v8129_v22  ;;  %v1703_v60 = vadd.f32 %v8061_v3, %v8138_v26 }
 0x80b   :  { %v2015_v53 = vpop.f32.mrf.mxu1 }
 0x80c   :  { %6555 = vmatmul.mubr.msk.f32.gmra.mxu0 %vm164_vm2, %v2015_v53 }
 0x80d   :  { %v6537_v54 = vpop.f32.mrf.mxu1  ;;  %6557 = vmatprep.mubr.msk.f32.mxu0 %vm7550_vm0, %v7548_v0 }
 0x80f   :  { %v2020_v55 = vpop.f32.mrf.mxu1 }
 0x810   :  { %6558 = vmatmul.mubr.msk.f32.gmra.mxu0 %vm164_vm2, %v2020_v55 }
 0x811   :  { %v6540_v58 = vpop.f32.mrf.mxu1  ;;  %6560 = vmatprep.mubr.msk.f32.mxu0 %vm7550_vm0, %v7548_v0 }
 0x813   :  { %v2025_v61 = vpop.f32.mrf.mxu1 }
 0x814   :  { %6561 = vmatmul.mubr.msk.f32.gmra.mxu0 %vm164_vm2, %v2025_v61 }
 0x815   :  { %v6543_v1 = vpop.f32.mrf.mxu1  ;;  %6563 = vmatprep.mubr.msk.f32.mxu0 %vm7550_vm0, %v7548_v0 }
 0x816   :  { %v1698_v1 = vadd.f32 %v8044_v63, %v8131_v24  ;;  %v1708_v24 = vadd.f32 %v8070_v6, %v8140_v29 }
 0x817   :  { %v2030_v4 = vpop.f32.mrf.mxu1 }
 0x818   :  { %6564 = vmatmul.mubr.msk.f32.gmra.mxu0 %vm164_vm2, %v2030_v4 }
 0x819   :  { %v6546_v7 = vpop.f32.mrf.mxu1  ;;  %6595 = vmatprep.mubr.msk.f32.mxu0 %vm7550_vm0, %v7548_v0 }
 0x8b4   :  { %v1900_v25 = vpop.f32.mrf.mxu0 }
 0x8b5   :  { %v1924_v49 = vadd.f32 %v1900_v25, %v1688_v47 }
 0x8b6   :  { %v6509_v28 = vpop.f32.mrf.mxu0 }
 0x8b8   :  { %v1905_v30 = vpop.f32.mrf.mxu0 }
 0x8b9   :  { %v1925_v55 = vadd.f32 %v1905_v30, %v1693_v52 }
 0x8ba   :  { %v6512_v32 = vpop.f32.mrf.mxu0 }
 0x8bc   :  { %v1910_v34 = vpop.f32.mrf.mxu0 }
 0x8bd   :  { %v1926_v19 = vadd.f32 %v1910_v34, %v1698_v1 }
 0x8be   :  { %v6515_v35 = vpop.f32.mrf.mxu0 }
 0x8c0   :  { %v1915_v37 = vpop.f32.mrf.mxu0 }
 0x8c2   :  { %v6518_v20 = vpop.f32.mrf.mxu0 }
 0x8c3   :  { %v1927_v20 = vadd.f32 %v1915_v37, %v1703_v60 }
 0x8c4   :  { %v1920_v46 = vpop.f32.mrf.mxu0 }
 0x8c5   :  { %v1928_v52 = vadd.f32 %v1920_v46, %v1708_v24 }
 0x8c6   :  { %v6521_v48 = vpop.f32.mrf.mxu0 }
 0x8c8   :  { %v2118_v51 = vpop.f32.mrf.mxu0 }
 0x8c9   :  { %v2142_v53 = vadd.f32 %v2118_v51, %v1924_v49 }
 0x8ca   :  { %v6553_v54 = vpop.f32.mrf.mxu0 }
 0x8cb   :  { %v2153_v58 = vadd.f32 %v8206_v50, %v2142_v53 }
 0x8cc   :  { %v2123_v61 = vpop.f32.mrf.mxu0 }
 0x8cd   :  { %v2163_v4 = vmin.f32 %v2153_v58, 20.0  ;;  %v2143_v7 = vadd.f32 %v2123_v61, %v1925_v55  ;;  %vm2158_vm13 = vcmp.gt.f32.partialorder %v2153_v58, 20.0 }
 0x8ce   :  { %v6556_v57 = vpop.f32.mrf.mxu0 }
 0x8cf   :  { %v2168_v25 = vmul.f32 1.442695, %v2163_v4  ;;  %v2154_v28 = vadd.f32 %v8206_v50, %v2143_v7 }
 0x8d0   :  { %v2128_v32 = vpop.f32.mrf.mxu0 }
 0x8d1   :  { %7381 = vpow2.f32 %v2168_v25  ;;  %v2164_v22 = vmin.f32 %v2154_v28, 20.0  ;;  %v2144_v30 = vadd.f32 %v2128_v32, %v1926_v19  ;;  %vm2159_vm14 = vcmp.gt.f32.partialorder %v2154_v28, 20.0 }
 0x8d2   :  { %v6559_v35 = vpop.f32.mrf.mxu0 }
 0x8d3   :  { %v2170_v47 = vmul.f32 1.442695, %v2164_v22  ;;  %v2155_v48 = vadd.f32 %v8206_v50, %v2144_v30 }
 0x8d4   :  { %v2133_v63 = vpop.f32.mrf.mxu0 }
 0x8d5   :  { %7383 = vpow2.f32 %v2170_v47  ;;  %v2165_v34 = vmin.f32 %v2155_v48, 20.0  ;;  %v2145_v49 = vadd.f32 %v2133_v63, %v1927_v20  ;;  %vm2160_vm15 = vcmp.gt.f32.partialorder %v2155_v48, 20.0 }
 0x8d6   :  { %v6562_v51 = vpop.f32.mrf.mxu0 }
 0x8d7   :  { %v2172_v53 = vmul.f32 1.442695, %v2165_v34  ;;  %v2156_v3 = vadd.f32 %v8206_v50, %v2145_v49 }
 0x8d8   :  { %v2138_v26 = vpop.f32.mrf.mxu0 }
 0x8d9   :  { %7385 = vpow2.f32 %v2172_v53  ;;  %v2166_v54 = vmin.f32 %v2156_v3, 20.0  ;;  %v2146_v55 = vadd.f32 %v2138_v26, %v1928_v52  ;;  %vm2161_vm4 = vcmp.gt.f32.partialorder %v2156_v3, 20.0 }
 0x8da   :  { %v6565_v37 = vpop.f32.mrf.mxu0 }
 0x8db   :  { %v2174_v61 = vmul.f32 1.442695, %v2166_v54  ;;  %v2157_v1 = vadd.f32 %v8206_v50, %v2146_v55 }
 0x8dd   :  { %7387 = vpow2.f32 %v2174_v61  ;;  %v2167_v4 = vmin.f32 %v2157_v1, 20.0  ;;  %vm2162_vm5 = vcmp.gt.f32.partialorder %v2157_v1, 20.0 }
 0x8de   :  { %v7382_v7 = vpop.eup %7381 }
 0x8df   :  { %v2178_v6 = vadd.f32 1.0, %v7382_v7  ;;  %v2176_v29 = vmul.f32 1.442695, %v2167_v4  ;;  %v8247_v7 = vld [vmem:[%s8244_s26] ss:$0 sm:$0xff] }
 0x8e1   :  { %7389 = vlog2.f32 %v2178_v6 }
 0x8e2   :  { %v7384_v57 = vpop.eup %7383  ;;  %7391 = vpow2.f32 %v2176_v29 }
 0x8e3   :  { %v2179_v46 = vadd.f32 1.0, %v7384_v57 }
 0x8e5   :  { %7393 = vlog2.f32 %v2179_v46 }
 0x8e6   :  { %v7386_v19 = vpop.eup %7385 }
 0x8e7   :  { %v2180_v25 = vadd.f32 1.0, %v7386_v19 }
 0x8e9   :  { %7395 = vlog2.f32 %v2180_v25 }
 0x8ea   :  { %v7388_v32 = vpop.eup %7387 }
 0x8eb   :  { %v2181_v60 = vadd.f32 1.0, %v7388_v32 }
 0x8ed   :  { %7397 = vlog2.f32 %v2181_v60 }
 0x8ee   :  { %v7390_v22 = vpop.eup %7389 }
 0x8ef   :  { %v7392_v30 = vpop.eup %7391  ;;  %v2184_v35 = vmul.f32 0.6931472, %v7390_v22 }
 0x8f0   :  { %v2182_v20 = vadd.f32 1.0, %v7392_v30 }
 0x8f1   :  { %v2193_v47 = vsel %vm2158_vm13, %v2153_v58, %v2184_v35 }
 0x8f2   :  { %v7394_v63 = vpop.eup %7393  ;;  %6571 = vmatmul.mubr.msk.f32.vlgmr.msra.gmra.mxu1 %vm2204_vm12, %v2193_v47  ;;  %7399 = vlog2.f32 %v2182_v20 }
 0x8f3   :  { %6573 = vmatprep.mubr.msk.f32.mxu1 %vm7550_vm0, %v7548_v0  ;;  %v2186_v24 = vmul.f32 0.6931472, %v7394_v63  ;;  %6611 = vmatpush3.msk.msra.mxu1 %vm180_vm1, %v7869_v11 }
 0x8f4   :  { %6612 = vmatprep.subr.mxu1 %v7548_v0 }
 0x8f5   :  { %v2194_v34 = vsel %vm2159_vm14, %v2154_v28, %v2186_v24  ;;  %6613 = vmatpush3.msra.mxu1 %v7872_v12 }
 0x8f6   :  { %v7396_v49 = vpop.eup %7395  ;;  %6574 = vmatmul.mubr.msk.f32.gmra.mxu1 %vm2204_vm12, %v2194_v34  ;;  %6648 = vmatprep.subr.mxu1 %v7548_v0 }
 0x8f7   :  { %6576 = vmatprep.mubr.msk.f32.mxu1 %vm7550_vm0, %v7548_v0  ;;  %v2188_v58 = vmul.f32 0.6931472, %v7396_v49 }
 0x8f9   :  { %v2195_v51 = vsel %vm2160_vm15, %v2155_v48, %v2188_v58 }
 0x8fa   :  { %v7398_v52 = vpop.eup %7397  ;;  %6577 = vmatmul.mubr.msk.f32.gmra.mxu1 %vm2204_vm12, %v2195_v51 }
 0x8fb   :  { %6579 = vmatprep.mubr.msk.f32.mxu1 %vm7550_vm0, %v7548_v0  ;;  %v2190_v11 = vmul.f32 0.6931472, %v7398_v52 }
 0x8fd   :  { %v2196_v12 = vsel %vm2161_vm4, %v2156_v3, %v2190_v11 }
 0x8fe   :  { %6580 = vmatmul.mubr.msk.f32.gmra.mxu1 %vm2204_vm12, %v2196_v12 }
 0x8ff   :  { %v7400_v28 = vpop.eup %7399  ;;  %6582 = vmatprep.mubr.msk.f32.mxu1 %vm7550_vm0, %v7548_v0 }
 0x900   :  { %v2192_v53 = vmul.f32 0.6931472, %v7400_v28 }
 0x902   :  { %v2197_v26 = vsel %vm2162_vm5, %v2157_v1, %v2192_v53 }
 0x903   :  { %6583 = vmatmul.mubr.msk.f32.gmra.mxu1 %vm2204_vm12, %v2197_v26 }
 0x904   :  { %6614 = vmatprep.mubr.msk.f32.mxu1 %vm7550_vm0, %v7548_v0 }
 0x9b2   :  { %v2286_v48 = vpop.f32.mrf.mxu1 }
 0x9b3   :  { %v2287_v22 = vadd.f32 %v8247_v7, %v2286_v48 }
 0x9b4   :  { %v6572_v54 = vpop.f32.mrf.mxu1 }
 0x9b5   :  { %v2310_v63 = vmul.f32 0.25, %v2287_v22 }
 0x9b6   :  { %v2291_v55 = vpop.f32.mrf.mxu1 }
 0x9b7   :  { %v2292_v25 = vadd.f32 %v8247_v7, %v2291_v55 }
 0x9b8   :  { %v6575_v37 = vpop.f32.mrf.mxu1 }
 0x9b9   :  { %v2311_v20 = vmul.f32 0.25, %v2292_v25 }
 0x9ba   :  { %v2296_v3 = vpop.f32.mrf.mxu1 }
 0x9bb   :  { %v2297_v57 = vadd.f32 %v8247_v7, %v2296_v3  ;;  %v8268_v34 = vadd.f32 %v2311_v20, %v7910_v39 }
 0x9bc   :  { %v6578_v61 = vpop.f32.mrf.mxu1 }
 0x9bd   :  { %v2312_v30 = vmul.f32 0.25, %v2297_v57 }
 0x9be   :  { %v2301_v4 = vpop.f32.mrf.mxu1 }
 0x9bf   :  { %v2302_v6 = vadd.f32 %v8247_v7, %v2301_v4  ;;  %v8263_v24 = vadd.f32 %v2312_v30, %v7905_v38 }
 0x9c0   :  { %v6581_v1 = vpop.f32.mrf.mxu1 }
 0x9c1   :  { %v2313_v32 = vmul.f32 0.25, %v2302_v6 }
 0x9c3   :  { %v2306_v29 = vpop.f32.mrf.mxu1  ;;  %v8258_v47 = vadd.f32 %v2313_v32, %v7900_v27 }
 0x9c4   :  { %v2307_v46 = vadd.f32 %v8247_v7, %v2306_v29 }
 0x9c5   :  { %v6584_v19 = vpop.f32.mrf.mxu1 }
 0x9c6   :  { %v2314_v60 = vmul.f32 0.25, %v2307_v46 }
 0x9c8   :  { %v8255_v35 = vadd.f32 %v2314_v60, %v7887_v33  ;;  %v8273_v33 = vadd.f32 %v2310_v63, %v7914_v40 }
 0x9ca   :  { %6586 = vmatpush3.msra.mxu0 %v8255_v35 }
 0x9cb   :  { %6587 = vmatprep.subr.mxu0 %v7548_v0 }
 0x9cc   :  { %6588 = vmatpush3.msra.mxu0 %v8258_v47 }
 0x9cd   :  { %6589 = vmatprep.subr.mxu0 %v7548_v0 }
 0x9ce   :  { %6590 = vmatpush3.msra.mxu0 %v8263_v24 }
 0x9cf   :  { %6591 = vmatprep.subr.mxu0 %v7548_v0 }
 0x9d0   :  { %6592 = vmatpush3.msra.mxu0 %v8268_v34 }
 0x9d1   :  { %6593 = vmatprep.subr.mxu0 %v7548_v0 }
 0x9d2   :  { %6594 = vmatpush3.msra.mxu0 %v8273_v33 }
 0x9d3   :  { %6596 = vmatmul.mubr.msk.f32.vlgmr.msra.gmra.mxu0 %vm1389_vm11, %v7918_v14  ;;  %6629 = vmatprep.subr.mxu0 %v7548_v0 }
 0x9d4   :  { %6598 = vmatprep.mubr.msk.f32.mxu0 %vm7550_vm0, %v7548_v0  ;;  %6630 = vmatpush3.msk.msra.mxu0 %vm180_vm1, %v7922_v41 }
 0x9d5   :  { %6631 = vmatprep.subr.mxu0 %v7548_v0 }
 0x9d6   :  { %6632 = vmatpush3.msra.mxu0 %v7929_v10 }
 0x9d7   :  { %6599 = vmatmul.mubr.msk.f32.gmra.mxu0 %vm1389_vm11, %v7934_v42  ;;  %6673 = vmatprep.subr.mxu0 %v7548_v0 }
 0x9d8   :  { %6601 = vmatprep.mubr.msk.f32.mxu0 %vm7550_vm0, %v7548_v0 }
 0x9db   :  { %6602 = vmatmul.mubr.msk.f32.gmra.mxu0 %vm1389_vm11, %v7946_v43 }
 0x9dc   :  { %6604 = vmatprep.mubr.msk.f32.mxu0 %vm7550_vm0, %v7548_v0 }
 0x9df   :  { %6605 = vmatmul.mubr.msk.f32.gmra.mxu0 %vm1389_vm11, %v7953_v44 }
 0x9e0   :  { %6607 = vmatprep.mubr.msk.f32.mxu0 %vm7550_vm0, %v7548_v0 }
 0x9e3   :  { %6608 = vmatmul.mubr.msk.f32.gmra.mxu0 %vm1389_vm11, %v7960_v45 }
 0x9e4   :  { %6633 = vmatprep.mubr.msk.f32.mxu0 %vm7550_vm0, %v7548_v0 }
 0x9e7   :  { %6634 = vmatmul.mubr.msk.f32.vlgmr.msra.gmra.mxu0 %vm164_vm2, %v8273_v33 }
 0x9e8   :  { %6636 = vmatprep.mubr.msk.f32.mxu0 %vm7550_vm0, %v7548_v0  ;;  %6674 = vmatpush3.msk.msra.mxu0 %vm180_vm1, %v8117_v17 }
 0x9e9   :  { %6675 = vmatprep.subr.mxu0 %v7548_v0 }
 0x9ea   :  { %6676 = vmatpush3.msra.mxu0 %v8123_v18 }
 0x9eb   :  { %6637 = vmatmul.mubr.msk.f32.gmra.mxu0 %vm164_vm2, %v8268_v34  ;;  %6717 = vmatprep.subr.mxu0 %v7548_v0 }
 0x9ec   :  { %6639 = vmatprep.mubr.msk.f32.mxu0 %vm7550_vm0, %v7548_v0 }
 0x9ef   :  { %6640 = vmatmul.mubr.msk.f32.gmra.mxu0 %vm164_vm2, %v8263_v24 }
 0x9f0   :  { %6642 = vmatprep.mubr.msk.f32.mxu0 %vm7550_vm0, %v7548_v0 }
 0x9f3   :  { %6643 = vmatmul.mubr.msk.f32.gmra.mxu0 %vm164_vm2, %v8258_v47 }
 0x9f4   :  { %6645 = vmatprep.mubr.msk.f32.mxu0 %vm7550_vm0, %v7548_v0 }
 0x9f7   :  { %6646 = vmatmul.mubr.msk.f32.gmra.mxu0 %vm164_vm2, %v8255_v35 }
 0x9f8   :  { %6677 = vmatprep.mubr.msk.f32.mxu0 %vm7550_vm0, %v7548_v0 }
 0xa93   :  { %v2386_v27 = vpop.f32.mrf.mxu0 }
 0xa94   :  { %6615 = vmatmul.mubr.msk.f32.vlgmr.msra.gmra.mxu1 %vm164_vm2, %v2386_v27 }
 0xa95   :  { %6649 = vmatpush3.msra.mxu1 %v8255_v35  ;;  %v6597_v38 = vpop.f32.mrf.mxu0  ;;  %6617 = vmatprep.mubr.msk.f32.mxu1 %vm7550_vm0, %v7548_v0 }
 0xa96   :  { %6650 = vmatprep.subr.mxu1 %v7548_v0 }
 0xa97   :  { %6651 = vmatpush3.msra.mxu1 %v8258_v47  ;;  %v2391_v39 = vpop.f32.mrf.mxu0 }
 0xa98   :  { %6652 = vmatprep.subr.mxu1 %v7548_v0  ;;  %6618 = vmatmul.mubr.msk.f32.gmra.mxu1 %vm164_vm2, %v2391_v39 }
 0xa99   :  { %6653 = vmatpush3.msra.mxu1 %v8263_v24  ;;  %v6600_v40 = vpop.f32.mrf.mxu0  ;;  %6620 = vmatprep.mubr.msk.f32.mxu1 %vm7550_vm0, %v7548_v0 }
 0xa9a   :  { %6654 = vmatprep.subr.mxu1 %v7548_v0 }
 0xa9b   :  { %6655 = vmatpush3.msra.mxu1 %v8268_v34  ;;  %v2396_v14 = vpop.f32.mrf.mxu0 }
 0xa9c   :  { %6656 = vmatprep.subr.mxu1 %v7548_v0  ;;  %6621 = vmatmul.mubr.msk.f32.gmra.mxu1 %vm164_vm2, %v2396_v14 }
 0xa9d   :  { %6657 = vmatpush3.msra.mxu1 %v8273_v33  ;;  %v6603_v41 = vpop.f32.mrf.mxu0  ;;  %6623 = vmatprep.mubr.msk.f32.mxu1 %vm7550_vm0, %v7548_v0 }
 0xa9e   :  { %6692 = vmatprep.subr.mxu1 %v7548_v0 }
 0xa9f   :  { %v2401_v10 = vpop.f32.mrf.mxu0 }
 0xaa0   :  { %6624 = vmatmul.mubr.msk.f32.gmra.mxu1 %vm164_vm2, %v2401_v10 }
 0xaa1   :  { %v6606_v42 = vpop.f32.mrf.mxu0  ;;  %6626 = vmatprep.mubr.msk.f32.mxu1 %vm7550_vm0, %v7548_v0 }
 0xaa3   :  { %v2406_v43 = vpop.f32.mrf.mxu0 }
 0xaa4   :  { %6627 = vmatmul.mubr.msk.f32.gmra.mxu1 %vm164_vm2, %v2406_v43 }
 0xaa5   :  { %v6609_v44 = vpop.f32.mrf.mxu0  ;;  %6658 = vmatprep.mubr.msk.f32.mxu1 %vm7550_vm0, %v7548_v0 }
 0xaa7   :  { %v8354_v45 = vpop.f32.mrf.mxu0 }
 0xaa8   :  { %6659 = vmatmul.mubr.msk.f32.vlgmr.msra.gmra.mxu1 %vm1389_vm11, %v8017_v56 }
 0xaa9   :  { %6693 = vmatpush3.msra.mxu1 %v8255_v35  ;;  %v6635_v17 = vpop.f32.mrf.mxu0  ;;  %6661 = vmatprep.mubr.msk.f32.mxu1 %vm7550_vm0, %v7548_v0 }
 0xaaa   :  { %6694 = vmatprep.subr.mxu1 %v7548_v0 }
 0xaab   :  { %6695 = vmatpush3.msra.mxu1 %v8258_v47  ;;  %v8363_v18 = vpop.f32.mrf.mxu0 }
 0xaac   :  { %6696 = vmatprep.subr.mxu1 %v7548_v0  ;;  %6662 = vmatmul.mubr.msk.f32.gmra.mxu1 %vm1389_vm11, %v8027_v59 }
 0xaad   :  { %6697 = vmatpush3.msra.mxu1 %v8263_v24  ;;  %v6638_v56 = vpop.f32.mrf.mxu0  ;;  %6664 = vmatprep.mubr.msk.f32.mxu1 %vm7550_vm0, %v7548_v0 }
 0xaae   :  { %6698 = vmatprep.subr.mxu1 %v7548_v0 }
 0xaaf   :  { %6699 = vmatpush3.msra.mxu1 %v8268_v34  ;;  %v8373_v49 = vpop.f32.mrf.mxu0 }
 0xab0   :  { %6700 = vmatprep.subr.mxu1 %v7548_v0  ;;  %6665 = vmatmul.mubr.msk.f32.gmra.mxu1 %vm1389_vm11, %v8040_v62 }
 0xab1   :  { %6701 = vmatpush3.msra.mxu1 %v8273_v33  ;;  %v6641_v59 = vpop.f32.mrf.mxu0  ;;  %6667 = vmatprep.mubr.msk.f32.mxu1 %vm7550_vm0, %v7548_v0 }
 0xab2   :  { %6736 = vmatprep.subr.mxu1 %v7548_v0 }
 0xab3   :  { %v8382_v58 = vpop.f32.mrf.mxu0 }
 0xab4   :  { %6668 = vmatmul.mubr.msk.f32.gmra.mxu1 %vm1389_vm11, %v8053_v2 }
 0xab5   :  { %v6644_v51 = vpop.f32.mrf.mxu0  ;;  %6670 = vmatprep.mubr.msk.f32.mxu1 %vm7550_vm0, %v7548_v0 }
 0xab7   :  { %v8388_v52 = vpop.f32.mrf.mxu0 }
 0xab8   :  { %6671 = vmatmul.mubr.msk.f32.gmra.mxu1 %vm1389_vm11, %v8068_v5 }
 0xab9   :  { %v6647_v62 = vpop.f32.mrf.mxu0  ;;  %6702 = vmatprep.mubr.msk.f32.mxu1 %vm7550_vm0, %v7548_v0 }
 0xabc   :  { %6703 = vmatmul.mubr.msk.f32.vlgmr.msra.gmra.mxu1 %vm1389_vm11, %v8077_v8 }
 0xabd   :  { %6705 = vmatprep.mubr.msk.f32.mxu1 %vm7550_vm0, %v7548_v0  ;;  %6737 = vmatpush3.msra.mxu1 %v8189_v21 }
 0xabe   :  { %6738 = vmatprep.subr.mxu1 %v7548_v0 }
 0xabf   :  { %6739 = vmatpush3.msra.mxu1 %v8194_v23 }
 0xac0   :  { %6706 = vmatmul.mubr.msk.f32.gmra.mxu1 %vm1389_vm11, %v8084_v9  ;;  %6780 = vmatprep.subr.mxu1 %v7548_v0 }
 0xac1   :  { %6708 = vmatprep.mubr.msk.f32.mxu1 %vm7550_vm0, %v7548_v0 }
 0xac4   :  { %6709 = vmatmul.mubr.msk.f32.gmra.mxu1 %vm1389_vm11, %v8091_v13 }
 0xac5   :  { %6711 = vmatprep.mubr.msk.f32.mxu1 %vm7550_vm0, %v7548_v0 }
 0xac8   :  { %6712 = vmatmul.mubr.msk.f32.gmra.mxu1 %vm1389_vm11, %v8098_v15 }
 0xac9   :  { %6714 = vmatprep.mubr.msk.f32.mxu1 %vm7550_vm0, %v7548_v0 }
 0xacc   :  { %6715 = vmatmul.mubr.msk.f32.gmra.mxu1 %vm1389_vm11, %v8105_v16 }
 0xacd   :  { %6740 = vmatprep.mubr.msk.f32.mxu1 %vm7550_vm0, %v7548_v0 }
 0xb54   :  { %v8418_v2 = vpop.f32.mrf.mxu1 }
 0xb55   :  { %v2597_v40 = vadd.f32 %v8354_v45, %v8418_v2 }
 0xb56   :  { %v6616_v5 = vpop.f32.mrf.mxu1 }
 0xb58   :  { %v8420_v8 = vpop.f32.mrf.mxu1 }
 0xb59   :  { %v2602_v42 = vadd.f32 %v8363_v18, %v8420_v8 }
 0xb5a   :  { %v6619_v9 = vpop.f32.mrf.mxu1 }
 0xb5c   :  { %v8422_v13 = vpop.f32.mrf.mxu1 }
 0xb5d   :  { %v2607_v51 = vadd.f32 %v8373_v49, %v8422_v13 }
 0xb5e   :  { %v6622_v21 = vpop.f32.mrf.mxu1 }
 0xb60   :  { %v8424_v23 = vpop.f32.mrf.mxu1 }
 0xb61   :  { %v2612_v18 = vadd.f32 %v8382_v58, %v8424_v23 }
 0xb62   :  { %v6625_v15 = vpop.f32.mrf.mxu1 }
 0xb64   :  { %v8426_v11 = vpop.f32.mrf.mxu1 }
 0xb65   :  { %v2617_v13 = vadd.f32 %v8388_v52, %v8426_v11 }
 0xb66   :  { %v6628_v12 = vpop.f32.mrf.mxu1 }
 0xb68   :  { %v2686_v28 = vpop.f32.mrf.mxu1 }
 0xb69   :  { %6678 = vmatmul.mubr.msk.f32.vlgmr.msra.gmra.mxu0 %vm164_vm2, %v2686_v28 }
 0xb6a   :  { %v6660_v16 = vpop.f32.mrf.mxu1  ;;  %6680 = vmatprep.mubr.msk.f32.mxu0 %vm7550_vm0, %v7548_v0  ;;  %6718 = vmatpush3.msk.msra.mxu0 %vm180_vm1, %v8143_v31 }
 0xb6b   :  { %6719 = vmatprep.subr.mxu0 %v7548_v0 }
 0xb6c   :  { %v2691_v53 = vpop.f32.mrf.mxu1  ;;  %6720 = vmatpush3.msra.mxu0 %v8147_v36 }
 0xb6d   :  { %6681 = vmatmul.mubr.msk.f32.gmra.mxu0 %vm164_vm2, %v2691_v53  ;;  %6755 = vmatprep.subr.mxu0 %v7548_v0 }
 0xb6e   :  { %v6663_v26 = vpop.f32.mrf.mxu1  ;;  %6683 = vmatprep.mubr.msk.f32.mxu0 %vm7550_vm0, %v7548_v0 }
 0xb70   :  { %v2696_v48 = vpop.f32.mrf.mxu1 }
 0xb71   :  { %6684 = vmatmul.mubr.msk.f32.gmra.mxu0 %vm164_vm2, %v2696_v48 }
 0xb72   :  { %v6666_v54 = vpop.f32.mrf.mxu1  ;;  %6686 = vmatprep.mubr.msk.f32.mxu0 %vm7550_vm0, %v7548_v0 }
 0xb74   :  { %v2701_v31 = vpop.f32.mrf.mxu1 }
 0xb75   :  { %6687 = vmatmul.mubr.msk.f32.gmra.mxu0 %vm164_vm2, %v2701_v31 }
 0xb76   :  { %v6669_v55 = vpop.f32.mrf.mxu1  ;;  %6689 = vmatprep.mubr.msk.f32.mxu0 %vm7550_vm0, %v7548_v0 }
 0xb78   :  { %v2706_v36 = vpop.f32.mrf.mxu1 }
 0xb79   :  { %6690 = vmatmul.mubr.msk.f32.gmra.mxu0 %vm164_vm2, %v2706_v36 }
 0xb7a   :  { %v6672_v37 = vpop.f32.mrf.mxu1  ;;  %6721 = vmatprep.mubr.msk.f32.mxu0 %vm7550_vm0, %v7548_v0 }
 0xb7c   :  { %v2886_v3 = vpop.f32.mrf.mxu1 }
 0xb7d   :  { %6722 = vmatmul.mubr.msk.f32.vlgmr.msra.gmra.mxu0 %vm164_vm2, %v2886_v3 }
 0xb7e   :  { %v6704_v61 = vpop.f32.mrf.mxu1  ;;  %6724 = vmatprep.mubr.msk.f32.mxu0 %vm7550_vm0, %v7548_v0 }
 0xb80   :  { %v2891_v4 = vpop.f32.mrf.mxu1 }
 0xb81   :  { %6725 = vmatmul.mubr.msk.f32.gmra.mxu0 %vm164_vm2, %v2891_v4 }
 0xb82   :  { %v6707_v1 = vpop.f32.mrf.mxu1  ;;  %6727 = vmatprep.mubr.msk.f32.mxu0 %vm7550_vm0, %v7548_v0 }
 0xb84   :  { %v2896_v6 = vpop.f32.mrf.mxu1 }
 0xb85   :  { %6728 = vmatmul.mubr.msk.f32.gmra.mxu0 %vm164_vm2, %v2896_v6 }
 0xb86   :  { %v6710_v29 = vpop.f32.mrf.mxu1  ;;  %6730 = vmatprep.mubr.msk.f32.mxu0 %vm7550_vm0, %v7548_v0 }
 0xb88   :  { %v2901_v57 = vpop.f32.mrf.mxu1 }
 0xb89   :  { %6731 = vmatmul.mubr.msk.f32.gmra.mxu0 %vm164_vm2, %v2901_v57 }
 0xb8a   :  { %v6713_v46 = vpop.f32.mrf.mxu1  ;;  %6733 = vmatprep.mubr.msk.f32.mxu0 %vm7550_vm0, %v7548_v0 }
 0xb8c   :  { %v2906_v19 = vpop.f32.mrf.mxu1 }
 0xb8d   :  { %6734 = vmatmul.mubr.msk.f32.gmra.mxu0 %vm164_vm2, %v2906_v19 }
 0xb8e   :  { %v6716_v25 = vpop.f32.mrf.mxu1  ;;  %6765 = vmatprep.mubr.msk.f32.mxu0 %vm7550_vm0, %v7548_v0 }
 0xc29   :  { %v2791_v32 = vpop.f32.mrf.mxu0 }
 0xc2a   :  { %v2815_v41 = vadd.f32 %v2791_v32, %v2597_v40 }
 0xc2b   :  { %v6679_v60 = vpop.f32.mrf.mxu0 }
 0xc2d   :  { %v2796_v22 = vpop.f32.mrf.mxu0 }
 0xc2e   :  { %v2816_v17 = vadd.f32 %v2796_v22, %v2602_v42 }
 0xc2f   :  { %v6682_v30 = vpop.f32.mrf.mxu0 }
 0xc31   :  { %v2801_v20 = vpop.f32.mrf.mxu0 }
 0xc32   :  { %v2817_v21 = vadd.f32 %v2801_v20, %v2607_v51 }
 0xc33   :  { %v6685_v63 = vpop.f32.mrf.mxu0 }
 0xc35   :  { %v2806_v27 = vpop.f32.mrf.mxu0 }
 0xc36   :  { %v2818_v16 = vadd.f32 %v2806_v27, %v2612_v18 }
 0xc37   :  { %v6688_v38 = vpop.f32.mrf.mxu0 }
 0xc39   :  { %v2811_v39 = vpop.f32.mrf.mxu0 }
 0xc3a   :  { %v2819_v55 = vadd.f32 %v2811_v39, %v2617_v13  ;;  %v8482_v39 = vld [vmem:[%s7866_s9 + $0x8] sm:$0xf] }
 0xc3b   :  { %v6691_v14 = vpop.f32.mrf.mxu0 }
 0xc3c   :  { %v8488_v14 = vld [vmem:[%s7866_s9] sm:$0xff]  ;;  %s7577_s9 = smov 28  }
 0xc3d   :  { %v2991_v10 = vpop.f32.mrf.mxu0  ;;  %s9045_s27 = sld [smem:[%s9199_s0 + %s7577_s9]]  }
 0xc3e   :  { %v3015_v43 = vadd.f32 %v2991_v10, %v2815_v41 }
 0xc3f   :  { %v6723_v44 = vpop.f32.mrf.mxu0 }
 0xc40   :  { %v3020_v56 = vadd.f32 %v8206_v50, %v3015_v43 }
 0xc41   :  { %v2996_v59 = vpop.f32.mrf.mxu0 }
 0xc42   :  { %v3030_v62 = vmin.f32 %v3020_v56, 20.0  ;;  %v3016_v5 = vadd.f32 %v2996_v59, %v2816_v17  ;;  %vm3025_vm6 = vcmp.gt.f32.partialorder %v3020_v56, 20.0 }
 0xc43   :  { %v6726_v9 = vpop.f32.mrf.mxu0 }
 0xc44   :  { %v3035_v45 = vmul.f32 1.442695, %v3030_v62  ;;  %v3021_v2 = vadd.f32 %v8206_v50, %v3016_v5 }
 0xc45   :  { %v3001_v15 = vpop.f32.mrf.mxu0 }
 0xc46   :  { %7401 = vpow2.f32 %v3035_v45  ;;  %v3031_v8 = vmin.f32 %v3021_v2, 20.0  ;;  %v3017_v12 = vadd.f32 %v3001_v15, %v2817_v21  ;;  %vm3026_vm7 = vcmp.gt.f32.partialorder %v3021_v2, 20.0 }
 0xc47   :  { %v6729_v28 = vpop.f32.mrf.mxu0 }
 0xc48   :  { %v3037_v53 = vmul.f32 1.442695, %v3031_v8  ;;  %v3022_v26 = vadd.f32 %v8206_v50, %v3017_v12 }
 0xc49   :  { %v3006_v49 = vpop.f32.mrf.mxu0 }
 0xc4a   :  { %7403 = vpow2.f32 %v3037_v53  ;;  %v3032_v48 = vmin.f32 %v3022_v26, 20.0  ;;  %v3018_v54 = vadd.f32 %v3006_v49, %v2818_v16  ;;  %vm3027_vm8 = vcmp.gt.f32.partialorder %v3022_v26, 20.0 }
 0xc4b   :  { %v6732_v31 = vpop.f32.mrf.mxu0 }
 0xc4c   :  { %v3039_v36 = vmul.f32 1.442695, %v3032_v48  ;;  %v3023_v58 = vadd.f32 %v8206_v50, %v3018_v54 }
 0xc4d   :  { %v3011_v23 = vpop.f32.mrf.mxu0 }
 0xc4e   :  { %7405 = vpow2.f32 %v3039_v36  ;;  %v3033_v37 = vmin.f32 %v3023_v58, 20.0  ;;  %v3019_v3 = vadd.f32 %v3011_v23, %v2819_v55  ;;  %vm3028_vm9 = vcmp.gt.f32.partialorder %v3023_v58, 20.0 }
 0xc4f   :  { %v6735_v61 = vpop.f32.mrf.mxu0 }
 0xc50   :  { %v3041_v4 = vmul.f32 1.442695, %v3033_v37  ;;  %v3024_v1 = vadd.f32 %v8206_v50, %v3019_v3  ;;  %v8560_v37 = vld [vmem:[%s7892_s21 + $0x10] sm:$0xff]  ;;  %v8567_v3 = vld [vmem:[%s7892_s21 + $0x18] sm:$0xff]  ;;  %v8574_v61 = vld [vmem:[%s7892_s21 + $0x20] sm:$0xff] }
 0xc52   :  { %7407 = vpow2.f32 %v3041_v4  ;;  %v3034_v6 = vmin.f32 %v3024_v1, 20.0  ;;  %vm3029_vm10 = vcmp.gt.f32.partialorder %v3024_v1, 20.0  ;;  %v8585_v4 = vld [vmem:[%s8114_s7 + $0x8] sm:$0xf] }
 0xc53   :  { %v7402_v29 = vpop.eup %7401 }
 0xc54   :  { %v3045_v52 = vadd.f32 1.0, %v7402_v29  ;;  %v3043_v11 = vmul.f32 1.442695, %v3034_v6 }
 0xc56   :  { %7409 = vlog2.f32 %v3045_v52 }
 0xc57   :  { %v7404_v57 = vpop.eup %7403  ;;  %7411 = vpow2.f32 %v3043_v11 }
 0xc58   :  { %v3046_v46 = vadd.f32 1.0, %v7404_v57 }
 0xc5a   :  { %7413 = vlog2.f32 %v3046_v46 }
 0xc5b   :  { %v7406_v19 = vpop.eup %7405 }
 0xc5c   :  { %v3047_v25 = vadd.f32 1.0, %v7406_v19 }
 0xc5e   :  { %7415 = vlog2.f32 %v3047_v25 }
 0xc5f   :  { %v7408_v32 = vpop.eup %7407 }
 0xc60   :  { %v3048_v60 = vadd.f32 1.0, %v7408_v32 }
 0xc62   :  { %7417 = vlog2.f32 %v3048_v60 }
 0xc63   :  { %v7410_v22 = vpop.eup %7409 }
 0xc64   :  { %v7412_v50 = vpop.eup %7411  ;;  %v3051_v30 = vmul.f32 0.6931472, %v7410_v22 }
 0xc65   :  { %v3049_v20 = vadd.f32 1.0, %v7412_v50  ;;  %v8639_v50 = vld [vmem:[%s8007_s29] sm:$0xff] }
 0xc66   :  { %v3060_v63 = vsel %vm3025_vm6, %v3020_v56, %v3051_v30 }
 0xc67   :  { %v7414_v27 = vpop.eup %7413  ;;  %7419 = vlog2.f32 %v3049_v20  ;;  %6741 = vmatmul.mubr.msk.f32.vlgmr.msra.gmra.mxu1 %vm2204_vm12, %v3060_v63  ;;  %v8652_v63 = vld [vmem:[%s8007_s29 + $0x8] sm:$0xff] }
 0xc68   :  { %6743 = vmatprep.mubr.msk.f32.mxu1 %vm7550_vm0, %v7548_v0  ;;  %v3053_v38 = vmul.f32 0.6931472, %v7414_v27  ;;  %6781 = vmatpush3.msk.msra.mxu1 %vm180_vm1, %v8482_v39 }
 0xc69   :  { %6782 = vmatprep.subr.mxu1 %v7548_v0 }
 0xc6a   :  { %v3061_v40 = vsel %vm3026_vm7, %v3021_v2, %v3053_v38  ;;  %6783 = vmatpush3.msra.mxu1 %v8488_v14 }
 0xc6b   :  { %v7416_v41 = vpop.eup %7415  ;;  %6744 = vmatmul.mubr.msk.f32.gmra.mxu1 %vm2204_vm12, %v3061_v40  ;;  %6818 = vmatprep.subr.mxu1 %v7548_v0  ;;  %v8665_v40 = vld [vmem:[%s8007_s29 + $0x10] sm:$0xff] }
 0xc6c   :  { %6746 = vmatprep.mubr.msk.f32.mxu1 %vm7550_vm0, %v7548_v0  ;;  %v3055_v10 = vmul.f32 0.6931472, %v7416_v41 }
 0xc6e   :  { %v3062_v42 = vsel %vm3027_vm8, %v3022_v26, %v3055_v10 }
 0xc6f   :  { %v7418_v43 = vpop.eup %7417  ;;  %6747 = vmatmul.mubr.msk.f32.gmra.mxu1 %vm2204_vm12, %v3062_v42  ;;  %v8676_v42 = vld [vmem:[%s8007_s29 + $0x18] sm:$0xff] }
 0xc70   :  { %6749 = vmatprep.mubr.msk.f32.mxu1 %vm7550_vm0, %v7548_v0  ;;  %v3057_v44 = vmul.f32 0.6931472, %v7418_v43 }
 0xc72   :  { %v3063_v17 = vsel %vm3028_vm9, %v3023_v58, %v3057_v44 }
 0xc73   :  { %6750 = vmatmul.mubr.msk.f32.gmra.mxu1 %vm2204_vm12, %v3063_v17  ;;  %v8685_v17 = vld [vmem:[%s8007_s29 + $0x20] sm:$0xff] }
 0xc74   :  { %v7420_v56 = vpop.eup %7419  ;;  %6752 = vmatprep.mubr.msk.f32.mxu1 %vm7550_vm0, %v7548_v0 }
 0xc75   :  { %v3059_v59 = vmul.f32 0.6931472, %v7420_v56 }
 0xc77   :  { %v3064_v51 = vsel %vm3029_vm10, %v3024_v1, %v3059_v59  ;;  %v8591_v1 = vld [vmem:[%s8114_s7] sm:$0xff] }
 0xc78   :  { %6753 = vmatmul.mubr.msk.f32.gmra.mxu1 %vm2204_vm12, %v3064_v51  ;;  %v8692_v59 = vld [vmem:[%s8058_s3] sm:$0xff]  ;;  %v8699_v51 = vld [vmem:[%s8186_s16 + $0x8] sm:$0xff] }
 0xc79   :  { %6784 = vmatprep.mubr.msk.f32.mxu1 %vm7550_vm0, %v7548_v0 }
 0xd27   :  { %v3146_v62 = vpop.f32.mrf.mxu1 }
 0xd28   :  { %v3147_v48 = vadd.f32 %v8247_v7, %v3146_v62  ;;  %v8704_v62 = vld [vmem:[%s8186_s16] sm:$0xff] }
 0xd29   :  { %v6742_v5 = vpop.f32.mrf.mxu1 }
 0xd2a   :  { %v3170_v58 = vmul.f32 0.25, %v3147_v48  ;;  %v8708_v5 = vld [vmem:[%s8058_s3 + $0x8] sm:$0xff] }
 0xd2b   :  { %v3151_v9 = vpop.f32.mrf.mxu1 }
 0xd2c   :  { %v3152_v26 = vadd.f32 %v8247_v7, %v3151_v9  ;;  %v8716_v9 = vld [vmem:[%s8058_s3 + $0x10] sm:$0xff] }
 0xd2d   :  { %v6745_v21 = vpop.f32.mrf.mxu1 }
 0xd2e   :  { %v3171_v55 = vmul.f32 0.25, %v3152_v26  ;;  %v8723_v21 = vld [vmem:[%s8058_s3 + $0x18] sm:$0xff] }
 0xd2f   :  { %v3156_v45 = vpop.f32.mrf.mxu1 }
 0xd30   :  { %v3157_v28 = vadd.f32 %v8247_v7, %v3156_v45  ;;  %v8730_v45 = vld [vmem:[%s8058_s3 + $0x20] sm:$0xff] }
 0xd31   :  { %v6748_v2 = vpop.f32.mrf.mxu1 }
 0xd32   :  { %v3172_v54 = vmul.f32 0.25, %v3157_v28 }
 0xd33   :  { %v3161_v15 = vpop.f32.mrf.mxu1 }
 0xd34   :  { %v3162_v8 = vadd.f32 %v8247_v7, %v3161_v15  ;;  %v8518_v23 = vadd.f32 %v3172_v54, %v8263_v24  ;;  %v8542_v24 = vld [vmem:[%s7897_s25 + $0x8] sm:$0xf] }
 0xd35   :  { %v6751_v18 = vpop.f32.mrf.mxu1  ;;  %v8750_v54 = vld [vmem:[%s8136_s12 + $0x8] sm:$0xf] }
 0xd36   :  { %v3173_v49 = vmul.f32 0.25, %v3162_v8 }
 0xd38   :  { %v3166_v12 = vpop.f32.mrf.mxu1  ;;  %v8513_v36 = vadd.f32 %v3173_v49, %v8258_v47  ;;  %v8534_v47 = vld [vmem:[%s7892_s21] sm:$0xff] }
 0xd39   :  { %v3167_v16 = vadd.f32 %v8247_v7, %v3166_v12  ;;  %v8523_v7 = vadd.f32 %v3171_v55, %v8268_v34  ;;  %v8548_v34 = vld [vmem:[%s7897_s25] sm:$0xff]  ;;  %s7585_s25 = smov 36  }
 0xd3a   :  { %v6754_v53 = vpop.f32.mrf.mxu1  ;;  %s5542_s29 = sld [smem:[%s9199_s0 + %s7585_s25]]  }
 0xd3b   :  { %v3174_v13 = vmul.f32 0.25, %v3167_v16 }
 0xd3d   :  { %v8510_v31 = vadd.f32 %v3174_v13, %v8255_v35  ;;  %v8528_v35 = vadd.f32 %v3170_v58, %v8273_v33  ;;  %v8552_v33 = vld [vmem:[%s7892_s21 + $0x8] sm:$0xff]  ;;  %v8756_v58 = vld [vmem:[%s8136_s12] sm:$0xff]  ;;  %s5541_s21 = sld [smem:[%s9199_s0 + %s7584_s24]]  }
 0xd3f   :  { %6756 = vmatpush3.msra.mxu0 %v8510_v31 }
 0xd40   :  { %6757 = vmatprep.subr.mxu0 %v7548_v0 }
 0xd41   :  { %6758 = vmatpush3.msra.mxu0 %v8513_v36 }
 0xd42   :  { %6759 = vmatprep.subr.mxu0 %v7548_v0 }
 0xd43   :  { %6760 = vmatpush3.msra.mxu0 %v8518_v23 }
 0xd44   :  { %6761 = vmatprep.subr.mxu0 %v7548_v0 }
 0xd45   :  { %6762 = vmatpush3.msra.mxu0 %v8523_v7 }
 0xd46   :  { %6763 = vmatprep.subr.mxu0 %v7548_v0 }
 0xd47   :  { %6764 = vmatpush3.msra.mxu0 %v8528_v35 }
 0xd48   :  { %6766 = vmatmul.mubr.msk.f32.vlgmr.msra.gmra.mxu0 %vm1389_vm11, %v8534_v47  ;;  %6799 = vmatprep.subr.mxu0 %v7548_v0 }
 0xd49   :  { %6768 = vmatprep.mubr.msk.f32.mxu0 %vm7550_vm0, %v7548_v0  ;;  %6800 = vmatpush3.msk.msra.mxu0 %vm180_vm1, %v8542_v24 }
 0xd4a   :  { %6801 = vmatprep.subr.mxu0 %v7548_v0 }
 0xd4b   :  { %6802 = vmatpush3.msra.mxu0 %v8548_v34 }
 0xd4c   :  { %6769 = vmatmul.mubr.msk.f32.gmra.mxu0 %vm1389_vm11, %v8552_v33  ;;  %6843 = vmatprep.subr.mxu0 %v7548_v0 }
 0xd4d   :  { %6771 = vmatprep.mubr.msk.f32.mxu0 %vm7550_vm0, %v7548_v0 }
 0xd50   :  { %6772 = vmatmul.mubr.msk.f32.gmra.mxu0 %vm1389_vm11, %v8560_v37 }
 0xd51   :  { %6774 = vmatprep.mubr.msk.f32.mxu0 %vm7550_vm0, %v7548_v0 }
 0xd54   :  { %6775 = vmatmul.mubr.msk.f32.gmra.mxu0 %vm1389_vm11, %v8567_v3 }
 0xd55   :  { %6777 = vmatprep.mubr.msk.f32.mxu0 %vm7550_vm0, %v7548_v0 }
 0xd58   :  { %6778 = vmatmul.mubr.msk.f32.gmra.mxu0 %vm1389_vm11, %v8574_v61 }
 0xd59   :  { %6803 = vmatprep.mubr.msk.f32.mxu0 %vm7550_vm0, %v7548_v0 }
 0xd5c   :  { %6804 = vmatmul.mubr.msk.f32.vlgmr.msra.gmra.mxu0 %vm164_vm2, %v8528_v35 }
 0xd5d   :  { %6806 = vmatprep.mubr.msk.f32.mxu0 %vm7550_vm0, %v7548_v0  ;;  %6844 = vmatpush3.msk.msra.mxu0 %vm180_vm1, %v8585_v4 }
 0xd5e   :  { %6845 = vmatprep.subr.mxu0 %v7548_v0 }
 0xd5f   :  { %6846 = vmatpush3.msra.mxu0 %v8591_v1 }
 0xd60   :  { %6807 = vmatmul.mubr.msk.f32.gmra.mxu0 %vm164_vm2, %v8523_v7  ;;  %6887 = vmatprep.subr.mxu0 %v7548_v0 }
 0xd61   :  { %6809 = vmatprep.mubr.msk.f32.mxu0 %vm7550_vm0, %v7548_v0 }
 0xd64   :  { %6810 = vmatmul.mubr.msk.f32.gmra.mxu0 %vm164_vm2, %v8518_v23 }
 0xd65   :  { %6812 = vmatprep.mubr.msk.f32.mxu0 %vm7550_vm0, %v7548_v0 }
 0xd68   :  { %6813 = vmatmul.mubr.msk.f32.gmra.mxu0 %vm164_vm2, %v8513_v36 }
 0xd69   :  { %6815 = vmatprep.mubr.msk.f32.mxu0 %vm7550_vm0, %v7548_v0 }
 0xd6c   :  { %6816 = vmatmul.mubr.msk.f32.gmra.mxu0 %vm164_vm2, %v8510_v31 }
 0xd6d   :  { %6847 = vmatprep.mubr.msk.f32.mxu0 %vm7550_vm0, %v7548_v0 }
 0xe08   :  { %v3246_v6 = vpop.f32.mrf.mxu0 }
 0xe09   :  { %6785 = vmatmul.mubr.msk.f32.vlgmr.msra.gmra.mxu1 %vm164_vm2, %v3246_v6 }
 0xe0a   :  { %6819 = vmatpush3.msra.mxu1 %v8510_v31  ;;  %v6767_v29 = vpop.f32.mrf.mxu0  ;;  %6787 = vmatprep.mubr.msk.f32.mxu1 %vm7550_vm0, %v7548_v0 }
 0xe0b   :  { %6820 = vmatprep.subr.mxu1 %v7548_v0 }
 0xe0c   :  { %6821 = vmatpush3.msra.mxu1 %v8513_v36  ;;  %v3251_v52 = vpop.f32.mrf.mxu0 }
 0xe0d   :  { %6822 = vmatprep.subr.mxu1 %v7548_v0  ;;  %6788 = vmatmul.mubr.msk.f32.gmra.mxu1 %vm164_vm2, %v3251_v52 }
 0xe0e   :  { %6823 = vmatpush3.msra.mxu1 %v8518_v23  ;;  %v6770_v11 = vpop.f32.mrf.mxu0  ;;  %6790 = vmatprep.mubr.msk.f32.mxu1 %vm7550_vm0, %v7548_v0 }
 0xe0f   :  { %6824 = vmatprep.subr.mxu1 %v7548_v0 }
 0xe10   :  { %6825 = vmatpush3.msra.mxu1 %v8523_v7  ;;  %v3256_v57 = vpop.f32.mrf.mxu0 }
 0xe11   :  { %6826 = vmatprep.subr.mxu1 %v7548_v0  ;;  %6791 = vmatmul.mubr.msk.f32.gmra.mxu1 %vm164_vm2, %v3256_v57 }
 0xe12   :  { %6827 = vmatpush3.msra.mxu1 %v8528_v35  ;;  %v6773_v46 = vpop.f32.mrf.mxu0  ;;  %6793 = vmatprep.mubr.msk.f32.mxu1 %vm7550_vm0, %v7548_v0 }
 0xe13   :  { %6862 = vmatprep.subr.mxu1 %v7548_v0 }
 0xe14   :  { %v3261_v19 = vpop.f32.mrf.mxu0 }
 0xe15   :  { %6794 = vmatmul.mubr.msk.f32.gmra.mxu1 %vm164_vm2, %v3261_v19 }
 0xe16   :  { %v6776_v25 = vpop.f32.mrf.mxu0  ;;  %6796 = vmatprep.mubr.msk.f32.mxu1 %vm7550_vm0, %v7548_v0 }
 0xe18   :  { %v3266_v32 = vpop.f32.mrf.mxu0 }
 0xe19   :  { %6797 = vmatmul.mubr.msk.f32.gmra.mxu1 %vm164_vm2, %v3266_v32 }
 0xe1a   :  { %v6779_v60 = vpop.f32.mrf.mxu0  ;;  %6828 = vmatprep.mubr.msk.f32.mxu1 %vm7550_vm0, %v7548_v0 }
 0xe1c   :  { %v8636_v22 = vpop.f32.mrf.mxu0 }
 0xe1d   :  { %6829 = vmatmul.mubr.msk.f32.vlgmr.msra.gmra.mxu1 %vm1389_vm11, %v8639_v50 }
 0xe1e   :  { %6863 = vmatpush3.msra.mxu1 %v8510_v31  ;;  %v6805_v30 = vpop.f32.mrf.mxu0  ;;  %6831 = vmatprep.mubr.msk.f32.mxu1 %vm7550_vm0, %v7548_v0 }
 0xe1f   :  { %6864 = vmatprep.subr.mxu1 %v7548_v0 }
 0xe20   :  { %6865 = vmatpush3.msra.mxu1 %v8513_v36  ;;  %v8648_v20 = vpop.f32.mrf.mxu0 }
 0xe21   :  { %6866 = vmatprep.subr.mxu1 %v7548_v0  ;;  %6832 = vmatmul.mubr.msk.f32.gmra.mxu1 %vm1389_vm11, %v8652_v63 }
 0xe22   :  { %6867 = vmatpush3.msra.mxu1 %v8518_v23  ;;  %v6808_v27 = vpop.f32.mrf.mxu0  ;;  %6834 = vmatprep.mubr.msk.f32.mxu1 %vm7550_vm0, %v7548_v0 }
 0xe23   :  { %6868 = vmatprep.subr.mxu1 %v7548_v0 }
 0xe24   :  { %6869 = vmatpush3.msra.mxu1 %v8523_v7  ;;  %v8661_v38 = vpop.f32.mrf.mxu0 }
 0xe25   :  { %6870 = vmatprep.subr.mxu1 %v7548_v0  ;;  %6835 = vmatmul.mubr.msk.f32.gmra.mxu1 %vm1389_vm11, %v8665_v40 }
 0xe26   :  { %6871 = vmatpush3.msra.mxu1 %v8528_v35  ;;  %v6811_v41 = vpop.f32.mrf.mxu0  ;;  %6837 = vmatprep.mubr.msk.f32.mxu1 %vm7550_vm0, %v7548_v0 }
 0xe27   :  { %6906 = vmatprep.subr.mxu1 %v7548_v0 }
 0xe28   :  { %v8673_v10 = vpop.f32.mrf.mxu0 }
 0xe29   :  { %6838 = vmatmul.mubr.msk.f32.gmra.mxu1 %vm1389_vm11, %v8676_v42 }
 0xe2a   :  { %v6814_v43 = vpop.f32.mrf.mxu0  ;;  %6840 = vmatprep.mubr.msk.f32.mxu1 %vm7550_vm0, %v7548_v0 }
 0xe2c   :  { %v8682_v44 = vpop.f32.mrf.mxu0 }
 0xe2d   :  { %6841 = vmatmul.mubr.msk.f32.gmra.mxu1 %vm1389_vm11, %v8685_v17 }
 0xe2e   :  { %v6817_v56 = vpop.f32.mrf.mxu0  ;;  %6872 = vmatprep.mubr.msk.f32.mxu1 %vm7550_vm0, %v7548_v0 }
 0xe31   :  { %6873 = vmatmul.mubr.msk.f32.vlgmr.msra.gmra.mxu1 %vm1389_vm11, %v8692_v59 }
 0xe32   :  { %6875 = vmatprep.mubr.msk.f32.mxu1 %vm7550_vm0, %v7548_v0  ;;  %6907 = vmatpush3.msra.mxu1 %v8699_v51 }
 0xe33   :  { %6908 = vmatprep.subr.mxu1 %v7548_v0 }
 0xe34   :  { %6909 = vmatpush3.msra.mxu1 %v8704_v62 }
 0xe35   :  { %6876 = vmatmul.mubr.msk.f32.gmra.mxu1 %vm1389_vm11, %v8708_v5  ;;  %6950 = vmatprep.subr.mxu1 %v7548_v0 }
 0xe36   :  { %6878 = vmatprep.mubr.msk.f32.mxu1 %vm7550_vm0, %v7548_v0 }
 0xe39   :  { %6879 = vmatmul.mubr.msk.f32.gmra.mxu1 %vm1389_vm11, %v8716_v9 }
 0xe3a   :  { %6881 = vmatprep.mubr.msk.f32.mxu1 %vm7550_vm0, %v7548_v0 }
 0xe3d   :  { %6882 = vmatmul.mubr.msk.f32.gmra.mxu1 %vm1389_vm11, %v8723_v21 }
 0xe3e   :  { %6884 = vmatprep.mubr.msk.f32.mxu1 %vm7550_vm0, %v7548_v0 }
 0xe41   :  { %6885 = vmatmul.mubr.msk.f32.gmra.mxu1 %vm1389_vm11, %v8730_v45 }
 0xe42   :  { %6910 = vmatprep.mubr.msk.f32.mxu1 %vm7550_vm0, %v7548_v0 }
 0xec9   :  { %v8736_v2 = vpop.f32.mrf.mxu1 }
 0xecb   :  { %v6786_v15 = vpop.f32.mrf.mxu1 }
 0xecd   :  { %v8738_v18 = vpop.f32.mrf.mxu1 }
 0xecf   :  { %v6789_v8 = vpop.f32.mrf.mxu1 }
 0xed1   :  { %v8740_v12 = vpop.f32.mrf.mxu1 }
 0xed3   :  { %v6792_v28 = vpop.f32.mrf.mxu1 }
 0xed5   :  { %v8742_v16 = vpop.f32.mrf.mxu1 }
 0xed7   :  { %v6795_v53 = vpop.f32.mrf.mxu1 }
 0xed9   :  { %v8744_v26 = vpop.f32.mrf.mxu1 }
 0xedb   :  { %v6798_v49 = vpop.f32.mrf.mxu1 }
 0xedd   :  { %v3546_v13 = vpop.f32.mrf.mxu1 }
 0xede   :  { %6848 = vmatmul.mubr.msk.f32.vlgmr.msra.gmra.mxu0 %vm164_vm2, %v3546_v13 }
 0xedf   :  { %v6830_v48 = vpop.f32.mrf.mxu1  ;;  %6850 = vmatprep.mubr.msk.f32.mxu0 %vm7550_vm0, %v7548_v0  ;;  %6888 = vmatpush3.msk.msra.mxu0 %vm180_vm1, %v8750_v54 }
 0xee0   :  { %6889 = vmatprep.subr.mxu0 %v7548_v0 }
 0xee1   :  { %v3551_v55 = vpop.f32.mrf.mxu1  ;;  %6890 = vmatpush3.msra.mxu0 %v8756_v58 }
 0xee2   :  { %6851 = vmatmul.mubr.msk.f32.gmra.mxu0 %vm164_vm2, %v3551_v55  ;;  %6925 = vmatprep.subr.mxu0 %v7548_v0 }
 0xee3   :  { %v6833_v6 = vpop.f32.mrf.mxu1  ;;  %6853 = vmatprep.mubr.msk.f32.mxu0 %vm7550_vm0, %v7548_v0 }
 0xee5   :  { %v3556_v29 = vpop.f32.mrf.mxu1 }
 0xee6   :  { %6854 = vmatmul.mubr.msk.f32.gmra.mxu0 %vm164_vm2, %v3556_v29 }
 0xee7   :  { %v6836_v52 = vpop.f32.mrf.mxu1  ;;  %6856 = vmatprep.mubr.msk.f32.mxu0 %vm7550_vm0, %v7548_v0 }
 0xee9   :  { %v3561_v11 = vpop.f32.mrf.mxu1 }
 0xeea   :  { %6857 = vmatmul.mubr.msk.f32.gmra.mxu0 %vm164_vm2, %v3561_v11  ;;  %v3457_v11 = vadd.f32 %v8636_v22, %v8736_v2 }
 0xeeb   :  { %v6839_v57 = vpop.f32.mrf.mxu1  ;;  %6859 = vmatprep.mubr.msk.f32.mxu0 %vm7550_vm0, %v7548_v0 }
 0xeed   :  { %v3566_v46 = vpop.f32.mrf.mxu1 }
 0xeee   :  { %6860 = vmatmul.mubr.msk.f32.gmra.mxu0 %vm164_vm2, %v3566_v46 }
 0xeef   :  { %v6842_v19 = vpop.f32.mrf.mxu1  ;;  %6891 = vmatprep.mubr.msk.f32.mxu0 %vm7550_vm0, %v7548_v0 }
 0xef1   :  { %v3746_v25 = vpop.f32.mrf.mxu1 }
 0xef2   :  { %6892 = vmatmul.mubr.msk.f32.vlgmr.msra.gmra.mxu0 %vm164_vm2, %v3746_v25  ;;  %v3462_v25 = vadd.f32 %v8648_v20, %v8738_v18  ;;  %v3472_v20 = vadd.f32 %v8673_v10, %v8742_v16 }
 0xef3   :  { %v6874_v32 = vpop.f32.mrf.mxu1  ;;  %6894 = vmatprep.mubr.msk.f32.mxu0 %vm7550_vm0, %v7548_v0 }
 0xef5   :  { %v3751_v60 = vpop.f32.mrf.mxu1 }
 0xef6   :  { %6895 = vmatmul.mubr.msk.f32.gmra.mxu0 %vm164_vm2, %v3751_v60 }
 0xef7   :  { %v6877_v30 = vpop.f32.mrf.mxu1  ;;  %6897 = vmatprep.mubr.msk.f32.mxu0 %vm7550_vm0, %v7548_v0 }
 0xef9   :  { %v3756_v27 = vpop.f32.mrf.mxu1 }
 0xefa   :  { %6898 = vmatmul.mubr.msk.f32.gmra.mxu0 %vm164_vm2, %v3756_v27  ;;  %v8792_v27 = vld [vmem:[%s8201_s20] ss:$0 sm:$0xff] }
 0xefb   :  { %v6880_v41 = vpop.f32.mrf.mxu1  ;;  %6900 = vmatprep.mubr.msk.f32.mxu0 %vm7550_vm0, %v7548_v0 }
 0xefd   :  { %v3761_v43 = vpop.f32.mrf.mxu1 }
 0xefe   :  { %6901 = vmatmul.mubr.msk.f32.gmra.mxu0 %vm164_vm2, %v3761_v43 }
 0xeff   :  { %v6883_v56 = vpop.f32.mrf.mxu1  ;;  %6903 = vmatprep.mubr.msk.f32.mxu0 %vm7550_vm0, %v7548_v0 }
 0xf00   :  { %v3467_v56 = vadd.f32 %v8661_v38, %v8740_v12  ;;  %v3477_v12 = vadd.f32 %v8682_v44, %v8744_v26 }
 0xf01   :  { %v3766_v15 = vpop.f32.mrf.mxu1 }
 0xf02   :  { %6904 = vmatmul.mubr.msk.f32.gmra.mxu0 %vm164_vm2, %v3766_v15 }
 0xf03   :  { %v6886_v8 = vpop.f32.mrf.mxu1  ;;  %6935 = vmatprep.mubr.msk.f32.mxu0 %vm7550_vm0, %v7548_v0 }
 0xf9e   :  { %v3651_v28 = vpop.f32.mrf.mxu0 }
 0xf9f   :  { %v3675_v46 = vadd.f32 %v3651_v28, %v3457_v11 }
 0xfa0   :  { %v6849_v53 = vpop.f32.mrf.mxu0 }
 0xfa2   :  { %v3656_v49 = vpop.f32.mrf.mxu0 }
 0xfa3   :  { %v3676_v30 = vadd.f32 %v3656_v49, %v3462_v25 }
 0xfa4   :  { %v6852_v13 = vpop.f32.mrf.mxu0 }
 0xfa6   :  { %v3661_v48 = vpop.f32.mrf.mxu0 }
 0xfa7   :  { %v3677_v2 = vadd.f32 %v3661_v48, %v3467_v56 }
 0xfa8   :  { %v6855_v55 = vpop.f32.mrf.mxu0 }
 0xfaa   :  { %v3666_v6 = vpop.f32.mrf.mxu0 }
 0xfac   :  { %v6858_v29 = vpop.f32.mrf.mxu0 }
 0xfad   :  { %v3678_v29 = vadd.f32 %v3666_v6, %v3472_v20 }
 0xfae   :  { %v3671_v52 = vpop.f32.mrf.mxu0 }
 0xfaf   :  { %v3679_v25 = vadd.f32 %v3671_v52, %v3477_v12 }
 0xfb0   :  { %v6861_v57 = vpop.f32.mrf.mxu0 }
 0xfb2   :  { %v3851_v19 = vpop.f32.mrf.mxu0 }
 0xfb3   :  { %v3875_v32 = vadd.f32 %v3851_v19, %v3675_v46 }
 0xfb4   :  { %v6893_v60 = vpop.f32.mrf.mxu0 }
 0xfb5   :  { %v3880_v41 = vadd.f32 %v8792_v27, %v3875_v32 }
 0xfb6   :  { %v3856_v43 = vpop.f32.mrf.mxu0 }
 0xfb7   :  { %v3890_v15 = vmin.f32 %v3880_v41, 20.0  ;;  %v3876_v8 = vadd.f32 %v3856_v43, %v3676_v30  ;;  %vm3885_vm13 = vcmp.gt.f32.partialorder %v3880_v41, 20.0 }
 0xfb8   :  { %v6896_v22 = vpop.f32.mrf.mxu0 }
 0xfb9   :  { %v3895_v28 = vmul.f32 1.442695, %v3890_v15  ;;  %v3881_v53 = vadd.f32 %v8792_v27, %v3876_v8 }
 0xfba   :  { %v3861_v13 = vpop.f32.mrf.mxu0 }
 0xfbb   :  { %7421 = vpow2.f32 %v3895_v28  ;;  %v3891_v18 = vmin.f32 %v3881_v53, 20.0  ;;  %v3877_v49 = vadd.f32 %v3861_v13, %v3677_v2  ;;  %vm3886_vm14 = vcmp.gt.f32.partialorder %v3881_v53, 20.0 }
 0xfbc   :  { %v6899_v55 = vpop.f32.mrf.mxu0 }
 0xfbd   :  { %v3897_v11 = vmul.f32 1.442695, %v3891_v18  ;;  %v3882_v57 = vadd.f32 %v8792_v27, %v3877_v49 }
 0xfbe   :  { %v3866_v38 = vpop.f32.mrf.mxu0 }
 0xfbf   :  { %7423 = vpow2.f32 %v3897_v11  ;;  %v3892_v48 = vmin.f32 %v3882_v57, 20.0  ;;  %v3878_v46 = vadd.f32 %v3866_v38, %v3678_v29  ;;  %vm3887_vm15 = vcmp.gt.f32.partialorder %v3882_v57, 20.0 }
 0xfc0   :  { %v6902_v19 = vpop.f32.mrf.mxu0 }
 0xfc1   :  { %v3899_v32 = vmul.f32 1.442695, %v3892_v48  ;;  %v3883_v10 = vadd.f32 %v8792_v27, %v3878_v46 }
 0xfc2   :  { %v3871_v16 = vpop.f32.mrf.mxu0 }
 0xfc3   :  { %7425 = vpow2.f32 %v3899_v32  ;;  %v3893_v60 = vmin.f32 %v3883_v10, 20.0  ;;  %v3879_v30 = vadd.f32 %v3871_v16, %v3679_v25  ;;  %vm3888_vm4 = vcmp.gt.f32.partialorder %v3883_v10, 20.0 }
 0xfc4   :  { %v6905_v6 = vpop.f32.mrf.mxu0 }
 0xfc5   :  { %v3901_v43 = vmul.f32 1.442695, %v3893_v60  ;;  %v3884_v56 = vadd.f32 %v8792_v27, %v3879_v30 }
 0xfc7   :  { %7427 = vpow2.f32 %v3901_v43  ;;  %v3894_v15 = vmin.f32 %v3884_v56, 20.0  ;;  %vm3889_vm5 = vcmp.gt.f32.partialorder %v3884_v56, 20.0 }
 0xfc8   :  { %v7422_v8 = vpop.eup %7421 }
 0xfc9   :  { %v3905_v44 = vadd.f32 1.0, %v7422_v8  ;;  %v3903_v26 = vmul.f32 1.442695, %v3894_v15 }
 0xfcb   :  { %7429 = vlog2.f32 %v3905_v44  ;;  %v8826_v44 = vld [vmem:[%s8244_s26] ss:$0 sm:$0xff] }
 0xfcc   :  { %v7424_v22 = vpop.eup %7423  ;;  %7431 = vpow2.f32 %v3903_v26 }
 0xfcd   :  { %v3906_v52 = vadd.f32 1.0, %v7424_v22 }
 0xfcf   :  { %7433 = vlog2.f32 %v3906_v52 }
 0xfd0   :  { %v7426_v2 = vpop.eup %7425 }
 0xfd1   :  { %v3907_v28 = vadd.f32 1.0, %v7426_v2 }
 0xfd3   :  { %7435 = vlog2.f32 %v3907_v28 }
 0xfd4   :  { %v7428_v13 = vpop.eup %7427 }
 0xfd5   :  { %v3908_v20 = vadd.f32 1.0, %v7428_v13 }
 0xfd7   :  { %7437 = vlog2.f32 %v3908_v20 }
 0xfd8   :  { %v7430_v18 = vpop.eup %7429 }
 0xfd9   :  { %v7432_v49 = vpop.eup %7431  ;;  %v3911_v55 = vmul.f32 0.6931472, %v7430_v18 }
 0xfda   :  { %v3909_v29 = vadd.f32 1.0, %v7432_v49 }
 0xfdb   :  { %v3920_v11 = vsel %vm3885_vm13, %v3880_v41, %v3911_v55 }
 0xfdc   :  { %v7434_v38 = vpop.eup %7433  ;;  %7439 = vlog2.f32 %v3909_v29  ;;  %6911 = vmatmul.mubr.msk.f32.vlgmr.msra.gmra.mxu1 %vm2204_vm12, %v3920_v11 }
 0xfdd   :  { %6913 = vmatprep.mubr.msk.f32.mxu1 %vm7550_vm0, %v7548_v0  ;;  %v3913_v12 = vmul.f32 0.6931472, %v7434_v38  ;;  %6951 = vmatpush3.msk.msra.mxu1 %vm180_vm1, %v8482_v39 }
 0xfde   :  { %6952 = vmatprep.subr.mxu1 %v7548_v0 }
 0xfdf   :  { %v3921_v48 = vsel %vm3886_vm14, %v3881_v53, %v3913_v12  ;;  %6953 = vmatpush3.msra.mxu1 %v8488_v14 }
 0xfe0   :  { %v7436_v46 = vpop.eup %7435  ;;  %6914 = vmatmul.mubr.msk.f32.gmra.mxu1 %vm2204_vm12, %v3921_v48  ;;  %6988 = vmatprep.subr.mxu1 %v7548_v0 }
 0xfe1   :  { %6916 = vmatprep.mubr.msk.f32.mxu1 %vm7550_vm0, %v7548_v0  ;;  %v3915_v41 = vmul.f32 0.6931472, %v7436_v46 }
 0xfe3   :  { %v3922_v19 = vsel %vm3887_vm15, %v3882_v57, %v3915_v41 }
 0xfe4   :  { %v7438_v25 = vpop.eup %7437  ;;  %6917 = vmatmul.mubr.msk.f32.gmra.mxu1 %vm2204_vm12, %v3922_v19 }
 0xfe5   :  { %6919 = vmatprep.mubr.msk.f32.mxu1 %vm7550_vm0, %v7548_v0  ;;  %v3917_v39 = vmul.f32 0.6931472, %v7438_v25 }
 0xfe7   :  { %v3923_v14 = vsel %vm3888_vm4, %v3883_v10, %v3917_v39 }
 0xfe8   :  { %6920 = vmatmul.mubr.msk.f32.gmra.mxu1 %vm2204_vm12, %v3923_v14 }
 0xfe9   :  { %v7440_v53 = vpop.eup %7439  ;;  %6922 = vmatprep.mubr.msk.f32.mxu1 %vm7550_vm0, %v7548_v0 }
 0xfea   :  { %v3919_v32 = vmul.f32 0.6931472, %v7440_v53 }
 0xfec   :  { %v3924_v16 = vsel %vm3889_vm5, %v3884_v56, %v3919_v32 }
 0xfed   :  { %6923 = vmatmul.mubr.msk.f32.gmra.mxu1 %vm2204_vm12, %v3924_v16 }
 0xfee   :  { %6954 = vmatprep.mubr.msk.f32.mxu1 %vm7550_vm0, %v7548_v0 }
0x109c   :  { %v4006_v57 = vpop.f32.mrf.mxu1 }
0x109d   :  { %v4007_v18 = vadd.f32 %v8826_v44, %v4006_v57 }
0x109e   :  { %v6912_v60 = vpop.f32.mrf.mxu1 }
0x109f   :  { %v4030_v38 = vmul.f32 0.25, %v4007_v18 }
0x10a0   :  { %v4011_v30 = vpop.f32.mrf.mxu1 }
0x10a1   :  { %v4012_v28 = vadd.f32 %v8826_v44, %v4011_v30 }
0x10a2   :  { %v6915_v6 = vpop.f32.mrf.mxu1 }
0x10a3   :  { %v4031_v29 = vmul.f32 0.25, %v4012_v28 }
0x10a4   :  { %v4016_v10 = vpop.f32.mrf.mxu1 }
0x10a5   :  { %v4017_v56 = vadd.f32 %v8826_v44, %v4016_v10  ;;  %v8847_v48 = vadd.f32 %v4031_v29, %v8523_v7 }
0x10a6   :  { %v6918_v43 = vpop.f32.mrf.mxu1 }
0x10a7   :  { %v4032_v49 = vmul.f32 0.25, %v4017_v56 }
0x10a8   :  { %v4021_v15 = vpop.f32.mrf.mxu1 }
0x10a9   :  { %v4022_v26 = vadd.f32 %v8826_v44, %v4021_v15  ;;  %v8842_v12 = vadd.f32 %v4032_v49, %v8518_v23 }
0x10aa   :  { %v6921_v8 = vpop.f32.mrf.mxu1 }
0x10ab   :  { %v4033_v13 = vmul.f32 0.25, %v4022_v26 }
0x10ad   :  { %v4026_v22 = vpop.f32.mrf.mxu1  ;;  %v8837_v11 = vadd.f32 %v4033_v13, %v8513_v36  ;;  %v4901_v13 = vld [vmem:[%s9045_s27 + $0x8] sm:$0xf] }
0x10ae   :  { %v4027_v52 = vadd.f32 %v8826_v44, %v4026_v22 }
0x10af   :  { %v6924_v2 = vpop.f32.mrf.mxu1 }
0x10b0   :  { %v4034_v20 = vmul.f32 0.25, %v4027_v52 }
0x10b2   :  { %v8834_v55 = vadd.f32 %v4034_v20, %v8510_v31  ;;  %v8852_v31 = vadd.f32 %v4030_v38, %v8528_v35 }
0x10b4   :  { %6926 = vmatpush3.msra.mxu0 %v8834_v55 }
0x10b5   :  { %6927 = vmatprep.subr.mxu0 %v7548_v0 }
0x10b6   :  { %6928 = vmatpush3.msra.mxu0 %v8837_v11 }
0x10b7   :  { %6929 = vmatprep.subr.mxu0 %v7548_v0 }
0x10b8   :  { %6930 = vmatpush3.msra.mxu0 %v8842_v12 }
0x10b9   :  { %6931 = vmatprep.subr.mxu0 %v7548_v0 }
0x10ba   :  { %6932 = vmatpush3.msra.mxu0 %v8847_v48 }
0x10bb   :  { %6933 = vmatprep.subr.mxu0 %v7548_v0 }
0x10bc   :  { %6934 = vmatpush3.msra.mxu0 %v8852_v31 }
0x10bd   :  { %6936 = vmatmul.mubr.msk.f32.vlgmr.msra.gmra.mxu0 %vm1389_vm11, %v8534_v47  ;;  %6969 = vmatprep.subr.mxu0 %v7548_v0 }
0x10be   :  { %6938 = vmatprep.mubr.msk.f32.mxu0 %vm7550_vm0, %v7548_v0  ;;  %6970 = vmatpush3.msk.msra.mxu0 %vm180_vm1, %v8542_v24 }
0x10bf   :  { %6971 = vmatprep.subr.mxu0 %v7548_v0 }
0x10c0   :  { %6972 = vmatpush3.msra.mxu0 %v8548_v34 }
0x10c1   :  { %6939 = vmatmul.mubr.msk.f32.gmra.mxu0 %vm1389_vm11, %v8552_v33  ;;  %7013 = vmatprep.subr.mxu0 %v7548_v0 }
0x10c2   :  { %6941 = vmatprep.mubr.msk.f32.mxu0 %vm7550_vm0, %v7548_v0 }
0x10c5   :  { %6942 = vmatmul.mubr.msk.f32.gmra.mxu0 %vm1389_vm11, %v8560_v37 }
0x10c6   :  { %6944 = vmatprep.mubr.msk.f32.mxu0 %vm7550_vm0, %v7548_v0 }
0x10c9   :  { %6945 = vmatmul.mubr.msk.f32.gmra.mxu0 %vm1389_vm11, %v8567_v3 }
0x10ca   :  { %6947 = vmatprep.mubr.msk.f32.mxu0 %vm7550_vm0, %v7548_v0 }
0x10cd   :  { %6948 = vmatmul.mubr.msk.f32.gmra.mxu0 %vm1389_vm11, %v8574_v61 }
0x10ce   :  { %6973 = vmatprep.mubr.msk.f32.mxu0 %vm7550_vm0, %v7548_v0 }
0x10d1   :  { %6974 = vmatmul.mubr.msk.f32.vlgmr.msra.gmra.mxu0 %vm164_vm2, %v8852_v31 }
0x10d2   :  { %6976 = vmatprep.mubr.msk.f32.mxu0 %vm7550_vm0, %v7548_v0  ;;  %7014 = vmatpush3.msk.msra.mxu0 %vm180_vm1, %v8585_v4 }
0x10d3   :  { %7015 = vmatprep.subr.mxu0 %v7548_v0 }
0x10d4   :  { %7016 = vmatpush3.msra.mxu0 %v8591_v1 }
0x10d5   :  { %6977 = vmatmul.mubr.msk.f32.gmra.mxu0 %vm164_vm2, %v8847_v48  ;;  %7057 = vmatprep.subr.mxu0 %v7548_v0 }
0x10d6   :  { %6979 = vmatprep.mubr.msk.f32.mxu0 %vm7550_vm0, %v7548_v0 }
0x10d9   :  { %6980 = vmatmul.mubr.msk.f32.gmra.mxu0 %vm164_vm2, %v8842_v12 }
0x10da   :  { %6982 = vmatprep.mubr.msk.f32.mxu0 %vm7550_vm0, %v7548_v0 }
0x10dd   :  { %6983 = vmatmul.mubr.msk.f32.gmra.mxu0 %vm164_vm2, %v8837_v11 }
0x10de   :  { %6985 = vmatprep.mubr.msk.f32.mxu0 %vm7550_vm0, %v7548_v0 }
0x10e1   :  { %6986 = vmatmul.mubr.msk.f32.gmra.mxu0 %vm164_vm2, %v8834_v55 }
0x10e2   :  { %7017 = vmatprep.mubr.msk.f32.mxu0 %vm7550_vm0, %v7548_v0 }
0x117d   :  { %v4106_v36 = vpop.f32.mrf.mxu0 }
0x117e   :  { %6955 = vmatmul.mubr.msk.f32.vlgmr.msra.gmra.mxu1 %vm164_vm2, %v4106_v36 }
0x117f   :  { %6989 = vmatpush3.msra.mxu1 %v8834_v55  ;;  %v6937_v23 = vpop.f32.mrf.mxu0  ;;  %6957 = vmatprep.mubr.msk.f32.mxu1 %vm7550_vm0, %v7548_v0 }
0x1180   :  { %6990 = vmatprep.subr.mxu1 %v7548_v0 }
0x1181   :  { %6991 = vmatpush3.msra.mxu1 %v8837_v11  ;;  %v4111_v7 = vpop.f32.mrf.mxu0 }
0x1182   :  { %6992 = vmatprep.subr.mxu1 %v7548_v0  ;;  %6958 = vmatmul.mubr.msk.f32.gmra.mxu1 %vm164_vm2, %v4111_v7 }
0x1183   :  { %6993 = vmatpush3.msra.mxu1 %v8842_v12  ;;  %v6940_v35 = vpop.f32.mrf.mxu0  ;;  %6960 = vmatprep.mubr.msk.f32.mxu1 %vm7550_vm0, %v7548_v0 }
0x1184   :  { %6994 = vmatprep.subr.mxu1 %v7548_v0 }
0x1185   :  { %6995 = vmatpush3.msra.mxu1 %v8847_v48  ;;  %v4116_v47 = vpop.f32.mrf.mxu0 }
0x1186   :  { %6996 = vmatprep.subr.mxu1 %v7548_v0  ;;  %6961 = vmatmul.mubr.msk.f32.gmra.mxu1 %vm164_vm2, %v4116_v47 }
0x1187   :  { %6997 = vmatpush3.msra.mxu1 %v8852_v31  ;;  %v6943_v24 = vpop.f32.mrf.mxu0  ;;  %6963 = vmatprep.mubr.msk.f32.mxu1 %vm7550_vm0, %v7548_v0 }
0x1188   :  { %7032 = vmatprep.subr.mxu1 %v7548_v0 }
0x1189   :  { %v4121_v34 = vpop.f32.mrf.mxu0 }
0x118a   :  { %6964 = vmatmul.mubr.msk.f32.gmra.mxu1 %vm164_vm2, %v4121_v34 }
0x118b   :  { %v6946_v33 = vpop.f32.mrf.mxu0  ;;  %6966 = vmatprep.mubr.msk.f32.mxu1 %vm7550_vm0, %v7548_v0 }
0x118d   :  { %v4126_v37 = vpop.f32.mrf.mxu0 }
0x118e   :  { %6967 = vmatmul.mubr.msk.f32.gmra.mxu1 %vm164_vm2, %v4126_v37 }
0x118f   :  { %v6949_v3 = vpop.f32.mrf.mxu0  ;;  %6998 = vmatprep.mubr.msk.f32.mxu1 %vm7550_vm0, %v7548_v0 }
0x1191   :  { %v8933_v61 = vpop.f32.mrf.mxu0 }
0x1192   :  { %6999 = vmatmul.mubr.msk.f32.vlgmr.msra.gmra.mxu1 %vm1389_vm11, %v8639_v50 }
0x1193   :  { %7033 = vmatpush3.msra.mxu1 %v8834_v55  ;;  %v6975_v4 = vpop.f32.mrf.mxu0  ;;  %7001 = vmatprep.mubr.msk.f32.mxu1 %vm7550_vm0, %v7548_v0 }
0x1194   :  { %7034 = vmatprep.subr.mxu1 %v7548_v0 }
0x1195   :  { %7035 = vmatpush3.msra.mxu1 %v8837_v11  ;;  %v8942_v1 = vpop.f32.mrf.mxu0 }
0x1196   :  { %7036 = vmatprep.subr.mxu1 %v7548_v0  ;;  %7002 = vmatmul.mubr.msk.f32.gmra.mxu1 %vm1389_vm11, %v8652_v63 }
0x1197   :  { %7037 = vmatpush3.msra.mxu1 %v8842_v12  ;;  %v6978_v50 = vpop.f32.mrf.mxu0  ;;  %7004 = vmatprep.mubr.msk.f32.mxu1 %vm7550_vm0, %v7548_v0 }
0x1198   :  { %7038 = vmatprep.subr.mxu1 %v7548_v0 }
0x1199   :  { %7039 = vmatpush3.msra.mxu1 %v8847_v48  ;;  %v8952_v46 = vpop.f32.mrf.mxu0 }
0x119a   :  { %7040 = vmatprep.subr.mxu1 %v7548_v0  ;;  %7005 = vmatmul.mubr.msk.f32.gmra.mxu1 %vm1389_vm11, %v8665_v40 }
0x119b   :  { %7041 = vmatpush3.msra.mxu1 %v8852_v31  ;;  %v6981_v63 = vpop.f32.mrf.mxu0  ;;  %7007 = vmatprep.mubr.msk.f32.mxu1 %vm7550_vm0, %v7548_v0 }
0x119c   :  { %7076 = vmatprep.subr.mxu1 %v7548_v0 }
0x119d   :  { %v8961_v41 = vpop.f32.mrf.mxu0 }
0x119e   :  { %7008 = vmatmul.mubr.msk.f32.gmra.mxu1 %vm1389_vm11, %v8676_v42 }
0x119f   :  { %v6984_v19 = vpop.f32.mrf.mxu0  ;;  %7010 = vmatprep.mubr.msk.f32.mxu1 %vm7550_vm0, %v7548_v0 }
0x11a1   :  { %v8967_v25 = vpop.f32.mrf.mxu0 }
0x11a2   :  { %7011 = vmatmul.mubr.msk.f32.gmra.mxu1 %vm1389_vm11, %v8685_v17 }
0x11a3   :  { %v6987_v40 = vpop.f32.mrf.mxu0  ;;  %7042 = vmatprep.mubr.msk.f32.mxu1 %vm7550_vm0, %v7548_v0 }
0x11a6   :  { %7043 = vmatmul.mubr.msk.f32.vlgmr.msra.gmra.mxu1 %vm1389_vm11, %v8692_v59 }
0x11a7   :  { %7045 = vmatprep.mubr.msk.f32.mxu1 %vm7550_vm0, %v7548_v0  ;;  %7077 = vmatpush3.msra.mxu1 %v8699_v51 }
0x11a8   :  { %7078 = vmatprep.subr.mxu1 %v7548_v0 }
0x11a9   :  { %7079 = vmatpush3.msra.mxu1 %v8704_v62 }
0x11aa   :  { %7046 = vmatmul.mubr.msk.f32.gmra.mxu1 %vm1389_vm11, %v8708_v5  ;;  %7114 = vmatprep.subr.mxu1 %v7548_v0 }
0x11ab   :  { %7048 = vmatprep.mubr.msk.f32.mxu1 %vm7550_vm0, %v7548_v0 }
0x11ae   :  { %7049 = vmatmul.mubr.msk.f32.gmra.mxu1 %vm1389_vm11, %v8716_v9 }
0x11af   :  { %7051 = vmatprep.mubr.msk.f32.mxu1 %vm7550_vm0, %v7548_v0 }
0x11b2   :  { %7052 = vmatmul.mubr.msk.f32.gmra.mxu1 %vm1389_vm11, %v8723_v21 }
0x11b3   :  { %7054 = vmatprep.mubr.msk.f32.mxu1 %vm7550_vm0, %v7548_v0 }
0x11b6   :  { %7055 = vmatmul.mubr.msk.f32.gmra.mxu1 %vm1389_vm11, %v8730_v45 }
0x11b7   :  { %7080 = vmatprep.mubr.msk.f32.mxu1 %vm7550_vm0, %v7548_v0 }
0x123e   :  { %v8997_v42 = vpop.f32.mrf.mxu1 }
0x123f   :  { %v4317_v47 = vadd.f32 %v8933_v61, %v8997_v42 }
0x1240   :  { %v6956_v17 = vpop.f32.mrf.mxu1 }
0x1242   :  { %v8999_v59 = vpop.f32.mrf.mxu1 }
0x1243   :  { %v4322_v37 = vadd.f32 %v8942_v1, %v8999_v59 }
0x1244   :  { %v6959_v51 = vpop.f32.mrf.mxu1 }
0x1246   :  { %v9001_v62 = vpop.f32.mrf.mxu1 }
0x1247   :  { %v4327_v40 = vadd.f32 %v8952_v46, %v9001_v62 }
0x1248   :  { %v6962_v5 = vpop.f32.mrf.mxu1 }
0x124a   :  { %v9003_v9 = vpop.f32.mrf.mxu1 }
0x124b   :  { %v4332_v1 = vadd.f32 %v8961_v41, %v9003_v9 }
0x124c   :  { %v6965_v21 = vpop.f32.mrf.mxu1 }
0x124e   :  { %v9005_v39 = vpop.f32.mrf.mxu1 }
0x124f   :  { %v4337_v62 = vadd.f32 %v8967_v25, %v9005_v39 }
0x1250   :  { %v6968_v14 = vpop.f32.mrf.mxu1 }
0x1252   :  { %v4406_v53 = vpop.f32.mrf.mxu1 }
0x1253   :  { %7018 = vmatmul.mubr.msk.f32.vlgmr.msra.gmra.mxu0 %vm164_vm2, %v4406_v53 }
0x1254   :  { %v7000_v45 = vpop.f32.mrf.mxu1  ;;  %7020 = vmatprep.mubr.msk.f32.mxu0 %vm7550_vm0, %v7548_v0  ;;  %7058 = vmatpush3.msk.msra.mxu0 %vm180_vm1, %v8750_v54 }
0x1255   :  { %7059 = vmatprep.subr.mxu0 %v7548_v0 }
0x1256   :  { %v4411_v32 = vpop.f32.mrf.mxu1  ;;  %7060 = vmatpush3.msra.mxu0 %v8756_v58 }
0x1257   :  { %7021 = vmatmul.mubr.msk.f32.gmra.mxu0 %vm164_vm2, %v4411_v32  ;;  %7095 = vmatprep.subr.mxu0 %v7548_v0 }
0x1258   :  { %v7003_v16 = vpop.f32.mrf.mxu1  ;;  %7023 = vmatprep.mubr.msk.f32.mxu0 %vm7550_vm0, %v7548_v0 }
0x125a   :  { %v4416_v57 = vpop.f32.mrf.mxu1 }
0x125b   :  { %7024 = vmatmul.mubr.msk.f32.gmra.mxu0 %vm164_vm2, %v4416_v57 }
0x125c   :  { %v7006_v60 = vpop.f32.mrf.mxu1  ;;  %7026 = vmatprep.mubr.msk.f32.mxu0 %vm7550_vm0, %v7548_v0 }
0x125e   :  { %v4421_v54 = vpop.f32.mrf.mxu1 }
0x125f   :  { %7027 = vmatmul.mubr.msk.f32.gmra.mxu0 %vm164_vm2, %v4421_v54 }
0x1260   :  { %v7009_v30 = vpop.f32.mrf.mxu1  ;;  %7029 = vmatprep.mubr.msk.f32.mxu0 %vm7550_vm0, %v7548_v0 }
0x1262   :  { %v4426_v58 = vpop.f32.mrf.mxu1 }
0x1263   :  { %7030 = vmatmul.mubr.msk.f32.gmra.mxu0 %vm164_vm2, %v4426_v58 }
0x1264   :  { %v7012_v6 = vpop.f32.mrf.mxu1  ;;  %7061 = vmatprep.mubr.msk.f32.mxu0 %vm7550_vm0, %v7548_v0 }
0x1266   :  { %v4606_v10 = vpop.f32.mrf.mxu1 }
0x1267   :  { %7062 = vmatmul.mubr.msk.f32.vlgmr.msra.gmra.mxu0 %vm164_vm2, %v4606_v10 }
0x1268   :  { %v7044_v43 = vpop.f32.mrf.mxu1  ;;  %7064 = vmatprep.mubr.msk.f32.mxu0 %vm7550_vm0, %v7548_v0  ;;  %7096 = vmatpush3.msk.msra.mxu0 %vm180_vm1, %v4901_v13 }
0x1269   :  { %7097 = vmatprep.subr.mxu0 %v7548_v0 }
0x126a   :  { %v4611_v15 = vpop.f32.mrf.mxu1 }
0x126b   :  { %7065 = vmatmul.mubr.msk.f32.gmra.mxu0 %vm164_vm2, %v4611_v15 }
0x126c   :  { %v7047_v8 = vpop.f32.mrf.mxu1  ;;  %7067 = vmatprep.mubr.msk.f32.mxu0 %vm7550_vm0, %v7548_v0 }
0x126e   :  { %v4616_v26 = vpop.f32.mrf.mxu1 }
0x126f   :  { %7068 = vmatmul.mubr.msk.f32.gmra.mxu0 %vm164_vm2, %v4616_v26 }
0x1270   :  { %v7050_v22 = vpop.f32.mrf.mxu1  ;;  %7070 = vmatprep.mubr.msk.f32.mxu0 %vm7550_vm0, %v7548_v0 }
0x1272   :  { %v4621_v56 = vpop.f32.mrf.mxu1 }
0x1273   :  { %7071 = vmatmul.mubr.msk.f32.gmra.mxu0 %vm164_vm2, %v4621_v56 }
0x1274   :  { %v7053_v52 = vpop.f32.mrf.mxu1  ;;  %7073 = vmatprep.mubr.msk.f32.mxu0 %vm7550_vm0, %v7548_v0 }
0x1276   :  { %v4626_v2 = vpop.f32.mrf.mxu1 }
0x1277   :  { %7074 = vmatmul.mubr.msk.f32.gmra.mxu0 %vm164_vm2, %v4626_v2 }
0x1278   :  { %v7056_v28 = vpop.f32.mrf.mxu1  ;;  %7099 = vmatprep.mubr.msk.f32.mxu0 %vm7550_vm0, %v7548_v0 }
0x1313   :  { %v4511_v20 = vpop.f32.mrf.mxu0 }
0x1314   :  { %v4535_v34 = vadd.f32 %v4511_v20, %v4317_v47 }
0x1315   :  { %v7019_v18 = vpop.f32.mrf.mxu0 }
0x1317   :  { %v4516_v49 = vpop.f32.mrf.mxu0 }
0x1318   :  { %v4536_v50 = vadd.f32 %v4516_v49, %v4322_v37 }
0x1319   :  { %v7022_v29 = vpop.f32.mrf.mxu0 }
0x131b   :  { %v4521_v38 = vpop.f32.mrf.mxu0 }
0x131c   :  { %v4537_v21 = vadd.f32 %v4521_v38, %v4327_v40 }
0x131d   :  { %v7025_v36 = vpop.f32.mrf.mxu0 }
0x131f   :  { %v4526_v23 = vpop.f32.mrf.mxu0 }
0x1320   :  { %v4538_v32 = vadd.f32 %v4526_v23, %v4332_v1 }
0x1321   :  { %v7028_v7 = vpop.f32.mrf.mxu0 }
0x1323   :  { %v4531_v35 = vpop.f32.mrf.mxu0 }
0x1324   :  { %v4539_v58 = vadd.f32 %v4531_v35, %v4337_v62 }
0x1325   :  { %v7031_v24 = vpop.f32.mrf.mxu0 }
0x1327   :  { %v4711_v33 = vpop.f32.mrf.mxu0 }
0x1328   :  { %v4735_v3 = vadd.f32 %v4711_v33, %v4535_v34 }
0x1329   :  { %v7063_v4 = vpop.f32.mrf.mxu0 }
0x132a   :  { %v4740_v63 = vadd.f32 %v8792_v27, %v4735_v3 }
0x132b   :  { %v4716_v19 = vpop.f32.mrf.mxu0 }
0x132c   :  { %v4750_v17 = vmin.f32 %v4740_v63, 20.0  ;;  %v4736_v51 = vadd.f32 %v4716_v19, %v4536_v50  ;;  %vm4745_vm1 = vcmp.gt.f32.partialorder %v4740_v63, 20.0  ;;  %v4900_v19 = vld [vmem:[%s9045_s27] sm:$0xff] }
0x132d   :  { %v7066_v5 = vpop.f32.mrf.mxu0  ;;  %7098 = vmatpush3.msra.mxu0 %v4900_v19 }
0x132e   :  { %v4755_v61 = vmul.f32 1.442695, %v4750_v17  ;;  %v4741_v42 = vadd.f32 %v8792_v27, %v4736_v51  ;;  %7145 = vmatprep.subr.mxu0 %v7548_v0 }
0x132f   :  { %v4721_v14 = vpop.f32.mrf.mxu0 }
0x1330   :  { %7441 = vpow2.f32 %v4755_v61  ;;  %v4751_v59 = vmin.f32 %v4741_v42, 20.0  ;;  %v4737_v53 = vadd.f32 %v4721_v14, %v4537_v21  ;;  %vm4746_vm11 = vcmp.gt.f32.partialorder %v4741_v42, 20.0 }
0x1331   :  { %v7069_v45 = vpop.f32.mrf.mxu0 }
0x1332   :  { %v4757_v16 = vmul.f32 1.442695, %v4751_v59  ;;  %v4742_v57 = vadd.f32 %v8792_v27, %v4737_v53 }
0x1333   :  { %v4726_v46 = vpop.f32.mrf.mxu0 }
0x1334   :  { %7443 = vpow2.f32 %v4757_v16  ;;  %v4752_v60 = vmin.f32 %v4742_v57, 20.0  ;;  %v4738_v54 = vadd.f32 %v4726_v46, %v4538_v32  ;;  %vm4747_vm6 = vcmp.gt.f32.partialorder %v4742_v57, 20.0 }
0x1335   :  { %v7072_v30 = vpop.f32.mrf.mxu0 }
0x1336   :  { %v4759_v6 = vmul.f32 1.442695, %v4752_v60  ;;  %v4743_v41 = vadd.f32 %v8792_v27, %v4738_v54 }
0x1337   :  { %v4731_v9 = vpop.f32.mrf.mxu0 }
0x1338   :  { %7445 = vpow2.f32 %v4759_v6  ;;  %v4753_v10 = vmin.f32 %v4743_v41, 20.0  ;;  %v4739_v43 = vadd.f32 %v4731_v9, %v4539_v58  ;;  %vm4748_vm7 = vcmp.gt.f32.partialorder %v4743_v41, 20.0  ;;  %v5060_v9 = vld [vmem:[%s5536_s1 + $0x18] sm:$0xff] }
0x1339   :  { %v7075_v15 = vpop.f32.mrf.mxu0 }
0x133a   :  { %v4761_v8 = vmul.f32 1.442695, %v4753_v10  ;;  %v4744_v26 = vadd.f32 %v8792_v27, %v4739_v43  ;;  %v5059_v10 = vld [vmem:[%s5536_s1 + $0x10] sm:$0xff]  ;;  %v5058_v43 = vld [vmem:[%s5536_s1 + $0x8] sm:$0xff]  ;;  %v5057_v15 = vld [vmem:[%s5536_s1] sm:$0xff] }
0x133c   :  { %7447 = vpow2.f32 %v4761_v8  ;;  %v4754_v22 = vmin.f32 %v4744_v26, 20.0  ;;  %vm4749_vm8 = vcmp.gt.f32.partialorder %v4744_v26, 20.0  ;;  %v5771_v8 = vld [vmem:[%s5535_s5] ss:$0 sm:$0xff] }
0x133d   :  { %v7442_v56 = vpop.eup %7441 }
0x133e   :  { %v4765_v25 = vadd.f32 1.0, %v7442_v56  ;;  %v4763_v39 = vmul.f32 1.442695, %v4754_v22 }
0x1340   :  { %7449 = vlog2.f32 %v4765_v25 }
0x1341   :  { %v7444_v52 = vpop.eup %7443  ;;  %7451 = vpow2.f32 %v4763_v39 }
0x1342   :  { %v4766_v2 = vadd.f32 1.0, %v7444_v52 }
0x1344   :  { %7453 = vlog2.f32 %v4766_v2 }
0x1345   :  { %v7446_v28 = vpop.eup %7445 }
0x1346   :  { %v4767_v13 = vadd.f32 1.0, %v7446_v28 }
0x1348   :  { %7455 = vlog2.f32 %v4767_v13 }
0x1349   :  { %v7448_v20 = vpop.eup %7447 }
0x134a   :  { %v4768_v18 = vadd.f32 1.0, %v7448_v20 }
0x134c   :  { %7457 = vlog2.f32 %v4768_v18 }
0x134d   :  { %v7450_v49 = vpop.eup %7449 }
0x134e   :  { %v7452_v29 = vpop.eup %7451  ;;  %v4771_v38 = vmul.f32 0.6931472, %v7450_v49 }
0x134f   :  { %v4769_v27 = vadd.f32 1.0, %v7452_v29 }
0x1350   :  { %v4780_v36 = vsel %vm4745_vm1, %v4740_v63, %v4771_v38 }
0x1351   :  { %v7454_v23 = vpop.eup %7453  ;;  %7459 = vlog2.f32 %v4769_v27  ;;  %7081 = vmatmul.mubr.msk.f32.vlgmr.msra.gmra.mxu1 %vm2204_vm12, %v4780_v36 }
0x1352   :  { %7083 = vmatprep.mubr.msk.f32.mxu1 %vm7550_vm0, %v7548_v0  ;;  %v4773_v7 = vmul.f32 0.6931472, %v7454_v23 }
0x1354   :  { %v4781_v35 = vsel %vm4746_vm11, %v4741_v42, %v4773_v7 }
0x1355   :  { %v7456_v47 = vpop.eup %7455  ;;  %7084 = vmatmul.mubr.msk.f32.gmra.mxu1 %vm2204_vm12, %v4781_v35 }
0x1356   :  { %7086 = vmatprep.mubr.msk.f32.mxu1 %vm7550_vm0, %v7548_v0  ;;  %v4775_v24 = vmul.f32 0.6931472, %v7456_v47 }
0x1358   :  { %v4782_v34 = vsel %vm4747_vm6, %v4742_v57, %v4775_v24 }
0x1359   :  { %v7458_v33 = vpop.eup %7457  ;;  %7087 = vmatmul.mubr.msk.f32.gmra.mxu1 %vm2204_vm12, %v4782_v34 }
0x135a   :  { %7089 = vmatprep.mubr.msk.f32.mxu1 %vm7550_vm0, %v7548_v0  ;;  %v4777_v37 = vmul.f32 0.6931472, %v7458_v33 }
0x135c   :  { %v4783_v3 = vsel %vm4748_vm7, %v4743_v41, %v4777_v37  ;;  %v5062_v41 = vld [vmem:[%s5536_s1 + $0x28] sm:$0xff] }
0x135d   :  { %7090 = vmatmul.mubr.msk.f32.gmra.mxu1 %vm2204_vm12, %v4783_v3 }
0x135e   :  { %v7460_v4 = vpop.eup %7459  ;;  %7092 = vmatprep.mubr.msk.f32.mxu1 %vm7550_vm0, %v7548_v0 }
0x135f   :  { %v4779_v50 = vmul.f32 0.6931472, %v7460_v4 }
0x1361   :  { %v4784_v63 = vsel %vm4749_vm8, %v4744_v26, %v4779_v50 }
0x1362   :  { %7093 = vmatmul.mubr.msk.f32.gmra.mxu1 %vm2204_vm12, %v4784_v63 }
0x1363   :  { %7130 = vmatprep.mubr.msk.f32.mxu1 %vm7550_vm0, %v7548_v0 }
0x1411   :  { %v4866_v40 = vpop.f32.mrf.mxu1 }
0x1412   :  { %v4867_v17 = vadd.f32 %v8826_v44, %v4866_v40 }
0x1413   :  { %v7082_v51 = vpop.f32.mrf.mxu1 }
0x1414   :  { %v4890_v5 = vmul.f32 0.25, %v4867_v17 }
0x1415   :  { %v4871_v21 = vpop.f32.mrf.mxu1 }
0x1416   :  { %v4895_v61 = vadd.f32 %v4890_v5, %v8852_v31  ;;  %v4872_v42 = vadd.f32 %v8826_v44, %v4871_v21 }
0x1417   :  { %v7085_v14 = vpop.f32.mrf.mxu1 }
0x1418   :  { %v4891_v1 = vmul.f32 0.25, %v4872_v42  ;;  %7100 = vmatmul.mubr.msk.f32.vlgmr.msra.gmra.mxu0 %vm164_vm2, %v4895_v61 }
0x1419   :  { %v4876_v59 = vpop.f32.mrf.mxu1  ;;  %7102 = vmatprep.mubr.msk.f32.mxu0 %vm7550_vm0, %v7548_v0 }
0x141a   :  { %v4896_v53 = vadd.f32 %v4891_v1, %v8847_v48  ;;  %v4877_v45 = vadd.f32 %v8826_v44, %v4876_v59 }
0x141b   :  { %v7088_v32 = vpop.f32.mrf.mxu1 }
0x141c   :  { %v4892_v16 = vmul.f32 0.25, %v4877_v45  ;;  %7103 = vmatmul.mubr.msk.f32.gmra.mxu0 %vm164_vm2, %v4896_v53 }
0x141d   :  { %v4881_v57 = vpop.f32.mrf.mxu1  ;;  %7105 = vmatprep.mubr.msk.f32.mxu0 %vm7550_vm0, %v7548_v0 }
0x141e   :  { %v4897_v31 = vadd.f32 %v4892_v16, %v8842_v12  ;;  %v4882_v46 = vadd.f32 %v8826_v44, %v4881_v57 }
0x141f   :  { %v7091_v62 = vpop.f32.mrf.mxu1 }
0x1420   :  { %v4893_v60 = vmul.f32 0.25, %v4882_v46  ;;  %7106 = vmatmul.mubr.msk.f32.gmra.mxu0 %vm164_vm2, %v4897_v31 }
0x1421   :  { %7108 = vmatprep.mubr.msk.f32.mxu0 %vm7550_vm0, %v7548_v0 }
0x1422   :  { %v4898_v48 = vadd.f32 %v4893_v60, %v8837_v11  ;;  %v4886_v54 = vpop.f32.mrf.mxu1  ;;  %v5063_v11 = vld [vmem:[%s5536_s1 + $0x30] sm:$0xff] }
0x1423   :  { %v4887_v30 = vadd.f32 %v8826_v44, %v4886_v54  ;;  %v5064_v44 = vld [vmem:[%s5536_s1 + $0x38] sm:$0xff] }
0x1424   :  { %v7094_v58 = vpop.f32.mrf.mxu1  ;;  %7109 = vmatmul.mubr.msk.f32.gmra.mxu0 %vm164_vm2, %v4898_v48  ;;  %7115 = vmatpush3.msra.mxu1 %v5064_v44  ;;  %v5220_v44 = vld [vmem:[%s5538_s10 + $0x18] sm:$0xff] }
0x1425   :  { %v4894_v6 = vmul.f32 0.25, %v4887_v30  ;;  %7111 = vmatprep.mubr.msk.f32.mxu0 %vm7550_vm0, %v7548_v0  ;;  %7116 = vmatprep.subr.mxu1 %v7548_v0  ;;  %v5224_v30 = vld [vmem:[%s5538_s10 + $0x38] sm:$0xff]  ;;  %v5223_v58 = vld [vmem:[%s5538_s10 + $0x30] sm:$0xff] }
0x1426   :  { %7117 = vmatpush3.msra.mxu1 %v5063_v11  ;;  %7146 = vmatpush3.msra.mxu0 %v5224_v30  ;;  %v5219_v11 = vld [vmem:[%s5538_s10 + $0x10] sm:$0xff]  ;;  %v5380_v30 = vld [vmem:[%s5540_s18 + $0x18] sm:$0xff] }
0x1427   :  { %v4899_v12 = vadd.f32 %v4894_v6, %v8834_v55  ;;  %7118 = vmatprep.subr.mxu1 %v7548_v0  ;;  %v5061_v55 = vld [vmem:[%s5536_s1 + $0x20] sm:$0xff]  ;;  %7147 = vmatprep.subr.mxu0 %v7548_v0  ;;  %v5222_v6 = vld [vmem:[%s5538_s10 + $0x28] sm:$0xff] }
0x1428   :  { %7119 = vmatpush3.msra.mxu1 %v5062_v41  ;;  %7148 = vmatpush3.msra.mxu0 %v5223_v58  ;;  %v5218_v41 = vld [vmem:[%s5538_s10 + $0x8] sm:$0xff]  ;;  %v5379_v58 = vld [vmem:[%s5540_s18 + $0x10] sm:$0xff] }
0x1429   :  { %7112 = vmatmul.mubr.msk.f32.gmra.mxu0 %vm164_vm2, %v4899_v12  ;;  %7120 = vmatprep.subr.mxu1 %v7548_v0  ;;  %v5221_v12 = vld [vmem:[%s5538_s10 + $0x20] sm:$0xff] }
0x142a   :  { %7161 = vmatprep.mubr.msk.f32.mxu0 %vm7550_vm0, %v7548_v0  ;;  %7121 = vmatpush3.msra.mxu1 %v5061_v55  ;;  %v5217_v55 = vld [vmem:[%s5538_s10] sm:$0xff] }
0x142b   :  { %7122 = vmatprep.subr.mxu1 %v7548_v0  ;;  %7149 = vmatprep.subr.mxu0 %v7548_v0 }
0x142c   :  { %7123 = vmatpush3.msra.mxu1 %v5060_v9  ;;  %7150 = vmatpush3.msra.mxu0 %v5222_v6  ;;  %v5778_v9 = vld [vmem:[%s5537_s14] ss:$0 sm:$0xff]  ;;  %v5378_v6 = vld [vmem:[%s5540_s18 + $0x8] sm:$0xff] }
0x142d   :  { %7124 = vmatprep.subr.mxu1 %v7548_v0  ;;  %7151 = vmatprep.subr.mxu0 %v7548_v0 }
0x142e   :  { %7125 = vmatpush3.msra.mxu1 %v5059_v10  ;;  %7152 = vmatpush3.msra.mxu0 %v5221_v12  ;;  %v5377_v12 = vld [vmem:[%s5540_s18] sm:$0xff] }
0x142f   :  { %7126 = vmatprep.subr.mxu1 %v7548_v0  ;;  %7153 = vmatprep.subr.mxu0 %v7548_v0 }
0x1430   :  { %7127 = vmatpush3.msra.mxu1 %v5058_v43  ;;  %7154 = vmatpush3.msra.mxu0 %v5220_v44  ;;  %v5784_v44 = vld [vmem:[%s5539_s23] ss:$0 sm:$0xff] }
0x1431   :  { %7128 = vmatprep.subr.mxu1 %v7548_v0  ;;  %7155 = vmatprep.subr.mxu0 %v7548_v0 }
0x1432   :  { %7129 = vmatpush3.msra.mxu1 %v5057_v15  ;;  %7156 = vmatpush3.msra.mxu0 %v5219_v11 }
0x1433   :  { %7176 = vmatprep.subr.mxu1 %v7548_v0  ;;  %7157 = vmatprep.subr.mxu0 %v7548_v0 }
0x1434   :  { %7158 = vmatpush3.msra.mxu0 %v5218_v41 }
0x1435   :  { %7159 = vmatprep.subr.mxu0 %v7548_v0 }
0x1436   :  { %7160 = vmatpush3.msra.mxu0 %v5217_v55 }
0x14d8   :  { %v4993_v26 = vpop.f32.mrf.mxu0 }
0x14d9   :  { %v4994_v22 = vadd.f32 %v5771_v8, %v4993_v26 }
0x14da   :  { %v7101_v56 = vpop.f32.mrf.mxu0 }
0x14db   :  { %v5022_v25 = vmin.f32 %v4994_v22, 20.0  ;;  %vm5017_vm2 = vcmp.gt.f32.partialorder %v4994_v22, 20.0 }
0x14dc   :  { %v4998_v39 = vpop.f32.mrf.mxu0 }
0x14dd   :  { %v5027_v52 = vmul.f32 1.442695, %v5022_v25  ;;  %v4999_v2 = vadd.f32 %v5771_v8, %v4998_v39 }
0x14de   :  { %v7104_v28 = vpop.f32.mrf.mxu0 }
0x14df   :  { %7461 = vpow2.f32 %v5027_v52  ;;  %v5023_v13 = vmin.f32 %v4999_v2, 20.0  ;;  %vm5018_vm12 = vcmp.gt.f32.partialorder %v4999_v2, 20.0 }
0x14e0   :  { %v5003_v20 = vpop.f32.mrf.mxu0 }
0x14e1   :  { %v5029_v18 = vmul.f32 1.442695, %v5023_v13  ;;  %v5004_v49 = vadd.f32 %v5771_v8, %v5003_v20 }
0x14e2   :  { %v7107_v29 = vpop.f32.mrf.mxu0 }
0x14e3   :  { %7463 = vpow2.f32 %v5029_v18  ;;  %v5024_v38 = vmin.f32 %v5004_v49, 20.0  ;;  %vm5019_vm9 = vcmp.gt.f32.partialorder %v5004_v49, 20.0 }
0x14e4   :  { %v5008_v27 = vpop.f32.mrf.mxu0 }
0x14e5   :  { %v5031_v36 = vmul.f32 1.442695, %v5024_v38  ;;  %v5009_v23 = vadd.f32 %v5771_v8, %v5008_v27 }
0x14e6   :  { %v7110_v7 = vpop.f32.mrf.mxu0 }
0x14e7   :  { %7465 = vpow2.f32 %v5031_v36  ;;  %v5025_v35 = vmin.f32 %v5009_v23, 20.0  ;;  %vm5020_vm10 = vcmp.gt.f32.partialorder %v5009_v23, 20.0 }
0x14e9   :  { %v5033_v47 = vmul.f32 1.442695, %v5025_v35  ;;  %v5013_v24 = vpop.f32.mrf.mxu0 }
0x14ea   :  { %v5014_v34 = vadd.f32 %v5771_v8, %v5013_v24 }
0x14eb   :  { %7467 = vpow2.f32 %v5033_v47  ;;  %v7113_v33 = vpop.f32.mrf.mxu0 }
0x14ec   :  { %v7462_v37 = vpop.eup %7461  ;;  %v5026_v3 = vmin.f32 %v5014_v34, 20.0  ;;  %vm5021_vm13 = vcmp.gt.f32.partialorder %v5014_v34, 20.0 }
0x14ed   :  { %v5037_v4 = vadd.f32 1.0, %v7462_v37 }
0x14ee   :  { %v5035_v50 = vmul.f32 1.442695, %v5026_v3 }
0x14ef   :  { %7469 = vlog2.f32 %v5037_v4 }
0x14f0   :  { %v7464_v63 = vpop.eup %7463  ;;  %7471 = vpow2.f32 %v5035_v50 }
0x14f1   :  { %v5038_v19 = vadd.f32 1.0, %v7464_v63 }
0x14f3   :  { %7473 = vlog2.f32 %v5038_v19 }
0x14f4   :  { %v7466_v40 = vpop.eup %7465 }
0x14f5   :  { %v5039_v17 = vadd.f32 1.0, %v7466_v40 }
0x14f7   :  { %7475 = vlog2.f32 %v5039_v17 }
0x14f8   :  { %v7468_v51 = vpop.eup %7467 }
0x14f9   :  { %v5040_v5 = vadd.f32 1.0, %v7468_v51 }
0x14fb   :  { %7477 = vlog2.f32 %v5040_v5 }
0x14fc   :  { %v7470_v21 = vpop.eup %7469 }
0x14fd   :  { %v7472_v61 = vpop.eup %7471  ;;  %v5043_v42 = vmul.f32 0.6931472, %v7470_v21 }
0x14fe   :  { %v5041_v14 = vadd.f32 1.0, %v7472_v61 }
0x14ff   :  { %v5052_v1 = vsel %vm5017_vm2, %v4994_v22, %v5043_v42 }
0x1500   :  { %v7474_v59 = vpop.eup %7473  ;;  %7479 = vlog2.f32 %v5041_v14  ;;  %7131 = vmatmul.mubr.msk.f32.vlgmr.msra.gmra.mxu1 %vm329_vm3, %v5052_v1 }
0x1501   :  { %v5045_v53 = vmul.f32 0.6931472, %v7474_v59  ;;  %7133 = vmatprep.mubr.msk.f32.mxu1 %vm7550_vm0, %v7548_v0 }
0x1503   :  { %v5053_v45 = vsel %vm5018_vm12, %v4999_v2, %v5045_v53  ;;  %vm5497_vm12 = vcmask 64512  }
0x1504   :  { %v7476_v32 = vpop.eup %7475  ;;  %7134 = vmatmul.mubr.msk.f32.gmra.mxu1 %vm329_vm3, %v5053_v45 }
0x1505   :  { %v5047_v16 = vmul.f32 0.6931472, %v7476_v32  ;;  %7136 = vmatprep.mubr.msk.f32.mxu1 %vm7550_vm0, %v7548_v0 }
0x1507   :  { %v5054_v57 = vsel %vm5019_vm9, %v5004_v49, %v5047_v16 }
0x1508   :  { %v7478_v31 = vpop.eup %7477  ;;  %7137 = vmatmul.mubr.msk.f32.gmra.mxu1 %vm329_vm3, %v5054_v57 }
0x1509   :  { %v5049_v46 = vmul.f32 0.6931472, %v7478_v31  ;;  %7139 = vmatprep.mubr.msk.f32.mxu1 %vm7550_vm0, %v7548_v0 }
0x150b   :  { %v5055_v62 = vsel %vm5020_vm10, %v5009_v23, %v5049_v46 }
0x150c   :  { %7140 = vmatmul.mubr.msk.f32.gmra.mxu1 %vm329_vm3, %v5055_v62  ;;  %v5384_v62 = vld [vmem:[%s5540_s18 + $0x38] sm:$0xff] }
0x150d   :  { %v7480_v60 = vpop.eup %7479  ;;  %7142 = vmatprep.mubr.msk.f32.mxu1 %vm7550_vm0, %v7548_v0  ;;  %7177 = vmatpush3.msra.mxu1 %v5384_v62 }
0x150e   :  { %v5051_v48 = vmul.f32 0.6931472, %v7480_v60  ;;  %7178 = vmatprep.subr.mxu1 %v7548_v0  ;;  %v5383_v60 = vld [vmem:[%s5540_s18 + $0x30] sm:$0xff] }
0x150f   :  { %7179 = vmatpush3.msra.mxu1 %v5383_v60 }
0x1510   :  { %v5056_v54 = vsel %vm5021_vm13, %v5014_v34, %v5051_v48  ;;  %7180 = vmatprep.subr.mxu1 %v7548_v0  ;;  %v5382_v48 = vld [vmem:[%s5540_s18 + $0x28] sm:$0xff] }
0x1511   :  { %7143 = vmatmul.mubr.msk.f32.gmra.mxu1 %vm329_vm3, %v5056_v54  ;;  %v5381_v54 = vld [vmem:[%s5540_s18 + $0x20] sm:$0xff] }
0x1512   :  { %7192 = vmatprep.mubr.msk.f32.mxu1 %vm7550_vm0, %v7548_v0  ;;  %7181 = vmatpush3.msra.mxu1 %v5382_v48 }
0x1513   :  { %7182 = vmatprep.subr.mxu1 %v7548_v0 }
0x1514   :  { %7183 = vmatpush3.msra.mxu1 %v5381_v54 }
0x1515   :  { %7184 = vmatprep.subr.mxu1 %v7548_v0 }
0x1516   :  { %7185 = vmatpush3.msra.mxu1 %v5380_v30 }
0x1517   :  { %7186 = vmatprep.subr.mxu1 %v7548_v0 }
0x1518   :  { %7187 = vmatpush3.msra.mxu1 %v5379_v58 }
0x1519   :  { %7188 = vmatprep.subr.mxu1 %v7548_v0 }
0x151a   :  { %7189 = vmatpush3.msra.mxu1 %v5378_v6 }
0x151b   :  { %7190 = vmatprep.subr.mxu1 %v7548_v0 }
0x151c   :  { %7191 = vmatpush3.msra.mxu1 %v5377_v12 }
0x15c0   :  { %v5153_v10 = vpop.f32.mrf.mxu1 }
0x15c1   :  { %v5154_v43 = vadd.f32 %v5778_v9, %v5153_v10 }
0x15c2   :  { %v7132_v15 = vpop.f32.mrf.mxu1 }
0x15c3   :  { %v5182_v8 = vmin.f32 %v5154_v43, 20.0  ;;  %vm5177_vm14 = vcmp.gt.f32.partialorder %v5154_v43, 20.0 }
0x15c4   :  { %v5158_v26 = vpop.f32.mrf.mxu1 }
0x15c5   :  { %v5187_v22 = vmul.f32 1.442695, %v5182_v8  ;;  %v5159_v56 = vadd.f32 %v5778_v9, %v5158_v26 }
0x15c6   :  { %v7135_v25 = vpop.f32.mrf.mxu1 }
0x15c7   :  { %7481 = vpow2.f32 %v5187_v22  ;;  %v5183_v39 = vmin.f32 %v5159_v56, 20.0  ;;  %vm5178_vm15 = vcmp.gt.f32.partialorder %v5159_v56, 20.0 }
0x15c8   :  { %v5163_v52 = vpop.f32.mrf.mxu1 }
0x15c9   :  { %v5189_v2 = vmul.f32 1.442695, %v5183_v39  ;;  %v5164_v28 = vadd.f32 %v5778_v9, %v5163_v52 }
0x15ca   :  { %v7138_v13 = vpop.f32.mrf.mxu1 }
0x15cb   :  { %7483 = vpow2.f32 %v5189_v2  ;;  %v5184_v20 = vmin.f32 %v5164_v28, 20.0  ;;  %vm5179_vm4 = vcmp.gt.f32.partialorder %v5164_v28, 20.0 }
0x15cc   :  { %v5168_v18 = vpop.f32.mrf.mxu1 }
0x15cd   :  { %v5191_v49 = vmul.f32 1.442695, %v5184_v20  ;;  %v5169_v29 = vadd.f32 %v5778_v9, %v5168_v18 }
0x15ce   :  { %v7141_v38 = vpop.f32.mrf.mxu1 }
0x15cf   :  { %7485 = vpow2.f32 %v5191_v49  ;;  %v5185_v27 = vmin.f32 %v5169_v29, 20.0  ;;  %vm5180_vm5 = vcmp.gt.f32.partialorder %v5169_v29, 20.0 }
0x15d1   :  { %v5193_v36 = vmul.f32 1.442695, %v5185_v27  ;;  %v5173_v23 = vpop.f32.mrf.mxu1 }
0x15d2   :  { %v5174_v7 = vadd.f32 %v5778_v9, %v5173_v23 }
0x15d3   :  { %7487 = vpow2.f32 %v5193_v36  ;;  %v7144_v35 = vpop.f32.mrf.mxu1 }
0x15d4   :  { %v7482_v47 = vpop.eup %7481  ;;  %v5186_v24 = vmin.f32 %v5174_v7, 20.0  ;;  %vm5181_vm1 = vcmp.gt.f32.partialorder %v5174_v7, 20.0 }
0x15d5   :  { %v5197_v34 = vadd.f32 1.0, %v7482_v47 }
0x15d6   :  { %v5195_v33 = vmul.f32 1.442695, %v5186_v24 }
0x15d7   :  { %7489 = vlog2.f32 %v5197_v34 }
0x15d8   :  { %v7484_v37 = vpop.eup %7483  ;;  %7491 = vpow2.f32 %v5195_v33 }
0x15d9   :  { %v5198_v3 = vadd.f32 1.0, %v7484_v37 }
0x15db   :  { %7493 = vlog2.f32 %v5198_v3 }
0x15dc   :  { %v7486_v4 = vpop.eup %7485 }
0x15dd   :  { %v5199_v50 = vadd.f32 1.0, %v7486_v4 }
0x15df   :  { %7495 = vlog2.f32 %v5199_v50 }
0x15e0   :  { %v7488_v63 = vpop.eup %7487 }
0x15e1   :  { %v5200_v19 = vadd.f32 1.0, %v7488_v63 }
0x15e3   :  { %7497 = vlog2.f32 %v5200_v19 }
0x15e4   :  { %v7490_v40 = vpop.eup %7489 }
0x15e5   :  { %v7492_v17 = vpop.eup %7491  ;;  %v5203_v51 = vmul.f32 0.6931472, %v7490_v40 }
0x15e6   :  { %v5201_v5 = vadd.f32 1.0, %v7492_v17 }
0x15e7   :  { %v5212_v21 = vsel %vm5177_vm14, %v5154_v43, %v5203_v51 }
0x15e8   :  { %v7494_v61 = vpop.eup %7493  ;;  %7499 = vlog2.f32 %v5201_v5  ;;  %7162 = vmatmul.mubr.msk.f32.vlgmr.msra.gmra.mxu0 %vm329_vm3, %v5212_v21 }
0x15e9   :  { %v5205_v42 = vmul.f32 0.6931472, %v7494_v61  ;;  %7164 = vmatprep.mubr.msk.f32.mxu0 %vm7550_vm0, %v7548_v0 }
0x15eb   :  { %v5213_v14 = vsel %vm5178_vm15, %v5159_v56, %v5205_v42 }
0x15ec   :  { %v7496_v1 = vpop.eup %7495  ;;  %7165 = vmatmul.mubr.msk.f32.gmra.mxu0 %vm329_vm3, %v5213_v14 }
0x15ed   :  { %v5207_v59 = vmul.f32 0.6931472, %v7496_v1  ;;  %7167 = vmatprep.mubr.msk.f32.mxu0 %vm7550_vm0, %v7548_v0 }
0x15ef   :  { %v5214_v53 = vsel %vm5179_vm4, %v5164_v28, %v5207_v59 }
0x15f0   :  { %v7498_v45 = vpop.eup %7497  ;;  %7168 = vmatmul.mubr.msk.f32.gmra.mxu0 %vm329_vm3, %v5214_v53 }
0x15f1   :  { %v5209_v32 = vmul.f32 0.6931472, %v7498_v45  ;;  %7170 = vmatprep.mubr.msk.f32.mxu0 %vm7550_vm0, %v7548_v0 }
0x15f3   :  { %v5215_v16 = vsel %vm5180_vm5, %v5169_v29, %v5209_v32 }
0x15f4   :  { %7171 = vmatmul.mubr.msk.f32.gmra.mxu0 %vm329_vm3, %v5215_v16  ;;  %v5790_v16 = vld [vmem:[%s5541_s21] ss:$0 sm:$0xff] }
0x15f5   :  { %v7500_v57 = vpop.eup %7499  ;;  %7173 = vmatprep.mubr.msk.f32.mxu0 %vm7550_vm0, %v7548_v0 }
0x15f6   :  { %v5211_v31 = vmul.f32 0.6931472, %v7500_v57 }
0x15f8   :  { %v5216_v46 = vsel %vm5181_vm1, %v5174_v7, %v5211_v31 }
0x15f9   :  { %7174 = vmatmul.mubr.msk.f32.gmra.mxu0 %vm329_vm3, %v5216_v46 }
0x16a8   :  { %v5313_v11 = vpop.f32.mrf.mxu0 }
0x16a9   :  { %v5314_v41 = vadd.f32 %v5784_v44, %v5313_v11 }
0x16aa   :  { %v7163_v55 = vpop.f32.mrf.mxu0 }
0x16ab   :  { %v5342_v9 = vmin.f32 %v5314_v41, 20.0  ;;  %vm5337_vm11 = vcmp.gt.f32.partialorder %v5314_v41, 20.0 }
0x16ac   :  { %v5318_v10 = vpop.f32.mrf.mxu0 }
0x16ad   :  { %v5347_v43 = vmul.f32 1.442695, %v5342_v9  ;;  %v5319_v15 = vadd.f32 %v5784_v44, %v5318_v10 }
0x16ae   :  { %v7166_v8 = vpop.f32.mrf.mxu0 }
0x16af   :  { %7501 = vpow2.f32 %v5347_v43  ;;  %v5343_v26 = vmin.f32 %v5319_v15, 20.0  ;;  %vm5338_vm6 = vcmp.gt.f32.partialorder %v5319_v15, 20.0 }
0x16b0   :  { %v5323_v22 = vpop.f32.mrf.mxu0 }
0x16b1   :  { %v5349_v56 = vmul.f32 1.442695, %v5343_v26  ;;  %v5324_v25 = vadd.f32 %v5784_v44, %v5323_v22 }
0x16b2   :  { %v7169_v39 = vpop.f32.mrf.mxu0 }
0x16b3   :  { %7503 = vpow2.f32 %v5349_v56  ;;  %v5344_v52 = vmin.f32 %v5324_v25, 20.0  ;;  %vm5339_vm7 = vcmp.gt.f32.partialorder %v5324_v25, 20.0 }
0x16b4   :  { %v5328_v2 = vpop.f32.mrf.mxu0 }
0x16b5   :  { %v5351_v28 = vmul.f32 1.442695, %v5344_v52  ;;  %v5329_v13 = vadd.f32 %v5784_v44, %v5328_v2 }
0x16b6   :  { %v7172_v20 = vpop.f32.mrf.mxu0 }
0x16b7   :  { %7505 = vpow2.f32 %v5351_v28  ;;  %v5345_v18 = vmin.f32 %v5329_v13, 20.0  ;;  %vm5340_vm8 = vcmp.gt.f32.partialorder %v5329_v13, 20.0 }
0x16b9   :  { %v5353_v49 = vmul.f32 1.442695, %v5345_v18  ;;  %v5333_v29 = vpop.f32.mrf.mxu0 }
0x16ba   :  { %v5334_v38 = vadd.f32 %v5784_v44, %v5333_v29 }
0x16bb   :  { %7507 = vpow2.f32 %v5353_v49  ;;  %v7175_v27 = vpop.f32.mrf.mxu0 }
0x16bc   :  { %v7502_v36 = vpop.eup %7501  ;;  %v5346_v23 = vmin.f32 %v5334_v38, 20.0  ;;  %vm5341_vm2 = vcmp.gt.f32.partialorder %v5334_v38, 20.0 }
0x16bd   :  { %v5357_v7 = vadd.f32 1.0, %v7502_v36 }
0x16be   :  { %v5355_v35 = vmul.f32 1.442695, %v5346_v23 }
0x16bf   :  { %7509 = vlog2.f32 %v5357_v7 }
0x16c0   :  { %v7504_v47 = vpop.eup %7503  ;;  %7511 = vpow2.f32 %v5355_v35 }
0x16c1   :  { %v5358_v24 = vadd.f32 1.0, %v7504_v47 }
0x16c3   :  { %7513 = vlog2.f32 %v5358_v24 }
0x16c4   :  { %v7506_v34 = vpop.eup %7505 }
0x16c5   :  { %v5359_v33 = vadd.f32 1.0, %v7506_v34 }
0x16c7   :  { %7515 = vlog2.f32 %v5359_v33 }
0x16c8   :  { %v7508_v37 = vpop.eup %7507 }
0x16c9   :  { %v5360_v3 = vadd.f32 1.0, %v7508_v37 }
0x16cb   :  { %7517 = vlog2.f32 %v5360_v3 }
0x16cc   :  { %v7510_v4 = vpop.eup %7509 }
0x16cd   :  { %v7512_v50 = vpop.eup %7511  ;;  %v5363_v63 = vmul.f32 0.6931472, %v7510_v4 }
0x16ce   :  { %v5361_v19 = vadd.f32 1.0, %v7512_v50 }
0x16cf   :  { %v5372_v40 = vsel %vm5337_vm11, %v5314_v41, %v5363_v63 }
0x16d0   :  { %v7514_v17 = vpop.eup %7513  ;;  %7519 = vlog2.f32 %v5361_v19  ;;  %7193 = vmatmul.mubr.msk.f32.vlgmr.msra.gmra.mxu1 %vm329_vm3, %v5372_v40 }
0x16d1   :  { %v5365_v51 = vmul.f32 0.6931472, %v7514_v17  ;;  %7195 = vmatprep.mubr.msk.f32.mxu1 %vm7550_vm0, %v7548_v0 }
0x16d3   :  { %v5373_v5 = vsel %vm5338_vm6, %v5319_v15, %v5365_v51 }
0x16d4   :  { %v7516_v21 = vpop.eup %7515  ;;  %7196 = vmatmul.mubr.msk.f32.gmra.mxu1 %vm329_vm3, %v5373_v5 }
0x16d5   :  { %v5367_v61 = vmul.f32 0.6931472, %v7516_v21  ;;  %7198 = vmatprep.mubr.msk.f32.mxu1 %vm7550_vm0, %v7548_v0 }
0x16d7   :  { %v5374_v42 = vsel %vm5339_vm7, %v5324_v25, %v5367_v61 }
0x16d8   :  { %v7518_v14 = vpop.eup %7517  ;;  %7199 = vmatmul.mubr.msk.f32.gmra.mxu1 %vm329_vm3, %v5374_v42 }
0x16d9   :  { %v5369_v1 = vmul.f32 0.6931472, %v7518_v14  ;;  %7201 = vmatprep.mubr.msk.f32.mxu1 %vm7550_vm0, %v7548_v0 }
0x16db   :  { %v5375_v59 = vsel %vm5340_vm8, %v5329_v13, %v5369_v1 }
0x16dc   :  { %7202 = vmatmul.mubr.msk.f32.gmra.mxu1 %vm329_vm3, %v5375_v59 }
0x16dd   :  { %v7520_v53 = vpop.eup %7519  ;;  %7204 = vmatprep.mubr.msk.f32.mxu1 %vm7550_vm0, %v7548_v0 }
0x16de   :  { %v5371_v45 = vmul.f32 0.6931472, %v7520_v53 }
0x16e0   :  { %v5376_v32 = vsel %vm5341_vm2, %v5334_v38, %v5371_v45 }
0x16e1   :  { %7205 = vmatmul.mubr.msk.f32.gmra.mxu1 %vm329_vm3, %v5376_v32 }
0x1790   :  { %v5473_v57 = vpop.f32.mrf.mxu1 }
0x1791   :  { %v5474_v31 = vadd.f32 %v5790_v16, %v5473_v57 }
0x1792   :  { %v7194_v0 = vpop.f32.mrf.mxu1 }
0x1793   :  { %5498 = vst.msk [vmem:[%s5542_s29] sm:$0xff] %vm5497_vm12, %v5474_v31 }
0x1794   :  { %v5478_v46 = vpop.f32.mrf.mxu1 }
0x1795   :  { %v5479_v62 = vadd.f32 %v5790_v16, %v5478_v46 }
0x1796   :  { %v7197_v60 = vpop.f32.mrf.mxu1 }
0x1797   :  { %5499 = vst.msk [vmem:[%s5542_s29 + $0x8] sm:$0xff] %vm5497_vm12, %v5479_v62 }
0x1798   :  { %v5483_v48 = vpop.f32.mrf.mxu1 }
0x1799   :  { %v5484_v54 = vadd.f32 %v5790_v16, %v5483_v48 }
0x179a   :  { %v7200_v30 = vpop.f32.mrf.mxu1 }
0x179b   :  { %5500 = vst.msk [vmem:[%s5542_s29 + $0x10] sm:$0xff] %vm5497_vm12, %v5484_v54 }
0x179c   :  { %v5488_v58 = vpop.f32.mrf.mxu1 }
0x179d   :  { %v5489_v6 = vadd.f32 %v5790_v16, %v5488_v58 }
0x179e   :  { %v7203_v12 = vpop.f32.mrf.mxu1 }
0x179f   :  { %5501 = vst.msk [vmem:[%s5542_s29 + $0x18] sm:$0xff] %vm5497_vm12, %v5489_v6 }
0x17a1   :  { %v5493_v44 = vpop.f32.mrf.mxu1 }
0x17a2   :  { %v5494_v11 = vadd.f32 %v5790_v16, %v5493_v44 }
0x17a3   :  { %v7206_v41 = vpop.f32.mrf.mxu1 }
0x17a4   :  { %5502 = vst.msk [vmem:[%s5542_s29 + $0x20] sm:$0xff] %vm5497_vm12, %v5494_v11 }

</bundles_post_ra>
